<compile_context>
chip_gen: v7x
topology: tpu7x:2x2x1
jax: 0.10.0
libtpu: 0.0.40
codegen_flags: <defaults>
</compile_context>

<pallas_src>
import functools

import numpy as np
import jax
import jax.numpy as jnp
from jax.experimental import pallas as pl
from jax.experimental.pallas import tpu as pltpu


# ---------------------------------------------------------------------------
# Deterministic parameter construction (same math as the PyTorch __init__)
# ---------------------------------------------------------------------------
def _get_istft_kernels(nfft):
    nfft = int(nfft)
    assert nfft % 2 == 0

    def kernel_fn(time, freq):
        return np.exp(1j * (2 * np.pi * time * freq) / nfft)

    kernels = np.fromfunction(kernel_fn, (nfft, nfft // 2 + 1), dtype=np.float64)
    ac_cof = float(np.real(kernels[0, 0]))            # == 1.0
    kernels = 2 * kernels[:, 1:]
    kernels[:, -1] = kernels[:, -1] / 2.0
    real_kernels = np.real(kernels).astype(np.float32)   # (nfft, n_freq)
    imag_kernels = np.imag(kernels).astype(np.float32)   # (nfft, n_freq)
    # win_cof (1/hann window) is built in the PyTorch __init__ but never used in
    # forward(), so it is intentionally omitted here.
    return real_kernels, imag_kernels, ac_cof


def _shift_rows(x, top, bottom):
    """Pad a (rows, cols) value with `top` zero rows above and `bottom` below."""
    parts = []
    if top:
        parts.append(jnp.zeros((top, x.shape[1]), x.dtype))
    parts.append(x)
    if bottom:
        parts.append(jnp.zeros((bottom, x.shape[1]), x.dtype))
    if len(parts) == 1:
        return x
    return jnp.concatenate(parts, axis=0)


# ---------------------------------------------------------------------------
# Pallas kernel: grid = (batch, frame-tile [+1 flush step when R > 1])
# ---------------------------------------------------------------------------
def _istft_kernel(kr_ref, ki_ref, magn_ref, phase_ref, ac_ref, out_ref, carry_ref,
                  *, hop, Tt, R, nT, ac_scale):
    # kr_ref / ki_ref    : (n_freq, nfft)  bf16, pre-scaled by 1/nfft, shared
    # magn_ref/phase_ref : (1, n_freq, Tt) f32, native layout (no wrapper transpose)
    # ac_ref             : (1, Tt, 1)      f32
    # out_ref            : (1, Tt, hop)    f32; row-major flatten of (B,S,hop) == signal
    # carry_ref          : (max(R-1,1), hop) f32 scratch, persists across grid steps
    t = pl.program_id(1)

    if R > 1:
        @pl.when(t == 0)
        def _zero_carry():
            carry_ref[...] = jnp.zeros_like(carry_ref)

    def _compute():
        # bf16 operands for the MXU; transposing the (n_freq, Tt) spectra tiles
        # (instead of the (nfft, Tt) f32 result) halves XLU traffic and lets the
        # phase transpose overlap the magn matmul.
        mg_t = magn_ref[0].astype(jnp.bfloat16).T      # (Tt, n_freq)
        ph_t = phase_ref[0].astype(jnp.bfloat16).T     # (Tt, n_freq)
        frames = jnp.dot(mg_t, kr_ref[...], preferred_element_type=jnp.float32)
        # '+' is intentional: Kr@magn - Ki@(-phase) == Kr@magn + Ki@phase.
        frames = frames + jnp.dot(ph_t, ki_ref[...], preferred_element_type=jnp.float32)
        frames = frames + ac_scale * ac_ref[0]         # (Tt,1) broadcast over lanes, f32

        # Overlap-add inside the tile, accumulated as a value:
        # local frame i, segment j (width hop) lands at local output row i + j.
        acc = _shift_rows(frames[:, 0:hop], 0, R - 1)                  # (Tt+R-1, hop)
        for j in range(1, R):                                          # static unroll
            acc = acc + _shift_rows(frames[:, j * hop:(j + 1) * hop], j, R - 1 - j)

        if R > 1:
            # Carry-in from the previous tile covers local rows [0, R-1).
            acc = acc + _shift_rows(carry_ref[...], 0, Tt)
            out_ref[0] = acc[0:Tt, :]                  # single aligned lane-dense store
            carry_ref[...] = acc[Tt:, :]               # spill into the next tile
        else:
            out_ref[0] = acc

    if R > 1:
        pl.when(t < nT)(_compute)

        @pl.when(t == nT)
        def _flush():
            # Final R-1 signal rows come from the last tile's carry alone. The output
            # block is partial here; rows beyond the array bound are clipped at writeback.
            out_ref[0] = _shift_rows(carry_ref[...], 0, Tt - (R - 1))
    else:
        _compute()


# ---------------------------------------------------------------------------
# Wrapper: parameter setup + pallas_call plumbing
# ---------------------------------------------------------------------------
def istft_pallas(magn, phase, ac, nfft=1024, hop_length=512, frame_tile=None):
    nfft = int(nfft)
    hop = int(hop_length)
    B, C, n_freq, T = magn.shape
    assert C == 1 and n_freq == nfft // 2
    assert phase.shape == magn.shape
    assert ac.shape == (B, 1, T)
    assert nfft % 2 == 0 and 0 < hop <= nfft and nfft % hop == 0
    # Alignment for lane-dense stores / in-kernel transposes (holds for nfft=1024, hop=512).
    assert nfft % 128 == 0 and hop % 128 == 0 and T % 8 == 0

    R = nfft // hop                                   # frames overlapping one output row
    S = T + R - 1                                     # output rows of width `hop`
    out_len = (T - 1) * hop + nfft                    # == S * hop exactly

    # Frame tile: largest of {512, 256, 128} dividing T, else the whole T.
    if frame_tile is None:
        Tt = T
        for cand in (512, 256, 128):
            if T % cand == 0:
                Tt = cand
                break
    else:
        Tt = int(frame_tile)
    assert T % Tt == 0 and (Tt % 128 == 0 or Tt == T) and Tt % 8 == 0
    assert R - 1 < Tt
    nT = T // Tt
    nG = nT + (1 if R > 1 else 0)                     # +1 flush step for the carry tail

    Kr, Ki, ac_cof = _get_istft_kernels(nfft)
    # Fold 1/nfft into the weights, transpose to (n_freq, nfft) so the kernel computes
    # frames = spectraT @ K directly in (frame, sample) layout, and cast to bf16 for
    # the MXU (accumulation stays f32 via preferred_element_type).
    KrT = jnp.asarray((Kr.T / np.float32(nfft)), dtype=jnp.bfloat16)   # (n_freq, nfft)
    KiT = jnp.asarray((Ki.T / np.float32(nfft)), dtype=jnp.bfloat16)   # (n_freq, nfft)

    # Size-1 dim reshapes are metadata-only (row-major layout unchanged): no HBM pass.
    magn3 = magn.reshape(B, n_freq, T)
    phase3 = phase.reshape(B, n_freq, T)
    ac3 = ac.reshape(B, T, 1)

    kernel = functools.partial(
        _istft_kernel, hop=hop, Tt=Tt, R=R, nT=nT,
        ac_scale=float(ac_cof) / float(nfft))

    # Clamp the frame-tile index so the flush step re-uses the last tile's block index
    # (Pallas skips the DMA when the block index is unchanged).
    def clamp(t):
        return jnp.minimum(t, nT - 1)

    def make_call(single_buffer_weights):
        wkw = {"pipeline_mode": pl.Buffered(1)} if single_buffer_weights else {}
        grid_spec = pltpu.PrefetchScalarGridSpec(
            num_scalar_prefetch=0,
            grid=(B, nG),
            in_specs=[
                pl.BlockSpec((n_freq, nfft), lambda b, t: (0, 0), **wkw),     # KrT (shared)
                pl.BlockSpec((n_freq, nfft), lambda b, t: (0, 0), **wkw),     # KiT (shared)
                pl.BlockSpec((1, n_freq, Tt), lambda b, t: (b, 0, clamp(t))),  # magn tile
                pl.BlockSpec((1, n_freq, Tt), lambda b, t: (b, 0, clamp(t))),  # phase tile
                pl.BlockSpec((1, Tt, 1), lambda b, t: (b, clamp(t), 0)),       # ac tile
            ],
            out_specs=pl.BlockSpec((1, Tt, hop), lambda b, t: (b, t, 0)),
            scratch_shapes=[pltpu.VMEM((max(R - 1, 1), hop), jnp.float32)],    # OA carry
        )
        return pl.pallas_call(
            kernel,
            out_shape=jax.ShapeDtypeStruct((B, S, hop), jnp.float32),
            grid_spec=grid_spec,
            compiler_params=pltpu.CompilerParams(
                dimension_semantics=("parallel", "arbitrary")),
        )

    try:
        out = make_call(True)(KrT, KiT, magn3, phase3, ac3)
    except Exception:
        # pl.Buffered(1) on the constant-indexed weights is only a VMEM-headroom
        # optimization; fall back to default double buffering if unsupported.
        out = make_call(False)(KrT, KiT, magn3, phase3, ac3)

    # (B, S, hop) is contiguous; flattening to the signal is a free reshape.
    return out.reshape(B, out_len)


# ---------------------------------------------------------------------------
# Pure-numpy reference (mirrors the PyTorch forward) for a sanity check
# ---------------------------------------------------------------------------
def _istft_ref(magn, phase, ac, nfft, hop):
    Kr, Ki, ac_cof = _get_istft_kernels(nfft)
    magn = np.asarray(magn, np.float32)[:, 0]      # (B, n_freq, T)
    phase = np.asarray(phase, np.float32)[:, 0]
    ac = np.asarray(ac, np.float32)[:, 0]          # (B, T)
    B, n_freq, T = magn.shape
    real_part = np.einsum("cf,bft->bct", Kr, magn)
    imag_part = np.einsum("cf,bft->bct", Ki, -phase)   # torch negates phase first
    frames = (real_part - imag_part + ac_cof * ac[:, None, :]) / float(nfft)
    out_len = (T - 1) * hop + nfft
    y = np.zeros((B, out_len), np.float32)
    for t in range(T):
        y[:, t * hop:t * hop + nfft] += frames[:, :, t]
    return y


if __name__ == "__main__":
    nfft, hop = 256, 128
    B, T = 2, 256
    n_freq = nfft // 2

    key = jax.random.PRNGKey(0)
    k1, k2, k3 = jax.random.split(key, 3)
    magn = jax.random.normal(k1, (B, 1, n_freq, T), dtype=jnp.float32)
    phase = jax.random.normal(k2, (B, 1, n_freq, T), dtype=jnp.float32)
    ac = jax.random.normal(k3, (B, 1, T), dtype=jnp.float32)

    out = istft_pallas(magn, phase, ac, nfft=nfft, hop_length=hop)
    out = jax.block_until_ready(out)

    ref = _istft_ref(magn, phase, ac, nfft, hop)
    assert out.shape == (B, (T - 1) * hop + nfft), out.shape
    # bf16 MXU operands with f32 accumulation: looser tolerance than pure f32.
    np.testing.assert_allclose(np.asarray(out), ref, rtol=2e-2, atol=5e-3)

    print("KERNEL_OK")
</pallas_src>

<mosaic_0001>
module attributes {stable_mosaic.version = 11 : i64} {
  func.func @_istft_kernel(%arg0: i32, %arg1: i32, %arg2: memref<128x256xbf16, #tpu.memory_space<vmem>>, %arg3: memref<128x256xbf16, #tpu.memory_space<vmem>>, %arg4: memref<1x128x256xf32, #tpu.memory_space<vmem>>, %arg5: memref<1x128x256xf32, #tpu.memory_space<vmem>>, %arg6: memref<1x256x1xf32, #tpu.memory_space<vmem>>, %arg7: memref<1x256x128xf32, #tpu.memory_space<vmem>>, %arg8: memref<1x128xf32, #tpu.memory_space<vmem>>) attributes {dimension_semantics = [#tpu.dimension_semantics<parallel>, #tpu.dimension_semantics<arbitrary>], iteration_bounds = array<i64: 2, 2>, scalar_prefetch = 0 : i64, scratch_operands = 1 : i64, tpu.core_type = #tpu.core_type<tc>, window_params = [{pipeline_mode = #tpu.pipeline_mode<synchronous>, transform_indices = @transform_0, window_bounds = array<i64: 128, 256>}, {pipeline_mode = #tpu.pipeline_mode<synchronous>, transform_indices = @transform_1, window_bounds = array<i64: 128, 256>}, {transform_indices = @transform_2, window_bounds = array<i64: 1, 128, 256>}, {transform_indices = @transform_3, window_bounds = array<i64: 1, 128, 256>}, {transform_indices = @transform_4, window_bounds = array<i64: 1, 256, 1>}, {transform_indices = @transform_5, window_bounds = array<i64: 1, 256, 128>}]} {
    %c0_i32 = arith.constant 0 : i32
    %0 = arith.cmpi eq, %arg1, %c0_i32 : i32
    %1 = arith.extui %0 : i1 to i32
    %c0_i32_0 = arith.constant 0 : i32
    %2 = arith.cmpi ne, %1, %c0_i32_0 : i32
    scf.if %2 {
      %cst = arith.constant 0.000000e+00 : f32
      %9 = vector.broadcast %cst : f32 to vector<1x128xf32>
      %c0 = arith.constant 0 : index
      %c0_4 = arith.constant 0 : index
      %10 = vector.load %arg8[%c0, %c0_4] : memref<1x128xf32, #tpu.memory_space<vmem>>, vector<1x128xf32>
      tpu.vector_store %arg8[%c0, %c0_4], %9 {strides = array<i32>} : memref<1x128xf32, #tpu.memory_space<vmem>>, vector<1x128xf32>,
    } else {
    }
    %c1_i32 = arith.constant 1 : i32
    %3 = arith.cmpi slt, %arg1, %c1_i32 : i32
    %4 = arith.extui %3 : i1 to i32
    %c0_i32_1 = arith.constant 0 : i32
    %5 = arith.cmpi ne, %4, %c0_i32_1 : i32
    scf.if %5 {
      %c0 = arith.constant 0 : index
      %c0_4 = arith.constant 0 : index
      %c0_5 = arith.constant 0 : index
      %9 = vector.load %arg4[%c0, %c0_4, %c0_5] : memref<1x128x256xf32, #tpu.memory_space<vmem>>, vector<1x128x256xf32>
      %10 = vector.shape_cast %9 : vector<1x128x256xf32> to vector<128x256xf32>
      %11 = arith.truncf %10 : vector<128x256xf32> to vector<128x256xbf16>
      %12 = tpu.transpose %11, [1, 0] : vector<128x256xbf16> -> vector<256x128xbf16>
      %c0_6 = arith.constant 0 : index
      %c0_7 = arith.constant 0 : index
      %c0_8 = arith.constant 0 : index
      %13 = vector.load %arg5[%c0_6, %c0_7, %c0_8] : memref<1x128x256xf32, #tpu.memory_space<vmem>>, vector<1x128x256xf32>
      %14 = vector.shape_cast %13 : vector<1x128x256xf32> to vector<128x256xf32>
      %15 = arith.truncf %14 : vector<128x256xf32> to vector<128x256xbf16>
      %16 = tpu.transpose %15, [1, 0] : vector<128x256xbf16> -> vector<256x128xbf16>
      %c0_9 = arith.constant 0 : index
      %c0_10 = arith.constant 0 : index
      %17 = vector.load %arg2[%c0_9, %c0_10] : memref<128x256xbf16, #tpu.memory_space<vmem>>, vector<128x256xbf16>
      %cst = arith.constant dense<0.000000e+00> : vector<256x256xf32>
      %18 = tpu.matmul %12, %17, %cst {dimension_numbers = #tpu.dot_dimension_numbers<[1], [0], [0], [1], [0, 0, 1, 1], [], []>} : vector<256x128xbf16>, vector<128x256xbf16>, vector<256x256xf32> -> vector<256x256xf32>
      %c0_11 = arith.constant 0 : index
      %c0_12 = arith.constant 0 : index
      %19 = vector.load %arg3[%c0_11, %c0_12] : memref<128x256xbf16, #tpu.memory_space<vmem>>, vector<128x256xbf16>
      %cst_13 = arith.constant dense<0.000000e+00> : vector<256x256xf32>
      %20 = tpu.matmul %16, %19, %cst_13 {dimension_numbers = #tpu.dot_dimension_numbers<[1], [0], [0], [1], [0, 0, 1, 1], [], []>} : vector<256x128xbf16>, vector<128x256xbf16>, vector<256x256xf32> -> vector<256x256xf32>
      %21 = arith.addf %18, %20 : vector<256x256xf32>
      %c0_14 = arith.constant 0 : index
      %c0_15 = arith.constant 0 : index
      %c0_16 = arith.constant 0 : index
      %22 = vector.load %arg6[%c0_14, %c0_15, %c0_16] : memref<1x256x1xf32, #tpu.memory_space<vmem>>, vector<1x256x1xf32>
      %23 = vector.shape_cast %22 : vector<1x256x1xf32> to vector<256x1xf32>
      %cst_17 = arith.constant 3.906250e-03 : f32
      %24 = vector.broadcast %cst_17 : f32 to vector<256x1xf32>
      %25 = arith.mulf %24, %23 : vector<256x1xf32>
      %26 = vector.broadcast %25 : vector<256x1xf32> to vector<256x256xf32>
      %27 = arith.addf %21, %26 : vector<256x256xf32>
      %28 = vector.extract_strided_slice %27 {offsets = [0, 0], sizes = [256, 128], strides = [1, 1]} : vector<256x256xf32> to vector<256x128xf32>
      %cst_18 = arith.constant 0.000000e+00 : f32
      %29 = vector.broadcast %cst_18 : f32 to vector<1x128xf32>
      %30 = tpu.concatenate %28, %29 in 0 : vector<256x128xf32>, vector<1x128xf32> -> vector<257x128xf32>
      %31 = vector.extract_strided_slice %27 {offsets = [0, 128], sizes = [256, 128], strides = [1, 1]} : vector<256x256xf32> to vector<256x128xf32>
      %cst_19 = arith.constant 0.000000e+00 : f32
      %32 = vector.broadcast %cst_19 : f32 to vector<1x128xf32>
      %33 = tpu.concatenate %32, %31 in 0 : vector<1x128xf32>, vector<256x128xf32> -> vector<257x128xf32>
      %34 = arith.addf %30, %33 : vector<257x128xf32>
      %c0_20 = arith.constant 0 : index
      %c0_21 = arith.constant 0 : index
      %35 = vector.load %arg8[%c0_20, %c0_21] : memref<1x128xf32, #tpu.memory_space<vmem>>, vector<1x128xf32>
      %cst_22 = arith.constant 0.000000e+00 : f32
      %36 = vector.broadcast %cst_22 : f32 to vector<256x128xf32>
      %37 = tpu.concatenate %35, %36 in 0 : vector<1x128xf32>, vector<256x128xf32> -> vector<257x128xf32>
      %38 = arith.addf %34, %37 : vector<257x128xf32>
      %39 = vector.extract_strided_slice %38 {offsets = [0, 0], sizes = [256, 128], strides = [1, 1]} : vector<257x128xf32> to vector<256x128xf32>
      %c0_23 = arith.constant 0 : index
      %c0_24 = arith.constant 0 : index
      %c0_25 = arith.constant 0 : index
      %40 = vector.load %arg7[%c0_23, %c0_24, %c0_25] : memref<1x256x128xf32, #tpu.memory_space<vmem>>, vector<1x256x128xf32>
      %41 = vector.shape_cast %40 : vector<1x256x128xf32> to vector<256x128xf32>
      %42 = vector.shape_cast %39 : vector<256x128xf32> to vector<1x256x128xf32>
      tpu.vector_store %arg7[%c0_23, %c0_24, %c0_25], %42 {strides = array<i32>} : memref<1x256x128xf32, #tpu.memory_space<vmem>>, vector<1x256x128xf32>,
      %43 = vector.extract_strided_slice %38 {offsets = [256, 0], sizes = [1, 128], strides = [1, 1]} : vector<257x128xf32> to vector<1x128xf32>
      %c0_26 = arith.constant 0 : index
      %c0_27 = arith.constant 0 : index
      %44 = vector.load %arg8[%c0_26, %c0_27] : memref<1x128xf32, #tpu.memory_space<vmem>>, vector<1x128xf32>
      tpu.vector_store %arg8[%c0_26, %c0_27], %43 {strides = array<i32>} : memref<1x128xf32, #tpu.memory_space<vmem>>, vector<1x128xf32>,
    } else {
    }
    %c1_i32_2 = arith.constant 1 : i32
    %6 = arith.cmpi eq, %arg1, %c1_i32_2 : i32
    %7 = arith.extui %6 : i1 to i32
    %c0_i32_3 = arith.constant 0 : i32
    %8 = arith.cmpi ne, %7, %c0_i32_3 : i32
    scf.if %8 {
      %c0 = arith.constant 0 : index
      %c0_4 = arith.constant 0 : index
      %9 = vector.load %arg8[%c0, %c0_4] : memref<1x128xf32, #tpu.memory_space<vmem>>, vector<1x128xf32>
      %cst = arith.constant 0.000000e+00 : f32
      %10 = vector.broadcast %cst : f32 to vector<255x128xf32>
      %11 = tpu.concatenate %9, %10 in 0 : vector<1x128xf32>, vector<255x128xf32> -> vector<256x128xf32>
      %c0_5 = arith.constant 0 : index
      %c0_6 = arith.constant 0 : index
      %c0_7 = arith.constant 0 : index
      %12 = vector.load %arg7[%c0_5, %c0_6, %c0_7] : memref<1x256x128xf32, #tpu.memory_space<vmem>>, vector<1x256x128xf32>
      %13 = vector.shape_cast %12 : vector<1x256x128xf32> to vector<256x128xf32>
      %14 = vector.shape_cast %11 : vector<256x128xf32> to vector<1x256x128xf32>
      tpu.vector_store %arg7[%c0_5, %c0_6, %c0_7], %14 {strides = array<i32>} : memref<1x256x128xf32, #tpu.memory_space<vmem>>, vector<1x256x128xf32>,
    } else {
    }
    return
  }
  func.func @transform_0(%arg0: i32, %arg1: i32) -> (i32, i32) {
    %c0_i32 = arith.constant 0 : i32
    %c0_i32_0 = arith.constant 0 : i32
    %c0_i32_1 = arith.constant 0 : i32
    return %c0_i32, %c0_i32_0 : i32, i32
  }
  func.func @transform_1(%arg0: i32, %arg1: i32) -> (i32, i32) {
    %c0_i32 = arith.constant 0 : i32
    %c0_i32_0 = arith.constant 0 : i32
    %c0_i32_1 = arith.constant 0 : i32
    return %c0_i32, %c0_i32_0 : i32, i32
  }
  func.func @transform_2(%arg0: i32, %arg1: i32) -> (i32, i32, i32) {
    %c0_i32 = arith.constant 0 : i32
    %0 = arith.minsi %arg1, %c0_i32 : i32
    %c0_i32_0 = arith.constant 0 : i32
    %c0_i32_1 = arith.constant 0 : i32
    return %arg0, %c0_i32_0, %0 : i32, i32, i32
  }
  func.func @transform_3(%arg0: i32, %arg1: i32) -> (i32, i32, i32) {
    %c0_i32 = arith.constant 0 : i32
    %0 = arith.minsi %arg1, %c0_i32 : i32
    %c0_i32_0 = arith.constant 0 : i32
    %c0_i32_1 = arith.constant 0 : i32
    return %arg0, %c0_i32_0, %0 : i32, i32, i32
  }
  func.func @transform_4(%arg0: i32, %arg1: i32) -> (i32, i32, i32) {
    %c0_i32 = arith.constant 0 : i32
    %0 = arith.minsi %arg1, %c0_i32 : i32
    %c0_i32_0 = arith.constant 0 : i32
    %c0_i32_1 = arith.constant 0 : i32
    return %arg0, %0, %c0_i32_0 : i32, i32, i32
  }
  func.func @transform_5(%arg0: i32, %arg1: i32) -> (i32, i32, i32) {
    %c0_i32 = arith.constant 0 : i32
    %c0_i32_0 = arith.constant 0 : i32
    return %arg0, %arg1, %c0_i32 : i32, i32, i32
  }
}

module attributes {stable_mosaic.version = 11 : i64} {
  func.func @_istft_kernel(%arg0: i32, %arg1: i32, %arg2: memref<128x256xbf16, #tpu.memory_space<vmem>>, %arg3: memref<128x256xbf16, #tpu.memory_space<vmem>>, %arg4: memref<1x128x256xf32, #tpu.memory_space<vmem>>, %arg5: memref<1x128x256xf32, #tpu.memory_space<vmem>>, %arg6: memref<1x256x1xf32, #tpu.memory_space<vmem>>, %arg7: memref<1x256x128xf32, #tpu.memory_space<vmem>>, %arg8: memref<1x128xf32, #tpu.memory_space<vmem>>) attributes {dimension_semantics = [#tpu.dimension_semantics<parallel>, #tpu.dimension_semantics<arbitrary>], iteration_bounds = array<i64: 2, 2>, scalar_prefetch = 0 : i64, scratch_operands = 1 : i64, tpu.core_type = #tpu.core_type<tc>, window_params = [{pipeline_mode = #tpu.pipeline_mode<synchronous>, transform_indices = @transform_0, window_bounds = array<i64: 128, 256>}, {pipeline_mode = #tpu.pipeline_mode<synchronous>, transform_indices = @transform_1, window_bounds = array<i64: 128, 256>}, {transform_indices = @transform_2, window_bounds = array<i64: 1, 128, 256>}, {transform_indices = @transform_3, window_bounds = array<i64: 1, 128, 256>}, {transform_indices = @transform_4, window_bounds = array<i64: 1, 256, 1>}, {transform_indices = @transform_5, window_bounds = array<i64: 1, 256, 128>}]} {
    %c0_i32 = arith.constant 0 : i32
    %0 = arith.cmpi eq, %arg1, %c0_i32 : i32
    %1 = arith.extui %0 : i1 to i32
    %c0_i32_0 = arith.constant 0 : i32
    %2 = arith.cmpi ne, %1, %c0_i32_0 : i32
    scf.if %2 {
      %cst = arith.constant 0.000000e+00 : f32
      %9 = vector.broadcast %cst : f32 to vector<1x128xf32>
      %c0 = arith.constant 0 : index
      %c0_4 = arith.constant 0 : index
      %10 = vector.load %arg8[%c0, %c0_4] : memref<1x128xf32, #tpu.memory_space<vmem>>, vector<1x128xf32>
      tpu.vector_store %arg8[%c0, %c0_4], %9 {strides = array<i32>} : memref<1x128xf32, #tpu.memory_space<vmem>>, vector<1x128xf32>,
    } else {
    }
    %c1_i32 = arith.constant 1 : i32
    %3 = arith.cmpi slt, %arg1, %c1_i32 : i32
    %4 = arith.extui %3 : i1 to i32
    %c0_i32_1 = arith.constant 0 : i32
    %5 = arith.cmpi ne, %4, %c0_i32_1 : i32
    scf.if %5 {
      %c0 = arith.constant 0 : index
      %c0_4 = arith.constant 0 : index
      %c0_5 = arith.constant 0 : index
      %9 = vector.load %arg4[%c0, %c0_4, %c0_5] : memref<1x128x256xf32, #tpu.memory_space<vmem>>, vector<1x128x256xf32>
      %10 = vector.shape_cast %9 : vector<1x128x256xf32> to vector<128x256xf32>
      %11 = arith.truncf %10 : vector<128x256xf32> to vector<128x256xbf16>
      %12 = tpu.transpose %11, [1, 0] : vector<128x256xbf16> -> vector<256x128xbf16>
      %c0_6 = arith.constant 0 : index
      %c0_7 = arith.constant 0 : index
      %c0_8 = arith.constant 0 : index
      %13 = vector.load %arg5[%c0_6, %c0_7, %c0_8] : memref<1x128x256xf32, #tpu.memory_space<vmem>>, vector<1x128x256xf32>
      %14 = vector.shape_cast %13 : vector<1x128x256xf32> to vector<128x256xf32>
      %15 = arith.truncf %14 : vector<128x256xf32> to vector<128x256xbf16>
      %16 = tpu.transpose %15, [1, 0] : vector<128x256xbf16> -> vector<256x128xbf16>
      %c0_9 = arith.constant 0 : index
      %c0_10 = arith.constant 0 : index
      %17 = vector.load %arg2[%c0_9, %c0_10] : memref<128x256xbf16, #tpu.memory_space<vmem>>, vector<128x256xbf16>
      %cst = arith.constant dense<0.000000e+00> : vector<256x256xf32>
      %18 = tpu.matmul %12, %17, %cst {dimension_numbers = #tpu.dot_dimension_numbers<[1], [0], [0], [1], [0, 0, 1, 1], [], []>} : vector<256x128xbf16>, vector<128x256xbf16>, vector<256x256xf32> -> vector<256x256xf32>
      %c0_11 = arith.constant 0 : index
      %c0_12 = arith.constant 0 : index
      %19 = vector.load %arg3[%c0_11, %c0_12] : memref<128x256xbf16, #tpu.memory_space<vmem>>, vector<128x256xbf16>
      %cst_13 = arith.constant dense<0.000000e+00> : vector<256x256xf32>
      %20 = tpu.matmul %16, %19, %cst_13 {dimension_numbers = #tpu.dot_dimension_numbers<[1], [0], [0], [1], [0, 0, 1, 1], [], []>} : vector<256x128xbf16>, vector<128x256xbf16>, vector<256x256xf32> -> vector<256x256xf32>
      %21 = arith.addf %18, %20 : vector<256x256xf32>
      %c0_14 = arith.constant 0 : index
      %c0_15 = arith.constant 0 : index
      %c0_16 = arith.constant 0 : index
      %22 = vector.load %arg6[%c0_14, %c0_15, %c0_16] : memref<1x256x1xf32, #tpu.memory_space<vmem>>, vector<1x256x1xf32>
      %23 = vector.shape_cast %22 : vector<1x256x1xf32> to vector<256x1xf32>
      %cst_17 = arith.constant 3.906250e-03 : f32
      %24 = vector.broadcast %cst_17 : f32 to vector<256x1xf32>
      %25 = arith.mulf %24, %23 : vector<256x1xf32>
      %26 = vector.broadcast %25 : vector<256x1xf32> to vector<256x256xf32>
      %27 = arith.addf %21, %26 : vector<256x256xf32>
      %28 = vector.extract_strided_slice %27 {offsets = [0, 0], sizes = [256, 128], strides = [1, 1]} : vector<256x256xf32> to vector<256x128xf32>
      %cst_18 = arith.constant 0.000000e+00 : f32
      %29 = vector.broadcast %cst_18 : f32 to vector<1x128xf32>
      %30 = tpu.concatenate %28, %29 in 0 : vector<256x128xf32>, vector<1x128xf32> -> vector<257x128xf32>
      %31 = vector.extract_strided_slice %27 {offsets = [0, 128], sizes = [256, 128], strides = [1, 1]} : vector<256x256xf32> to vector<256x128xf32>
      %cst_19 = arith.constant 0.000000e+00 : f32
      %32 = vector.broadcast %cst_19 : f32 to vector<1x128xf32>
      %33 = tpu.concatenate %32, %31 in 0 : vector<1x128xf32>, vector<256x128xf32> -> vector<257x128xf32>
      %34 = arith.addf %30, %33 : vector<257x128xf32>
      %c0_20 = arith.constant 0 : index
      %c0_21 = arith.constant 0 : index
      %35 = vector.load %arg8[%c0_20, %c0_21] : memref<1x128xf32, #tpu.memory_space<vmem>>, vector<1x128xf32>
      %cst_22 = arith.constant 0.000000e+00 : f32
      %36 = vector.broadcast %cst_22 : f32 to vector<256x128xf32>
      %37 = tpu.concatenate %35, %36 in 0 : vector<1x128xf32>, vector<256x128xf32> -> vector<257x128xf32>
      %38 = arith.addf %34, %37 : vector<257x128xf32>
      %39 = vector.extract_strided_slice %38 {offsets = [0, 0], sizes = [256, 128], strides = [1, 1]} : vector<257x128xf32> to vector<256x128xf32>
      %c0_23 = arith.constant 0 : index
      %c0_24 = arith.constant 0 : index
      %c0_25 = arith.constant 0 : index
      %40 = vector.load %arg7[%c0_23, %c0_24, %c0_25] : memref<1x256x128xf32, #tpu.memory_space<vmem>>, vector<1x256x128xf32>
      %41 = vector.shape_cast %40 : vector<1x256x128xf32> to vector<256x128xf32>
      %42 = vector.shape_cast %39 : vector<256x128xf32> to vector<1x256x128xf32>
      tpu.vector_store %arg7[%c0_23, %c0_24, %c0_25], %42 {strides = array<i32>} : memref<1x256x128xf32, #tpu.memory_space<vmem>>, vector<1x256x128xf32>,
      %43 = vector.extract_strided_slice %38 {offsets = [256, 0], sizes = [1, 128], strides = [1, 1]} : vector<257x128xf32> to vector<1x128xf32>
      %c0_26 = arith.constant 0 : index
      %c0_27 = arith.constant 0 : index
      %44 = vector.load %arg8[%c0_26, %c0_27] : memref<1x128xf32, #tpu.memory_space<vmem>>, vector<1x128xf32>
      tpu.vector_store %arg8[%c0_26, %c0_27], %43 {strides = array<i32>} : memref<1x128xf32, #tpu.memory_space<vmem>>, vector<1x128xf32>,
    } else {
    }
    %c1_i32_2 = arith.constant 1 : i32
    %6 = arith.cmpi eq, %arg1, %c1_i32_2 : i32
    %7 = arith.extui %6 : i1 to i32
    %c0_i32_3 = arith.constant 0 : i32
    %8 = arith.cmpi ne, %7, %c0_i32_3 : i32
    scf.if %8 {
      %c0 = arith.constant 0 : index
      %c0_4 = arith.constant 0 : index
      %9 = vector.load %arg8[%c0, %c0_4] : memref<1x128xf32, #tpu.memory_space<vmem>>, vector<1x128xf32>
      %cst = arith.constant 0.000000e+00 : f32
      %10 = vector.broadcast %cst : f32 to vector<255x128xf32>
      %11 = tpu.concatenate %9, %10 in 0 : vector<1x128xf32>, vector<255x128xf32> -> vector<256x128xf32>
      %c0_5 = arith.constant 0 : index
      %c0_6 = arith.constant 0 : index
      %c0_7 = arith.constant 0 : index
      %12 = vector.load %arg7[%c0_5, %c0_6, %c0_7] : memref<1x256x128xf32, #tpu.memory_space<vmem>>, vector<1x256x128xf32>
      %13 = vector.shape_cast %12 : vector<1x256x128xf32> to vector<256x128xf32>
      %14 = vector.shape_cast %11 : vector<256x128xf32> to vector<1x256x128xf32>
      tpu.vector_store %arg7[%c0_5, %c0_6, %c0_7], %14 {strides = array<i32>} : memref<1x256x128xf32, #tpu.memory_space<vmem>>, vector<1x256x128xf32>,
    } else {
    }
    return
  }
  func.func @transform_0(%arg0: i32, %arg1: i32) -> (i32, i32) {
    %c0_i32 = arith.constant 0 : i32
    %c0_i32_0 = arith.constant 0 : i32
    %c0_i32_1 = arith.constant 0 : i32
    return %c0_i32, %c0_i32_0 : i32, i32
  }
  func.func @transform_1(%arg0: i32, %arg1: i32) -> (i32, i32) {
    %c0_i32 = arith.constant 0 : i32
    %c0_i32_0 = arith.constant 0 : i32
    %c0_i32_1 = arith.constant 0 : i32
    return %c0_i32, %c0_i32_0 : i32, i32
  }
  func.func @transform_2(%arg0: i32, %arg1: i32) -> (i32, i32, i32) {
    %c0_i32 = arith.constant 0 : i32
    %0 = arith.minsi %arg1, %c0_i32 : i32
    %c0_i32_0 = arith.constant 0 : i32
    %c0_i32_1 = arith.constant 0 : i32
    return %arg0, %c0_i32_0, %0 : i32, i32, i32
  }
  func.func @transform_3(%arg0: i32, %arg1: i32) -> (i32, i32, i32) {
    %c0_i32 = arith.constant 0 : i32
    %0 = arith.minsi %arg1, %c0_i32 : i32
    %c0_i32_0 = arith.constant 0 : i32
    %c0_i32_1 = arith.constant 0 : i32
    return %arg0, %c0_i32_0, %0 : i32, i32, i32
  }
  func.func @transform_4(%arg0: i32, %arg1: i32) -> (i32, i32, i32) {
    %c0_i32 = arith.constant 0 : i32
    %0 = arith.minsi %arg1, %c0_i32 : i32
    %c0_i32_0 = arith.constant 0 : i32
    %c0_i32_1 = arith.constant 0 : i32
    return %arg0, %0, %c0_i32_0 : i32, i32, i32
  }
  func.func @transform_5(%arg0: i32, %arg1: i32) -> (i32, i32, i32) {
    %c0_i32 = arith.constant 0 : i32
    %c0_i32_0 = arith.constant 0 : i32
    return %arg0, %arg1, %c0_i32 : i32, i32, i32
  }
}

</mosaic_0001>

<bundles_post_ra>
// kernel: tpu_custom_call.1
= control target key start
LH: loop header
LB: loop body
LE: loop exit
PB: predicated region body
PF: predicated region fallthrough
CT: control target
= control target key end

     0   :  { %s3415_s0 = inlined_call_operand.hbm [shape: bf16[128,256], index: 0, kind: input, shape index: {}]   ;;  %s3416_s1 = inlined_call_operand.hbm [shape: bf16[128,256], index: 1, kind: input, shape index: {}]   ;;  %s3417_s2 = inlined_call_operand.vmem [shape: f32[2,128,256], index: 2, kind: input, shape index: {}]   ;;  %s3418_s3 = inlined_call_operand.hbm [shape: f32[2,128,256], index: 3, kind: input, shape index: {}]   ;;  %s3419_s4 = inlined_call_operand.vmem [shape: f32[2,256,1], index: 4, kind: input, shape index: {}]   ;;  %s3420_s5 = inlined_call_operand.vmem [shape: f32[2,257,128], index: 5, kind: output, shape index: {}]  }
   0x1   :  { %3426 = sst [smem:[#allocation15_spill]] %s3415_s0 }
   0x2   :  { %3427 = sst [smem:[#allocation16_spill]] %s3416_s1 }
   0x3   :  { %3428 = sst [smem:[#allocation17_spill]] %s3419_s4 }
   0x4   :  { %3429 = sst [smem:[#allocation18_spill]] %s3420_s5 }
   0x5   :  { %10 = vsyncpa [#allocation4], 0 }
   0x6   :  { %11 = vsyncpa [#allocation6], 0  ;;  %s2780_s18 = smov 0   ;;  %s2782_s19 = smov 0  }
   0x7   :  { %s2784_s20 = smov 0   ;;  %s2786_s21 = smov 0  }
   0x8   :  { %s2788_s22 = smov 0   ;;  %s2790_s23 = smov 0  }
   0x9   :  { %s2792_s24 = smov 0   ;;  %s2794_s25 = smov 0  }
   0xa   :  { %s2796_s26 = smov 0   ;;  %s2798_s27 = smov 0  }
   0xb LB: > { %s2829_s28 = sadd.s32 4294967295, %s2706_s27   ;;  %p123_p0 = scmp.ne.s32.totalorder %s2686_s22, %s2682_s21  ;;  %s2706_s27 = sphi %s2798_s27, %s17_s27   ;;  %s2702_s26 = sphi %s2796_s26, %s3467_s26   ;;  %s2698_s25 = sphi %s2794_s25, %s3466_s25   ;;  %s2694_s24 = sphi %s2792_s24, %s3465_s24   ;;  %s2690_s23 = sphi %s2790_s23, %s3464_s23   ;;  %s2686_s22 = sphi %s2788_s22, %s3463_s22   ;;  %s2682_s21 = sphi %s2786_s21, %s3462_s21   ;;  %s2678_s20 = sphi %s2784_s20, %s3461_s20   ;;  %s2674_s19 = sphi %s2782_s19, %s3460_s19   ;;  %s2670_s18 = sphi %s2780_s18, %s3459_s18  }
   0xc   : > { %p124_p1 = scmp.eq.s32.totalorder %s2706_s27, 0  ;;  %p129_p2 = scmp.ne.s32.totalorder %s2682_s21, %s2678_s20 }
   0xd   : > { %p3421_p3 = scmp.eq.s32.totalorder %s2829_s28, 0  ;;  %p186_p6 = scmp.ne.s32.totalorder %s2674_s19, %s2670_s18 }
   0xe   : > { %p2837_p4 = por %p124_p1, %p123_p0  ;;  %p187_p7 = scmp.eq.s32.totalorder %s2829_s28, 3 }
   0xf   : > { %p2844_p5 = por %p3421_p3, %p129_p2  ;;  %p2130_p8 = scmp.ge.s32.totalorder %s2706_s27, 1 }
  0x10   : > { %p200_p9 = scmp.lt.s32.totalorder %s2706_s27, 5  ;;  %p2853_p10 = por %p187_p7, %p186_p6 }
  0x11   : > { %s3431_s7 = scalar_select %p2844_p5, 1, 0 }
  0x12   : > { %s3432_s8 = scalar_select %p2853_p10, 1, 0 }
  0x13   : > { %p2857_p11 = pnand %p2130_p8, %p200_p9  ;;  %s2740_s10 = smov [#allocation3]  }
  0x14   : > { %3433 = sst [smem:[#allocation12_spill]] %s3432_s8  ;;  %s212_s11 = sshll.u32 %s2740_s10, 4  ;;  %s2861_s11 = int_to_ptr.vmem [resolvable:$true] %s212_s11 }
  0x15   : > { %p2278_p12 = pneg %p2857_p11  ;;  %p2291_p13 = scmp.lt.s32.totalorder %s2706_s27, 4 }
  0x16   : > { %s2741_s14 = smov [#allocation5]   ;;  %s3437_s0 = sld [smem:[#allocation15_spill]] }
  0x17   : > { %p2868_p0 = pnand %p2278_p12, %p3421_p3  ;;  %p2874_p1 = pnand %p2291_p13, %p2837_p4 }
  0x18   : > { %s225_s15 = sshll.u32 %s2741_s14, 4  ;;  %s2878_s15 = int_to_ptr.vmem [resolvable:$true] %s225_s15 }
  0x19   : > { %p2499_p6 = pneg %p2868_p0 }
  0x1c   : > { %s2497_s20 = scalar_lea.hbm %s3437_s0, 2048 }
  0x1d   : > { %p2498_p2 = scmp.ne.s32.totalorder %s3437_s0, %s2497_s20  ;;  %p2504_p8 = scmp.lt.u32.totalorder %s2497_s20, %s3437_s0 }
  0x1f   : > { %p2500_p4 = pnand %p2499_p6, %p2498_p2 }
  0x21   : > { %p2501_p7 = pneg %p2500_p4 }
  0x23   : > { %p2506_p9 = pnand %p2504_p8, %p2501_p7 }
  0x25   : > { %2509 = shalt.err (!%p2506_p9)
}
  0x26   : > { %s2510_s14 = scalar_lea.vmem %s2861_s11, 2048  ;;  %p2518_p10 = scmp.lt.s32.totalorder %s2861_s11, %s2861_s11 }
  0x27   : > { %p2511_p12 = scmp.ne.s32.totalorder %s2861_s11, %s2510_s14  ;;  %p2519_p2 = scmp.lt.s32.totalorder %s2510_s14, %s2510_s14 }
  0x29   : > { %p2513_p13 = pnand %p2511_p12, %p2499_p6  ;;  %p2520_p4 = por %p2519_p2, %p2518_p10 }
  0x2b   : > { %p2514_p3 = pneg %p2513_p13 }
  0x2d   : > { %p2521_p5 = pnand %p2520_p4, %p2514_p3 }
  0x2f   : > { %2524 = shalt.err (!%p2521_p5)
}
  0x30   : > { %s2742_s29 = smov 128   ;;  %s2743_s6 = smov 8  }
  0x31   : > { %2281 = dma.hbm_to_vmem [thread:$0]  (!%p2868_p0), %s3437_s0, 2048, %s2861_s11, [#allocation4], %s2742_s29, %s2742_s29, %s2743_s6  }
  0x32   : > { %s3438_s1 = sld [smem:[#allocation16_spill]] }
  0x38   : > { %s2525_s30 = scalar_lea.hbm %s3438_s1, 2048 }
  0x39   : > { %p2526_p10 = scmp.ne.s32.totalorder %s3438_s1, %s2525_s30  ;;  %p2532_p7 = scmp.lt.u32.totalorder %s2525_s30, %s3438_s1 }
  0x3b   : > { %p2528_p3 = pnand %p2526_p10, %p2499_p6 }
  0x3d   : > { %p2529_p5 = pneg %p2528_p3 }
  0x3f   : > { %p2534_p8 = pnand %p2532_p7, %p2529_p5 }
  0x41   : > { %2537 = shalt.err (!%p2534_p8)
}
  0x42   : > { %s2538_s11 = scalar_lea.vmem %s2878_s15, 2048  ;;  %p2546_p2 = scmp.lt.s32.totalorder %s2878_s15, %s2878_s15 }
  0x43   : > { %p2539_p9 = scmp.ne.s32.totalorder %s2878_s15, %s2538_s11  ;;  %p2547_p4 = scmp.lt.s32.totalorder %s2538_s11, %s2538_s11 }
  0x45   : > { %p2541_p12 = pnand %p2539_p9, %p2499_p6  ;;  %p2548_p10 = por %p2547_p4, %p2546_p2 }
  0x47   : > { %p2542_p13 = pneg %p2541_p12 }
  0x49   : > { %p2549_p3 = pnand %p2548_p10, %p2542_p13 }
  0x4b   : > { %2552 = shalt.err (!%p2549_p3)
}
  0x4c   : > { %2284 = dma.hbm_to_vmem [thread:$0]  (!%p2868_p0), %s3438_s1, 2048, %s2878_s15, [#allocation6], %s2742_s29, %s2742_s29, %s2743_s6  }
  0x4d   : > { %s26_s8 = sadd.s32 1, %s2698_s25  ;;  %s29_s16 = sadd.s32 1, %s2702_s26 }
  0x4e   : > { %p27_p6 = scmp.ge.s32.totalorder %s26_s8, 2  ;;  %s256_s12 = sand.u32 1, %s2706_s27  }
  0x4f   : > { %s258_s15 = sand.u32 1, %s2686_s22   ;;  %s3441_s10 = sadd.s32 1, %s2674_s19 }
  0x50   : > { %s3469_s8 = smov (%p27_p6, %s26_s8), 0  ;;  %s3471_s16 = smov (!%p27_p6, %s29_s16), %s2702_s26 }
  0x51   : > { %3439 = sst [smem:[#allocation13_spill]] %s3469_s8  ;;  %p31_p5 = scmp.ge.s32.totalorder %s3471_s16, 2 }
  0x52   : > { %s172_s17 = ssub.s32 %s2698_s25, %s3469_s8  ;;  %s2134_s6 = sshll.u32 %s258_s15, 8 }
  0x53   : > { %s3473_s16 = smov (%p31_p5, %s3471_s16), 0  ;;  %s3442_s14 = sadd.s32 1, %s2686_s22 }
  0x54   : > { %3440 = sst [smem:[#allocation14_spill]] %s3473_s16  ;;  %s111_s20 = ssub.s32 %s2702_s26, %s3473_s16 }
  0x55   : > { %s173_s29 = sor.u32 %s172_s17, %s111_s20  ;;  %p114_p7 = scmp.eq.s32.totalorder %s111_s20, 0 }
  0x56   : > { %p174_p0 = scmp.eq.s32.totalorder %s173_s29, 0  ;;  %s260_s4 = scalar_lea.vmem [#allocation7], %s2134_s6 }
  0x57   : > { %s2953_s11 = scalar_select %p114_p7, %s2686_s22, %s3442_s14  }
  0x58   : > { %s2948_s30 = scalar_select %p174_p0, %s2674_s19, %s3441_s10  }
  0x59   : > { %s271_s5 = sshll.u32 %s260_s4, 4  ;;  %s2667_s0 = sshll.u32 %s2702_s26, 12  ;;  %s2955_s5 = int_to_ptr.vmem [resolvable:$true] %s271_s5 }
  0x5a   : > { %s2961_s8 = scalar_lea.hbm %s3418_s3, %s2667_s0  ;;  %s2963_s17 = scalar_lea.sflag [#allocation4], %s256_s12 }
  0x5b   : > { %s2553_s20 = scalar_lea.hbm %s2961_s8, 4096  ;;  %p2555_p9 = pneg %p2874_p1 }
  0x5c   : > { %p2554_p8 = scmp.ne.s32.totalorder %s2961_s8, %s2553_s20  ;;  %s2558_s1 = scalar_lea.hbm %s3418_s3, 8192 }
  0x5d   : > { %p2559_p2 = scmp.lt.u32.totalorder %s2961_s8, %s3418_s3  ;;  %p2560_p4 = scmp.lt.u32.totalorder %s2558_s1, %s2553_s20 }
  0x5e   : > { %p2556_p12 = pnand %p2555_p9, %p2554_p8  ;;  %p2562_p3 = scmp.lt.u32.totalorder %s2553_s20, %s2961_s8 }
  0x5f   : > { %p2561_p10 = por %p2560_p4, %p2559_p2 }
  0x60   : > { %p2557_p13 = pneg %p2556_p12 }
  0x61   : > { %p2563_p6 = por %p2562_p3, %p2561_p10 }
  0x63   : > { %p2564_p5 = pnand %p2563_p6, %p2557_p13 }
  0x65   : > { %2567 = shalt.err (!%p2564_p5)
}
  0x66   : > { %s2568_s12 = scalar_lea.vmem %s2955_s5, 4096  ;;  %s2744_s6 = smov [#allocation7]  }
  0x67   : > { %p2569_p0 = scmp.ne.s32.totalorder %s2955_s5, %s2568_s12  ;;  %s2573_s10 = sshll.u32 %s2744_s6, 4  ;;  %s2574_s10 = int_to_ptr.vmem [resolvable:$false] %s2573_s10 }
  0x68   : > { %s2575_s14 = scalar_lea.vmem %s2574_s10, 8192  ;;  %p2576_p12 = scmp.lt.s32.totalorder %s2955_s5, %s2574_s10 }
  0x69   : > { %p2571_p7 = pnand %p2569_p0, %p2555_p9  ;;  %p2577_p2 = scmp.lt.s32.totalorder %s2575_s14, %s2568_s12 }
  0x6b   : > { %p2572_p8 = pneg %p2571_p7  ;;  %p2578_p4 = por %p2577_p2, %p2576_p12 }
  0x6d   : > { %p2579_p10 = pnand %p2578_p4, %p2572_p8 }
  0x6f   : > { %2582 = shalt.err (!%p2579_p10)
}
  0x70   : > { %s2745_s4 = smov 256   ;;  %s2746_s20 = smov 16  }
  0x71   : > { %2288 = dma.hbm_to_vmem [thread:$0]  (!%p2874_p1), %s2961_s8, 4096, %s2955_s5, %s2963_s17, %s2745_s4, %s2745_s4, %s2746_s20  }
  0x72   : > { %300 = sbr.rel (%p2857_p11) target bundleno = 692 (0x2b4), region = 40  ;;  %p3443_p9 = scmp.eq.s32.totalorder (!%p2857_p11), %s2829_s28, 0 }
  0x79   : > { %2656 = dma.done.wait (%p3443_p9), [#allocation4], 2048   ;;  %p3444_p13 = pmov %p3443_p9 }
  0x7a   : > { %p3445_p3 = pmov %p3443_p9 }
  0x7b   : > { %2658 = vsyncadd (%p3444_p13), [#allocation4], 4294965248 }
  0x7c   : > { %2660 = dma.done.wait (%p3445_p3), [#allocation6], 2048   ;;  %p3446_p6 = pmov %p3445_p3 }
  0x7d   : > { %s310_s13 = sand.u32 1, %s2829_s28   ;;  %s312_s8 = sand.u32 1, %s2682_s21  }
  0x7e   : > { %2662 = vsyncadd (%p3446_p6), [#allocation6], 4294965248  ;;  %s2141_s5 = sshll.u32 %s312_s8, 8  ;;  %s311_s9 = scalar_lea.sflag [#allocation4], %s310_s13 }
  0x7f   : > { %s3003_s17 = scalar_lea.vmem [#allocation7], %s2141_s5  ;;  %p3447_p11 = scmp.ne.s32.totalorder %s3431_s7, 0 }
  0x81   : > { %2664 = dma.done.wait (%p3447_p11), %s311_s9, 4096  }
  0x82   : > { %2666 = vsyncadd (%p3447_p11), %s311_s9, 4294963200  ;;  %s359_s15 = sand.u32 1, %s2670_s18   ;;  %p362_p1 = scmp.lt.s32.totalorder %s2690_s23, 0 }
  0x83   : > { %s2142_s29 = sshll.u32 %s359_s15, 8  ;;  %p365_p5 = scmp.lt.s32.totalorder %s2694_s24, 1 }
  0x84   : > { %s363_s28 = scalar_select %p362_p1, %s2690_s23, 0 }
  0x85   : > { %s366_s1 = scalar_select %p365_p5, %s2694_s24, 1 }
  0x86   : > { %s2143_s0 = sshll.u32 %s363_s28, 1  ;;  %s2146_s16 = sshll.u32 %s363_s28, 5 }
  0x87   : > { %p367_p0 = scmp.lt.s32.totalorder %s2143_s0, 1  ;;  %s2144_s12 = sshll.u32 %s366_s1, 5 }
  0x88   : > { %p384_p7 = scmp.lt.s32.totalorder %s2146_s16, 31  ;;  %s3448_s5 = sld [smem:[#allocation17_spill]] }
  0x89   : > { %s3475_s0 = smov (!%p367_p0, %s2143_s0), 1  ;;  %s3024_s15 = scalar_lea.vmem [#allocation8], %s2142_s29  }
  0x8a   : > { %s3477_s16 = smov (!%p384_p7, %s2146_s16), 31  ;;  %s370_s7 = sadd.s32 %s2144_s12, %s3475_s0 }
  0x8b   : > { %s2145_s6 = sshll.u32 %s370_s7, 3  ;;  %s387_s10 = sadd.s32 %s2144_s12, %s3477_s16 }
  0x8c   : > { %s3017_s20 = scalar_lea.vmem %s3417_s2, %s2145_s6  ;;  %s2148_s18 = sshll.u32 %s387_s10, 3 }
  0x8d   : > { %p2149_p8 = scmp.ne.s32.totalorder %s2690_s23, 0 }
  0x8e   : > { %s3022_s9 = scalar_lea.vmem %s3448_s5, %s2148_s18  ;;  %v2747_v0 = vmov (!%p2149_p8), 0.0  }
  0x8f   : > { %402 = sbr.rel (%p2149_p8) target bundleno = 150 (0x96), region = 56  ;;  %403 = vst [vmem:[#allocation2] sm:$0x1] (!%p2149_p8), %v2747_v0 }
  0x96 PF: > { %p2150_p12 = scmp.ge.s32.totalorder %s2690_s23, 1 }
  0x97   : > { %v488_v1 = vld [vmem:[%s3003_s17] sm:$0xff] (!%p2150_p12)  ;;  %v490_v2 = vld [vmem:[%s3003_s17 + $0x10] sm:$0xff] (!%p2150_p12)  ;;  %v2748_v8 = vmov (!%p2150_p12), 0   ;;  %vm1466_vm0 = vcmask (!%p2150_p12), 1040384  }
  0x98   : > { %407 = sbr.rel (%p2150_p12) target bundleno = 603 (0x25b), region = 60  ;;  %v408_v3 = vld [vmem:[%s3017_s20] sm:$0xff] (!%p2150_p12)  ;;  %v520_v4 = vpack.c.bf16 (!%p2150_p12), %v490_v2, %v488_v1  ;;  %v410_v5 = vld [vmem:[%s3017_s20 + $0x10] sm:$0xff] (!%p2150_p12)  ;;  %712 = vmatprep.mubr.bf16.mxu1 (!%p2150_p12), %v2748_v8  ;;  %985 = vmatprep.mubr.bf16.mxu0 (!%p2150_p12), %v2748_v8 }
  0x99   : > { %v492_v6 = vld [vmem:[%s3003_s17 + $0x20] sm:$0xff] (!%p2150_p12)  ;;  %v494_v7 = vld [vmem:[%s3003_s17 + $0x30] sm:$0xff] (!%p2150_p12)  ;;  %v440_v9 = vpack.c.bf16 (!%p2150_p12), %v410_v5, %v408_v3  ;;  %v489_v2 = vld [vmem:[%s3003_s17 + $0x8] sm:$0xff] (!%p2150_p12) }
  0x9a   : > { %v412_v10 = vld [vmem:[%s3017_s20 + $0x20] sm:$0xff] (!%p2150_p12)  ;;  %v414_v11 = vld [vmem:[%s3017_s20 + $0x30] sm:$0xff] (!%p2150_p12)  ;;  %536 = vxpose.xlu1.c.b16.start [1/8] (!%p2150_p12), %v520_v4, 128  ;;  %v522_v12 = vpack.c.bf16 (!%p2150_p12), %v494_v7, %v492_v6  ;;  %v409_v4 = vld [vmem:[%s3017_s20 + $0x8] sm:$0xff] (!%p2150_p12) }
  0x9b   : > { %456 = vxpose.xlu0.c.b16.start [1/8] (!%p2150_p12), %v440_v9, 128  ;;  %v442_v13 = vpack.c.bf16 (!%p2150_p12), %v414_v11, %v412_v10  ;;  %v496_v14 = vld [vmem:[%s3003_s17 + $0x40] sm:$0xff] (!%p2150_p12)  ;;  %v498_v15 = vld [vmem:[%s3003_s17 + $0x50] sm:$0xff] (!%p2150_p12)  ;;  %v491_v3 = vld [vmem:[%s3003_s17 + $0x18] sm:$0xff] (!%p2150_p12) }
  0x9c   : > { %v416_v16 = vld [vmem:[%s3017_s20 + $0x40] sm:$0xff] (!%p2150_p12)  ;;  %v418_v17 = vld [vmem:[%s3017_s20 + $0x50] sm:$0xff] (!%p2150_p12)  ;;  %v524_v18 = vpack.c.bf16 (!%p2150_p12), %v498_v15, %v496_v14  ;;  %v411_v5 = vld [vmem:[%s3017_s20 + $0x18] sm:$0xff] (!%p2150_p12)  ;;  %v521_v7 = vpack.c.bf16 (!%p2150_p12), %v491_v3, %v489_v2 }
  0x9d   : > { %v444_v19 = vpack.c.bf16 (!%p2150_p12), %v418_v17, %v416_v16  ;;  %v500_v20 = vld [vmem:[%s3003_s17 + $0x60] sm:$0xff] (!%p2150_p12)  ;;  %v502_v21 = vld [vmem:[%s3003_s17 + $0x70] sm:$0xff] (!%p2150_p12)  ;;  %v495_v14 = vld [vmem:[%s3003_s17 + $0x38] sm:$0xff] (!%p2150_p12) }
  0x9e   : > { %537 = vxpose.xlu1.c.b16.cont [2/8] (!%p2150_p12), %v522_v12, 128  ;;  %v420_v22 = vld [vmem:[%s3017_s20 + $0x60] sm:$0xff] (!%p2150_p12)  ;;  %v422_v23 = vld [vmem:[%s3017_s20 + $0x70] sm:$0xff] (!%p2150_p12)  ;;  %v526_v24 = vpack.c.bf16 (!%p2150_p12), %v502_v21, %v500_v20  ;;  %v441_v12 = vpack.c.bf16 (!%p2150_p12), %v411_v5, %v409_v4  ;;  %v413_v15 = vld [vmem:[%s3017_s20 + $0x28] sm:$0xff] (!%p2150_p12) }
  0x9f   : > { %457 = vxpose.xlu0.c.b16.cont [2/8] %v442_v13, 128  ;;  %v446_v25 = vpack.c.bf16 %v422_v23, %v420_v22  ;;  %v504_v26 = vld [vmem:[%s3003_s17 + $0x80] sm:$0xff]  ;;  %v506_v27 = vld [vmem:[%s3003_s17 + $0x90] sm:$0xff]  ;;  %v493_v13 = vld [vmem:[%s3003_s17 + $0x28] sm:$0xff] }
  0xa0   : > { %v424_v28 = vld [vmem:[%s3017_s20 + $0x80] sm:$0xff]  ;;  %v426_v29 = vld [vmem:[%s3017_s20 + $0x90] sm:$0xff]  ;;  %v528_v31 = vpack.c.bf16 %v506_v27, %v504_v26  ;;  %v415_v16 = vld [vmem:[%s3017_s20 + $0x38] sm:$0xff] }
  0xa1   : > { %v2449_v30 = vld [vmem:[#allocation5 + $0x4] ss:$8 sps:$4 sm:$0xff]   ;;  %v2453_v33 = vld [vmem:[#allocation5] ss:$8 sps:$4 sm:$0xff]   ;;  %v448_v35 = vpack.c.bf16 %v426_v29, %v424_v28  ;;  %v510_v37 = vld [vmem:[%s3003_s17 + $0xb0] sm:$0xff]  ;;  %v443_v22 = vpack.c.bf16 %v415_v16, %v413_v15 }
  0xa2   : > { %538 = vxpose.xlu1.c.b16.cont [3/8] %v524_v18, 128  ;;  %v2451_v32 = vld [vmem:[#allocation3 + $0x4] ss:$8 sps:$4 sm:$0xff]   ;;  %v2454_v34 = vld [vmem:[#allocation3] ss:$8 sps:$4 sm:$0xff]   ;;  %680 = vmatprep.subr.bf16.mxu1 %v2449_v30  ;;  %v2455_v40 = vld [vmem:[#allocation5 + $0x14] ss:$8 sps:$4 sm:$0xff]   ;;  %v523_v18 = vpack.c.bf16 %v495_v14, %v493_v13 }
  0xa3   : > { %458 = vxpose.xlu0.c.b16.cont [3/8] %v444_v19, 128  ;;  %v508_v36 = vld [vmem:[%s3003_s17 + $0xa0] sm:$0xff]  ;;  %v430_v39 = vld [vmem:[%s3017_s20 + $0xb0] sm:$0xff]  ;;  %953 = vmatprep.subr.bf16.mxu0 %v2451_v32  ;;  %v419_v26 = vld [vmem:[%s3017_s20 + $0x58] sm:$0xff] }
  0xa4   : > { %v428_v38 = vld [vmem:[%s3017_s20 + $0xa0] sm:$0xff]  ;;  %681 = vmatpush1.bf16.msra.mxu1 %v2453_v33  ;;  %954 = vmatpush1.bf16.msra.mxu0 %v2454_v34  ;;  %v530_v41 = vpack.c.bf16 %v510_v37, %v508_v36  ;;  %v2459_v43 = vld [vmem:[#allocation5 + $0x10] ss:$8 sps:$4 sm:$0xff]   ;;  %v497_v23 = vld [vmem:[%s3003_s17 + $0x48] sm:$0xff] }
  0xa5   : > { %v2457_v42 = vld [vmem:[#allocation3 + $0x14] ss:$8 sps:$4 sm:$0xff]   ;;  %v2460_v44 = vld [vmem:[#allocation3 + $0x10] ss:$8 sps:$4 sm:$0xff]   ;;  %v450_v45 = vpack.c.bf16 %v430_v39, %v428_v38  ;;  %v512_v46 = vld [vmem:[%s3003_s17 + $0xc0] sm:$0xff]  ;;  %682 = vmatprep.subr.bf16.mxu1 %v2455_v40 }
  0xa6   : > { %539 = vxpose.xlu1.c.b16.cont [4/8] %v526_v24, 128  ;;  %v514_v47 = vld [vmem:[%s3003_s17 + $0xd0] sm:$0xff]  ;;  %v432_v48 = vld [vmem:[%s3017_s20 + $0xc0] sm:$0xff]  ;;  %955 = vmatprep.subr.bf16.mxu0 %v2457_v42  ;;  %v501_v27 = vld [vmem:[%s3003_s17 + $0x68] sm:$0xff] }
  0xa7   : > { %459 = vxpose.xlu0.c.b16.cont [4/8] %v446_v25, 128  ;;  %v434_v49 = vld [vmem:[%s3017_s20 + $0xd0] sm:$0xff]  ;;  %v532_v51 = vpack.c.bf16 %v514_v47, %v512_v46  ;;  %v2465_v53 = vld [vmem:[#allocation5 + $0x20] ss:$8 sps:$4 sm:$0xff]   ;;  %v499_v24 = vld [vmem:[%s3003_s17 + $0x58] sm:$0xff] }
  0xa8   : > { %683 = vmatpush1.bf16.msra.mxu1 %v2459_v43  ;;  %956 = vmatpush1.bf16.msra.mxu0 %v2460_v44  ;;  %v2461_v50 = vld [vmem:[#allocation5 + $0x24] ss:$8 sps:$4 sm:$0xff]   ;;  %v2466_v54 = vld [vmem:[#allocation3 + $0x20] ss:$8 sps:$4 sm:$0xff]   ;;  %v452_v55 = vpack.c.bf16 %v434_v49, %v432_v48  ;;  %v518_v57 = vld [vmem:[%s3003_s17 + $0xf0] sm:$0xff]  ;;  %v525_v30 = vpack.c.bf16 %v499_v24, %v497_v23 }
  0xa9   : > { %v2463_v52 = vld [vmem:[#allocation3 + $0x24] ss:$8 sps:$4 sm:$0xff]   ;;  %684 = vmatprep.subr.bf16.mxu1 %v2461_v50  ;;  %v2467_v60 = vld [vmem:[#allocation5 + $0x34] ss:$8 sps:$4 sm:$0xff]   ;;  %v2471_v63 = vld [vmem:[#allocation5 + $0x30] ss:$8 sps:$4 sm:$0xff]  }
  0xaa   : > { %540 = vxpose.xlu1.c.b16.cont [5/8] %v528_v31, 128  ;;  %v516_v56 = vld [vmem:[%s3003_s17 + $0xe0] sm:$0xff]  ;;  %v438_v59 = vld [vmem:[%s3017_s20 + $0xf0] sm:$0xff]  ;;  %957 = vmatprep.subr.bf16.mxu0 %v2463_v52  ;;  %v503_v28 = vld [vmem:[%s3003_s17 + $0x78] sm:$0xff] }
  0xab   : > { %460 = vxpose.xlu0.c.b16.cont [5/8] %v448_v35, 128  ;;  %v436_v58 = vld [vmem:[%s3017_s20 + $0xe0] sm:$0xff]  ;;  %v534_v61 = vpack.c.bf16 %v518_v57, %v516_v56  ;;  %v2472_v0 = vld [vmem:[#allocation3 + $0x30] ss:$8 sps:$4 sm:$0xff]   ;;  %v417_v25 = vld [vmem:[%s3017_s20 + $0x48] sm:$0xff] }
  0xac   : > { %685 = vmatpush1.bf16.msra.mxu1 %v2465_v53  ;;  %958 = vmatpush1.bf16.msra.mxu0 %v2466_v54  ;;  %v2469_v62 = vld [vmem:[#allocation3 + $0x34] ss:$8 sps:$4 sm:$0xff]   ;;  %v454_v1 = vpack.c.bf16 %v438_v59, %v436_v58  ;;  %v2473_v6 = vld [vmem:[#allocation5 + $0x44] ss:$8 sps:$4 sm:$0xff]   ;;  %v2477_v10 = vld [vmem:[#allocation5 + $0x40] ss:$8 sps:$4 sm:$0xff]   ;;  %v445_v36 = vpack.c.bf16 %v419_v26, %v417_v25 }
  0xad   : > { %686 = vmatprep.subr.bf16.mxu1 %v2467_v60  ;;  %959 = vmatprep.subr.bf16.mxu0 %v2469_v62  ;;  %v2475_v9 = vld [vmem:[#allocation3 + $0x44] ss:$8 sps:$4 sm:$0xff]   ;;  %v2478_v11 = vld [vmem:[#allocation3 + $0x40] ss:$8 sps:$4 sm:$0xff]   ;;  %v2479_v17 = vld [vmem:[#allocation5 + $0x54] ss:$8 sps:$4 sm:$0xff]  }
  0xae   : > { %541 = vxpose.xlu1.c.b16.cont [6/8] %v530_v41, 128  ;;  %v2481_v19 = vld [vmem:[#allocation3 + $0x54] ss:$8 sps:$4 sm:$0xff]   ;;  %v2483_v20 = vld [vmem:[#allocation5 + $0x50] ss:$8 sps:$4 sm:$0xff]   ;;  %v2485_v29 = vld [vmem:[#allocation5 + $0x64] ss:$8 sps:$4 sm:$0xff]   ;;  %v527_v41 = vpack.c.bf16 %v503_v28, %v501_v27 }
  0xaf   : > { %461 = vxpose.xlu0.c.b16.cont [6/8] %v450_v45, 128  ;;  %v2484_v21 = vld [vmem:[#allocation3 + $0x50] ss:$8 sps:$4 sm:$0xff]   ;;  %v421_v31 = vld [vmem:[%s3017_s20 + $0x68] sm:$0xff]  ;;  %v2491_v37 = vld [vmem:[#allocation5 + $0x74] ss:$8 sps:$4 sm:$0xff]  }
  0xb0   : > { %687 = vmatpush1.bf16.msra.mxu1 %v2471_v63  ;;  %960 = vmatpush1.bf16.msra.mxu0 %v2472_v0  ;;  %v423_v32 = vld [vmem:[%s3017_s20 + $0x78] sm:$0xff]  ;;  %v2487_v33 = vld [vmem:[#allocation3 + $0x64] ss:$8 sps:$4 sm:$0xff]   ;;  %v2489_v34 = vld [vmem:[#allocation5 + $0x60] ss:$8 sps:$4 sm:$0xff]  }
  0xb1   : > { %688 = vmatprep.subr.bf16.mxu1 %v2473_v6  ;;  %961 = vmatprep.subr.bf16.mxu0 %v2475_v9  ;;  %v2490_v35 = vld [vmem:[#allocation3 + $0x60] ss:$8 sps:$4 sm:$0xff]   ;;  %v2493_v38 = vld [vmem:[#allocation3 + $0x74] ss:$8 sps:$4 sm:$0xff]   ;;  %v2495_v39 = vld [vmem:[#allocation5 + $0x70] ss:$8 sps:$4 sm:$0xff]   ;;  %v447_v42 = vpack.c.bf16 %v423_v32, %v421_v31 }
  0xb2   : > { %542 = vxpose.xlu1.c.b16.cont [7/8] %v532_v51, 128  ;;  %v2496_v40 = vld [vmem:[#allocation3 + $0x70] ss:$8 sps:$4 sm:$0xff]   ;;  %v505_v43 = vld [vmem:[%s3003_s17 + $0x88] sm:$0xff]  ;;  %v1146_v6 = vld [vmem:[%s3022_s9] sm:$0xff] }
  0xb3   : > { %462 = vxpose.xlu0.c.b16.cont [7/8] %v452_v55, 128  ;;  %v507_v44 = vld [vmem:[%s3003_s17 + $0x98] sm:$0xff]  ;;  %v425_v45 = vld [vmem:[%s3017_s20 + $0x88] sm:$0xff]  ;;  %v1148_v5 = vld [vmem:[%s3022_s9 + $0x10] sm:$0xff] }
  0xb4   : > { %689 = vmatpush1.bf16.msra.mxu1 %v2477_v10  ;;  %962 = vmatpush1.bf16.msra.mxu0 %v2478_v11  ;;  %v427_v46 = vld [vmem:[%s3017_s20 + $0x98] sm:$0xff]  ;;  %v529_v47 = vpack.c.bf16 %v507_v44, %v505_v43  ;;  %v509_v49 = vld [vmem:[%s3003_s17 + $0xa8] sm:$0xff]  ;;  %v1178_v10 = vmul.f32 0.00390625, %v1146_v6  ;;  %v1150_v13 = vld [vmem:[%s3022_s9 + $0x20] sm:$0xff] }
  0xb5   : > { %690 = vmatprep.subr.bf16.mxu1 %v2479_v17  ;;  %963 = vmatprep.subr.bf16.mxu0 %v2481_v19  ;;  %v449_v48 = vpack.c.bf16 %v427_v46, %v425_v45  ;;  %v511_v50 = vld [vmem:[%s3003_s17 + $0xb8] sm:$0xff]  ;;  %v429_v51 = vld [vmem:[%s3017_s20 + $0xa8] sm:$0xff]  ;;  %v1182_v15 = vmul.f32 0.00390625, %v1150_v13  ;;  %v1152_v19 = vld [vmem:[%s3022_s9 + $0x30] sm:$0xff] }
  0xb6   : > { %543 = vxpose.xlu1.c.b16.end [8/8] %v534_v61, 128  ;;  %v431_v52 = vld [vmem:[%s3017_s20 + $0xb8] sm:$0xff]  ;;  %v531_v53 = vpack.c.bf16 %v511_v50, %v509_v49  ;;  %v513_v55 = vld [vmem:[%s3003_s17 + $0xc8] sm:$0xff] }
  0xb7   : > { %463 = vxpose.xlu0.c.b16.end [8/8] %v454_v1, 128  ;;  %v451_v54 = vpack.c.bf16 %v431_v52, %v429_v51  ;;  %v515_v56 = vld [vmem:[%s3003_s17 + $0xd8] sm:$0xff]  ;;  %v433_v57 = vld [vmem:[%s3017_s20 + $0xc8] sm:$0xff]  ;;  %v1156_v27 = vld [vmem:[%s3022_s9 + $0x50] sm:$0xff] }
  0xb8   : > { %691 = vmatpush1.bf16.msra.mxu1 %v2483_v20  ;;  %964 = vmatpush1.bf16.msra.mxu0 %v2484_v21  ;;  %v435_v58 = vld [vmem:[%s3017_s20 + $0xd8] sm:$0xff]  ;;  %v533_v59 = vpack.c.bf16 %v515_v56, %v513_v55  ;;  %v517_v61 = vld [vmem:[%s3003_s17 + $0xe8] sm:$0xff]  ;;  %v1184_v20 = vmul.f32 0.00390625, %v1152_v19  ;;  %v1154_v21 = vld [vmem:[%s3022_s9 + $0x40] sm:$0xff]  ;;  %v1188_v28 = vmul.f32 0.00390625, %v1156_v27 }
  0xb9   : > { %692 = vmatprep.subr.bf16.mxu1 %v2485_v29  ;;  %965 = vmatprep.subr.bf16.mxu0 %v2487_v33  ;;  %v453_v60 = vpack.c.bf16 %v435_v58, %v433_v57  ;;  %v519_v62 = vld [vmem:[%s3003_s17 + $0xf8] sm:$0xff]  ;;  %v437_v63 = vld [vmem:[%s3017_s20 + $0xe8] sm:$0xff]  ;;  %v1186_v23 = vmul.f32 0.00390625, %v1154_v21  ;;  %v1168_v51 = vld [vmem:[%s3022_s9 + $0xb0] sm:$0xff] }
  0xba   : > { %552 = vxpose.xlu1.c.b16.start [1/8] %v521_v7, 128  ;;  %v439_v0 = vld [vmem:[%s3017_s20 + $0xf8] sm:$0xff]  ;;  %v535_v1 = vpack.c.bf16 %v519_v62, %v517_v61  ;;  %v1147_v3 = vld [vmem:[%s3022_s9 + $0x8] sm:$0xff]  ;;  %v1180_v7 = vmul.f32 0.00390625, %v1148_v5  ;;  %v1158_v29 = vld [vmem:[%s3022_s9 + $0x60] sm:$0xff]  ;;  %v1200_v56 = vmul.f32 0.00390625, %v1168_v51 }
  0xbb   : > { %472 = vxpose.xlu0.c.b16.start [1/8] %v441_v12, 128  ;;  %v455_v2 = vpack.c.bf16 %v439_v0, %v437_v63  ;;  %v1179_v4 = vmul.f32 0.00390625, %v1147_v3  ;;  %v1149_v9 = vld [vmem:[%s3022_s9 + $0x18] sm:$0xff]  ;;  %v1151_v12 = vld [vmem:[%s3022_s9 + $0x28] sm:$0xff]  ;;  %v1190_v31 = vmul.f32 0.00390625, %v1158_v29  ;;  %v1170_v57 = vld [vmem:[%s3022_s9 + $0xc0] sm:$0xff] }
  0xbc   : > { %693 = vmatpush1.bf16.msra.mxu1 %v2489_v34  ;;  %966 = vmatpush1.bf16.msra.mxu0 %v2490_v35  ;;  %v1181_v11 = vmul.f32 0.00390625, %v1149_v9  ;;  %v1183_v14 = vmul.f32 0.00390625, %v1151_v12  ;;  %v1153_v16 = vld [vmem:[%s3022_s9 + $0x38] sm:$0xff]  ;;  %v1159_v26 = vld [vmem:[%s3022_s9 + $0x68] sm:$0xff]  ;;  %v1160_v35 = vld [vmem:[%s3022_s9 + $0x70] sm:$0xff] }
  0xbd   : > { %694 = vmatprep.subr.bf16.mxu1 %v2491_v37  ;;  %967 = vmatprep.subr.bf16.mxu0 %v2493_v38  ;;  %v1185_v17 = vmul.f32 0.00390625, %v1153_v16  ;;  %v1157_v24 = vld [vmem:[%s3022_s9 + $0x58] sm:$0xff]  ;;  %v1163_v34 = vld [vmem:[%s3022_s9 + $0x88] sm:$0xff]  ;;  %v1162_v37 = vld [vmem:[%s3022_s9 + $0x80] sm:$0xff] }
  0xbe   : > { %553 = vxpose.xlu1.c.b16.cont [2/8] %v523_v18, 128  ;;  %v1155_v18 = vld [vmem:[%s3022_s9 + $0x48] sm:$0xff]  ;;  %v1189_v25 = vmul.f32 0.00390625, %v1157_v24  ;;  %v1161_v32 = vld [vmem:[%s3022_s9 + $0x78] sm:$0xff]  ;;  %v1195_v38 = vmul.f32 0.00390625, %v1163_v34  ;;  %v1172_v61 = vld [vmem:[%s3022_s9 + $0xd0] sm:$0xff] }
  0xbf   : > { %473 = vxpose.xlu0.c.b16.cont [2/8] %v443_v22, 128  ;;  %v1187_v22 = vmul.f32 0.00390625, %v1155_v18  ;;  %v1193_v33 = vmul.f32 0.00390625, %v1161_v32  ;;  %v1167_v44 = vld [vmem:[%s3022_s9 + $0xa8] sm:$0xff]  ;;  %v1169_v49 = vld [vmem:[%s3022_s9 + $0xb8] sm:$0xff]  ;;  %v1174_v3 = vld [vmem:[%s3022_s9 + $0xe0] sm:$0xff] }
  0xc0   : > { %695 = vmatpush1.bf16.msra.mxu1 %v2495_v39  ;;  %968 = vmatpush1.bf16.msra.mxu0 %v2496_v40  ;;  %v1194_v39 = vmul.f32 0.00390625, %v1162_v37  ;;  %v1165_v40 = vld [vmem:[%s3022_s9 + $0x98] sm:$0xff]  ;;  %v1171_v55 = vld [vmem:[%s3022_s9 + $0xc8] sm:$0xff]  ;;  %v1206_v6 = vmul.f32 0.00390625, %v1174_v3 }
  0xc1   : > { %v1203_v58 = vmul.f32 0.00390625, %v1171_v55  ;;  %v1177_v5 = vld [vmem:[%s3022_s9 + $0xf8] sm:$0xff] }
  0xc2   : > { %554 = vxpose.xlu1.c.b16.cont [3/8] %v525_v30, 128  ;;  %v1191_v30 = vmul.f32 0.00390625, %v1159_v26 }
  0xc3   : > { %474 = vxpose.xlu0.c.b16.cont [3/8] %v445_v36, 128  ;;  %v1192_v36 = vmul.f32 0.00390625, %v1160_v35 }
  0xc6   : > { %555 = vxpose.xlu1.c.b16.cont [4/8] %v527_v41, 128  ;;  %v1164_v41 = vld [vmem:[%s3022_s9 + $0x90] sm:$0xff] }
  0xc7   : > { %475 = vxpose.xlu0.c.b16.cont [4/8] %v447_v42, 128  ;;  %v1197_v42 = vmul.f32 0.00390625, %v1165_v40  ;;  %v1196_v45 = vmul.f32 0.00390625, %v1164_v41 }
  0xca   : > { %556 = vxpose.xlu1.c.b16.cont [5/8] %v529_v47, 128  ;;  %v1166_v47 = vld [vmem:[%s3022_s9 + $0xa0] sm:$0xff] }
  0xcb   : > { %476 = vxpose.xlu0.c.b16.cont [5/8] %v449_v48, 128  ;;  %v1199_v48 = vmul.f32 0.00390625, %v1167_v44  ;;  %v1198_v50 = vmul.f32 0.00390625, %v1166_v47 }
  0xce   : > { %557 = vxpose.xlu1.c.b16.cont [6/8] %v531_v53, 128 }
  0xcf   : > { %477 = vxpose.xlu0.c.b16.cont [6/8] %v451_v54, 128  ;;  %v1201_v54 = vmul.f32 0.00390625, %v1169_v49 }
  0xd2   : > { %558 = vxpose.xlu1.c.b16.cont [7/8] %v533_v59, 128  ;;  %v1173_v59 = vld [vmem:[%s3022_s9 + $0xd8] sm:$0xff] }
  0xd3   : > { %478 = vxpose.xlu0.c.b16.cont [7/8] %v453_v60, 128  ;;  %v1202_v60 = vmul.f32 0.00390625, %v1170_v57  ;;  %v1205_v0 = vmul.f32 0.00390625, %v1173_v59 }
  0xd6   : > { %559 = vxpose.xlu1.c.b16.end [8/8] %v535_v1, 128  ;;  %v1175_v1 = vld [vmem:[%s3022_s9 + $0xe8] sm:$0xff] }
  0xd7   : > { %479 = vxpose.xlu0.c.b16.end [8/8] %v455_v2, 128  ;;  %v1204_v2 = vmul.f32 0.00390625, %v1172_v61 }
  0xda   : > { %2448 = vset.pattern.permute.xlu1 %v2748_v8 }
  0xdb   : > { %1217 = vperm.xlu1 %2448, %v1179_v4   ;;  %v1207_v4 = vmul.f32 0.00390625, %v1175_v1 }
  0xdf   : > { %1222 = vperm.xlu1 %2448, %v1180_v7   ;;  %v1176_v7 = vld [vmem:[%s3022_s9 + $0xf0] sm:$0xff] }
  0xe0   : > { %2447 = vset.pattern.permute.xlu0 %v2748_v8  ;;  %v1208_v12 = vmul.f32 0.00390625, %v1176_v7 }
  0xe1   : > { %1212 = vperm.xlu0 %2447, %v1178_v10  }
  0xe3   : > { %1227 = vperm.xlu1 %2448, %v1181_v11   ;;  %v1209_v11 = vmul.f32 0.00390625, %v1177_v5 }
  0xe5   : > { %1232 = vperm.xlu0 %2447, %v1182_v15  }
  0xe7   : > { %1237 = vperm.xlu1 %2448, %v1183_v14  }
  0xe9   : > { %1242 = vperm.xlu0 %2447, %v1184_v20  }
  0xeb   : > { %1247 = vperm.xlu1 %2448, %v1185_v17  }
  0xed   : > { %1252 = vperm.xlu0 %2447, %v1186_v23  }
  0xef   : > { %1257 = vperm.xlu1 %2448, %v1187_v22  }
  0xf1   : > { %1262 = vperm.xlu0 %2447, %v1188_v28  }
  0xf3   : > { %1267 = vperm.xlu1 %2448, %v1189_v25  }
  0xf5   : > { %1272 = vperm.xlu0 %2447, %v1190_v31  }
  0xf7   : > { %1277 = vperm.xlu1 %2448, %v1191_v30  }
  0xf9   : > { %1282 = vperm.xlu0 %2447, %v1192_v36  }
  0xfb   : > { %1287 = vperm.xlu1 %2448, %v1193_v33  }
  0xfd   : > { %1292 = vperm.xlu0 %2447, %v1194_v39  }
  0xff   : > { %1297 = vperm.xlu1 %2448, %v1195_v38  }
 0x100   : > { %v544_v43 = vpop.trf.xlu1 }
 0x101   : > { %v464_v46 = vpop.trf.xlu0  ;;  %713 = vmatmul.mubr.bf16.vlgmr.msra.gmra.mrb[0].mxu1 %v544_v43  ;;  %1302 = vperm.xlu0 %2447, %v1196_v45  }
 0x102   : > { %986 = vmatmul.mubr.bf16.vlgmr.msra.gmra.mrb[0].mxu0 %v464_v46  ;;  %722 = vmatprep.mubr.bf16.mxu1 %v2748_v8 }
 0x103   : > { %995 = vmatprep.mubr.bf16.mxu0 %v2748_v8  ;;  %1307 = vperm.xlu1 %2448, %v1197_v42  }
 0x104   : > { %v545_v52 = vpop.trf.xlu1 }
 0x105   : > { %v465_v53 = vpop.trf.xlu0  ;;  %1312 = vperm.xlu0 %2447, %v1198_v50  }
 0x107   : > { %1317 = vperm.xlu1 %2448, %v1199_v48  }
 0x108   : > { %v546_v62 = vpop.trf.xlu1 }
 0x109   : > { %723 = vmatmul.mubr.bf16.gmra.mrb[4].mxu1 %v545_v52  ;;  %1322 = vperm.xlu0 %2447, %v1200_v56   ;;  %v466_v63 = vpop.trf.xlu0 }
 0x10a   : > { %996 = vmatmul.mubr.bf16.gmra.mrb[4].mxu0 %v465_v53  ;;  %732 = vmatprep.mubr.bf16.mxu1 %v2748_v8 }
 0x10b   : > { %1005 = vmatprep.mubr.bf16.mxu0 %v2748_v8  ;;  %1327 = vperm.xlu1 %2448, %v1201_v54  }
 0x10c   : > { %v547_v9 = vpop.trf.xlu1 }
 0x10d   : > { %1332 = vperm.xlu0 %2447, %v1202_v60   ;;  %v467_v10 = vpop.trf.xlu0 }
 0x10f   : > { %1337 = vperm.xlu1 %2448, %v1203_v58  }
 0x110   : > { %v548_v13 = vpop.trf.xlu1 }
 0x111   : > { %733 = vmatmul.mubr.bf16.gmra.mrb[8].mxu1 %v546_v62  ;;  %1342 = vperm.xlu0 %2447, %v1204_v2   ;;  %v468_v14 = vpop.trf.xlu0 }
 0x112   : > { %1006 = vmatmul.mubr.bf16.gmra.mrb[8].mxu0 %v466_v63  ;;  %742 = vmatprep.mubr.bf16.mxu1 %v2748_v8 }
 0x113   : > { %1015 = vmatprep.mubr.bf16.mxu0 %v2748_v8  ;;  %1347 = vperm.xlu1 %2448, %v1205_v0  }
 0x114   : > { %v549_v15 = vpop.trf.xlu1 }
 0x115   : > { %1352 = vperm.xlu0 %2447, %v1206_v6   ;;  %v469_v16 = vpop.trf.xlu0 }
 0x117   : > { %1357 = vperm.xlu1 %2448, %v1207_v4  }
 0x118   : > { %v550_v17 = vpop.trf.xlu1 }
 0x119   : > { %743 = vmatmul.mubr.bf16.gmra.mrb[12].mxu1 %v547_v9  ;;  %1362 = vperm.xlu0 %2447, %v1208_v12   ;;  %v470_v18 = vpop.trf.xlu0 }
 0x11a   : > { %1016 = vmatmul.mubr.bf16.gmra.mrb[12].mxu0 %v467_v10  ;;  %752 = vmatprep.mubr.bf16.mxu1 %v2748_v8 }
 0x11b   : > { %1025 = vmatprep.mubr.bf16.mxu0 %v2748_v8  ;;  %1367 = vperm.xlu1 %2448, %v1209_v11  }
 0x11c   : > { %v551_v19 = vpop.trf.xlu1 }
 0x11d   : > { %v471_v20 = vpop.trf.xlu0 }
 0x120   : > { %v560_v21 = vpop.trf.xlu1 }
 0x121   : > { %753 = vmatmul.mubr.bf16.gmra.mrb[16].mxu1 %v548_v13  ;;  %v480_v22 = vpop.trf.xlu0 }
 0x122   : > { %1026 = vmatmul.mubr.bf16.gmra.mrb[16].mxu0 %v468_v14  ;;  %762 = vmatprep.mubr.bf16.mxu1 %v2748_v8 }
 0x123   : > { %1035 = vmatprep.mubr.bf16.mxu0 %v2748_v8 }
 0x124   : > { %v561_v23 = vpop.trf.xlu1 }
 0x125   : > { %v481_v24 = vpop.trf.xlu0 }
 0x128   : > { %v562_v25 = vpop.trf.xlu1 }
 0x129   : > { %763 = vmatmul.mubr.bf16.gmra.mrb[20].mxu1 %v549_v15  ;;  %v482_v26 = vpop.trf.xlu0 }
 0x12a   : > { %1036 = vmatmul.mubr.bf16.gmra.mrb[20].mxu0 %v469_v16  ;;  %772 = vmatprep.mubr.bf16.mxu1 %v2748_v8 }
 0x12b   : > { %1045 = vmatprep.mubr.bf16.mxu0 %v2748_v8 }
 0x12c   : > { %v563_v27 = vpop.trf.xlu1 }
 0x12d   : > { %v483_v28 = vpop.trf.xlu0 }
 0x130   : > { %v564_v29 = vpop.trf.xlu1 }
 0x131   : > { %773 = vmatmul.mubr.bf16.gmra.mrb[24].mxu1 %v550_v17  ;;  %v484_v30 = vpop.trf.xlu0 }
 0x132   : > { %1046 = vmatmul.mubr.bf16.gmra.mrb[24].mxu0 %v470_v18  ;;  %782 = vmatprep.mubr.bf16.mxu1 %v2748_v8 }
 0x133   : > { %1055 = vmatprep.mubr.bf16.mxu0 %v2748_v8 }
 0x134   : > { %v565_v31 = vpop.trf.xlu1 }
 0x135   : > { %v485_v32 = vpop.trf.xlu0 }
 0x138   : > { %v566_v33 = vpop.trf.xlu1 }
 0x139   : > { %783 = vmatmul.mubr.bf16.gmra.mrb[28].mxu1 %v551_v19  ;;  %v486_v34 = vpop.trf.xlu0 }
 0x13a   : > { %1056 = vmatmul.mubr.bf16.gmra.mrb[28].mxu0 %v471_v20  ;;  %792 = vmatprep.mubr.bf16.mxu1 %v2748_v8 }
 0x13b   : > { %1065 = vmatprep.mubr.bf16.mxu0 %v2748_v8 }
 0x13c   : > { %v567_v35 = vpop.trf.xlu1 }
 0x13d   : > { %v487_v36 = vpop.trf.xlu0 }
 0x141   : > { %793 = vmatmul.mubr.bf16.gmra.mrb[32].mxu1 %v560_v21 }
 0x142   : > { %1066 = vmatmul.mubr.bf16.gmra.mrb[32].mxu0 %v480_v22  ;;  %802 = vmatprep.mubr.bf16.mxu1 %v2748_v8 }
 0x143   : > { %1075 = vmatprep.mubr.bf16.mxu0 %v2748_v8 }
 0x149   : > { %803 = vmatmul.mubr.bf16.gmra.mrb[36].mxu1 %v561_v23 }
 0x14a   : > { %1076 = vmatmul.mubr.bf16.gmra.mrb[36].mxu0 %v481_v24  ;;  %812 = vmatprep.mubr.bf16.mxu1 %v2748_v8 }
 0x14b   : > { %1085 = vmatprep.mubr.bf16.mxu0 %v2748_v8 }
 0x151   : > { %813 = vmatmul.mubr.bf16.gmra.mrb[40].mxu1 %v562_v25 }
 0x152   : > { %1086 = vmatmul.mubr.bf16.gmra.mrb[40].mxu0 %v482_v26  ;;  %822 = vmatprep.mubr.bf16.mxu1 %v2748_v8 }
 0x153   : > { %1095 = vmatprep.mubr.bf16.mxu0 %v2748_v8 }
 0x159   : > { %823 = vmatmul.mubr.bf16.gmra.mrb[44].mxu1 %v563_v27 }
 0x15a   : > { %1096 = vmatmul.mubr.bf16.gmra.mrb[44].mxu0 %v483_v28  ;;  %832 = vmatprep.mubr.bf16.mxu1 %v2748_v8  ;;  %v1218_v37 = vpop.permute.xlu1 %1217 }
 0x15b   : > { %1105 = vmatprep.mubr.bf16.mxu0 %v2748_v8 }
 0x15e   : > { %v1223_v54 = vpop.permute.xlu1 %1222 }
 0x160   : > { %v1213_v39 = vpop.permute.xlu0 %1212 }
 0x161   : > { %833 = vmatmul.mubr.bf16.gmra.mrb[48].mxu1 %v564_v29 }
 0x162   : > { %1106 = vmatmul.mubr.bf16.gmra.mrb[48].mxu0 %v484_v30  ;;  %842 = vmatprep.mubr.bf16.mxu1 %v2748_v8  ;;  %v1228_v14 = vpop.permute.xlu1 %1227 }
 0x163   : > { %1115 = vmatprep.mubr.bf16.mxu0 %v2748_v8 }
 0x169   : > { %843 = vmatmul.mubr.bf16.gmra.mrb[52].mxu1 %v565_v31 }
 0x16a   : > { %1116 = vmatmul.mubr.bf16.gmra.mrb[52].mxu0 %v485_v32  ;;  %852 = vmatprep.mubr.bf16.mxu1 %v2748_v8 }
 0x16b   : > { %1125 = vmatprep.mubr.bf16.mxu0 %v2748_v8 }
 0x171   : > { %853 = vmatmul.mubr.bf16.gmra.mrb[56].mxu1 %v566_v33  ;;  %v1233_v33 = vpop.permute.xlu0 %1232 }
 0x172   : > { %1126 = vmatmul.mubr.bf16.gmra.mrb[56].mxu0 %v486_v34  ;;  %862 = vmatprep.mubr.bf16.mxu1 %v2748_v8 }
 0x173   : > { %1135 = vmatprep.mubr.bf16.mxu0 %v2748_v8  ;;  %v1597_v8 = vld [vmem:[#allocation2] sm:$0x1] }
 0x174   : > { %v1598_v57 = vsel %vm1466_vm0, %v1597_v8, 0.0 }
 0x179   : > { %863 = vmatmul.mubr.bf16.gmra.mrb[60].mxu1 %v567_v35 }
 0x17a   : > { %1136 = vmatmul.mubr.bf16.gmra.mrb[60].mxu0 %v487_v36 }
 0x1d4   : > { %v714_v38 = vpop.f32.mrb[0].mxu1 }
 0x1d5   : > { %v987_v40 = vpop.f32.mrb[0].mxu0  ;;  %v716_v41 = vpop.f32.mrb[1].mxu1 }
 0x1d6   : > { %v988_v42 = vadd.f32 %v987_v40, %v714_v38  ;;  %v989_v43 = vpop.f32.mrb[1].mxu0  ;;  %v718_v44 = vpop.f32.mrb[2].mxu1 }
 0x1d7   : > { %v990_v45 = vadd.f32 %v989_v43, %v716_v41  ;;  %v991_v46 = vpop.f32.mrb[2].mxu0  ;;  %v720_v47 = vpop.f32.mrb[3].mxu1 }
 0x1d8   : > { %v992_v48 = vadd.f32 %v991_v46, %v718_v44  ;;  %v993_v49 = vpop.f32.mrb[3].mxu0  ;;  %v1370_v55 = vadd.f32 %v1213_v39, %v988_v42  ;;  %v1238_v38 = vpop.permute.xlu1 %1237 }
 0x1d9   : > { %v1371_v50 = vadd.f32 %v1213_v39, %v990_v45  ;;  %v994_v51 = vadd.f32 %v993_v49, %v720_v47 }
 0x1da   : > { %v1372_v62 = vadd.f32 %v1218_v37, %v992_v48 }
 0x1db   : > { %v1467_v52 = vrot.slane %v1371_v50, 7  ;;  %v1373_v53 = vadd.f32 %v1218_v37, %v994_v51 }
 0x1dc   : > { %v724_v56 = vpop.f32.mrb[4].mxu1 }
 0x1dd   : > { %v1563_v58 = vsel %vm1466_vm0, 0.0, %v1467_v52  ;;  %v1468_v59 = vrot.slane %v1373_v53, 7  ;;  %v997_v60 = vpop.f32.mrb[4].mxu0  ;;  %v726_v61 = vpop.f32.mrb[5].mxu1 }
 0x1de   : > { %v1564_v63 = vadd.f32 %v1563_v58, %v1370_v55  ;;  %v998_v0 = vadd.f32 %v997_v60, %v724_v56  ;;  %v999_v1 = vpop.f32.mrb[5].mxu0  ;;  %v728_v2 = vpop.f32.mrb[6].mxu1 }
 0x1df   : > { %v1469_v3 = vsel %vm1466_vm0, %v1467_v52, %v1468_v59  ;;  %v1000_v4 = vadd.f32 %v999_v1, %v726_v61  ;;  %v1001_v5 = vpop.f32.mrb[6].mxu0  ;;  %v730_v6 = vpop.f32.mrb[7].mxu1 }
 0x1e0   : > { %v1599_v7 = vadd.f32 %v1598_v57, %v1564_v63  ;;  %v1565_v9 = vadd.f32 %v1469_v3, %v1372_v62  ;;  %v1002_v10 = vadd.f32 %v1001_v5, %v728_v2  ;;  %v1003_v11 = vpop.f32.mrb[7].mxu0  ;;  %v1374_v17 = vadd.f32 %v1223_v54, %v998_v0  ;;  %v1243_v56 = vpop.permute.xlu0 %1242 }
 0x1e1   : > { %v1375_v12 = vadd.f32 %v1223_v54, %v1000_v4  ;;  %v1004_v13 = vadd.f32 %v1003_v11, %v730_v6  ;;  %v1248_v61 = vpop.permute.xlu1 %1247 }
 0x1e2   : > { %1632 = vst [vmem:[%s3024_s15] sm:$0xff] %v1599_v7  ;;  %1633 = vst [vmem:[%s3024_s15 + $0x8] sm:$0xff] %v1565_v9  ;;  %v1376_v24 = vadd.f32 %v1228_v14, %v1002_v10 }
 0x1e3   : > { %v1470_v15 = vrot.slane %v1375_v12, 7  ;;  %v1377_v16 = vadd.f32 %v1228_v14, %v1004_v13 }
 0x1e4   : > { %v734_v18 = vpop.f32.mrb[8].mxu1 }
 0x1e5   : > { %v1471_v19 = vsel %vm1466_vm0, %v1468_v59, %v1470_v15  ;;  %v1472_v20 = vrot.slane %v1377_v16, 7  ;;  %v1007_v21 = vpop.f32.mrb[8].mxu0  ;;  %v736_v22 = vpop.f32.mrb[9].mxu1 }
 0x1e6   : > { %v1566_v23 = vadd.f32 %v1471_v19, %v1374_v17  ;;  %v1008_v25 = vadd.f32 %v1007_v21, %v734_v18  ;;  %v1009_v26 = vpop.f32.mrb[9].mxu0  ;;  %v738_v27 = vpop.f32.mrb[10].mxu1 }
 0x1e7   : > { %v1473_v28 = vsel %vm1466_vm0, %v1470_v15, %v1472_v20  ;;  %v1010_v29 = vadd.f32 %v1009_v26, %v736_v22  ;;  %v1011_v30 = vpop.f32.mrb[10].mxu0  ;;  %v740_v31 = vpop.f32.mrb[11].mxu1 }
 0x1e8   : > { %1634 = vst [vmem:[%s3024_s15 + $0x10] sm:$0xff] %v1566_v23  ;;  %v1567_v32 = vadd.f32 %v1473_v28, %v1376_v24  ;;  %v1012_v34 = vadd.f32 %v1011_v30, %v738_v27  ;;  %v1013_v35 = vpop.f32.mrb[11].mxu0  ;;  %v1378_v41 = vadd.f32 %v1233_v33, %v1008_v25  ;;  %v1253_v16 = vpop.permute.xlu0 %1252 }
 0x1e9   : > { %v1379_v36 = vadd.f32 %v1233_v33, %v1010_v29  ;;  %v1014_v37 = vadd.f32 %v1013_v35, %v740_v31  ;;  %v1258_v22 = vpop.permute.xlu1 %1257 }
 0x1ea   : > { %1635 = vst [vmem:[%s3024_s15 + $0x18] sm:$0xff] %v1567_v32  ;;  %v1380_v48 = vadd.f32 %v1238_v38, %v1012_v34 }
 0x1eb   : > { %v1474_v39 = vrot.slane %v1379_v36, 7  ;;  %v1381_v40 = vadd.f32 %v1238_v38, %v1014_v37 }
 0x1ec   : > { %v744_v42 = vpop.f32.mrb[12].mxu1 }
 0x1ed   : > { %v1475_v43 = vsel %vm1466_vm0, %v1472_v20, %v1474_v39  ;;  %v1476_v44 = vrot.slane %v1381_v40, 7  ;;  %v1017_v45 = vpop.f32.mrb[12].mxu0  ;;  %v746_v46 = vpop.f32.mrb[13].mxu1 }
 0x1ee   : > { %v1568_v47 = vadd.f32 %v1475_v43, %v1378_v41  ;;  %v1018_v49 = vadd.f32 %v1017_v45, %v744_v42  ;;  %v1019_v50 = vpop.f32.mrb[13].mxu0  ;;  %v748_v51 = vpop.f32.mrb[14].mxu1 }
 0x1ef   : > { %v1477_v8 = vsel %vm1466_vm0, %v1474_v39, %v1476_v44  ;;  %v1020_v52 = vadd.f32 %v1019_v50, %v746_v46  ;;  %v1021_v53 = vpop.f32.mrb[14].mxu0  ;;  %v750_v54 = vpop.f32.mrb[15].mxu1 }
 0x1f0   : > { %1636 = vst [vmem:[%s3024_s15 + $0x20] sm:$0xff] %v1568_v47  ;;  %v1569_v55 = vadd.f32 %v1477_v8, %v1380_v48  ;;  %v1022_v57 = vadd.f32 %v1021_v53, %v748_v51  ;;  %v1023_v58 = vpop.f32.mrb[15].mxu0  ;;  %v1382_v0 = vadd.f32 %v1243_v56, %v1018_v49  ;;  %v1263_v40 = vpop.permute.xlu0 %1262 }
 0x1f1   : > { %v1383_v59 = vadd.f32 %v1243_v56, %v1020_v52  ;;  %v1024_v60 = vadd.f32 %v1023_v58, %v750_v54  ;;  %v1268_v46 = vpop.permute.xlu1 %1267 }
 0x1f2   : > { %1637 = vst [vmem:[%s3024_s15 + $0x28] sm:$0xff] %v1569_v55  ;;  %v1384_v7 = vadd.f32 %v1248_v61, %v1022_v57 }
 0x1f3   : > { %v1478_v62 = vrot.slane %v1383_v59, 7  ;;  %v1385_v63 = vadd.f32 %v1248_v61, %v1024_v60 }
 0x1f4   : > { %v754_v1 = vpop.f32.mrb[16].mxu1 }
 0x1f5   : > { %v1479_v2 = vsel %vm1466_vm0, %v1476_v44, %v1478_v62  ;;  %v1480_v3 = vrot.slane %v1385_v63, 7  ;;  %v1027_v4 = vpop.f32.mrb[16].mxu0  ;;  %v756_v5 = vpop.f32.mrb[17].mxu1 }
 0x1f6   : > { %v1570_v6 = vadd.f32 %v1479_v2, %v1382_v0  ;;  %v1028_v9 = vadd.f32 %v1027_v4, %v754_v1  ;;  %v1029_v10 = vpop.f32.mrb[17].mxu0  ;;  %v758_v11 = vpop.f32.mrb[18].mxu1 }
 0x1f7   : > { %v1481_v12 = vsel %vm1466_vm0, %v1478_v62, %v1480_v3  ;;  %v1030_v13 = vadd.f32 %v1029_v10, %v756_v5  ;;  %v1031_v14 = vpop.f32.mrb[18].mxu0  ;;  %v760_v15 = vpop.f32.mrb[19].mxu1 }
 0x1f8   : > { %1638 = vst [vmem:[%s3024_s15 + $0x30] sm:$0xff] %v1570_v6  ;;  %v1571_v17 = vadd.f32 %v1481_v12, %v1384_v7  ;;  %v1032_v18 = vadd.f32 %v1031_v14, %v758_v11  ;;  %v1033_v19 = vpop.f32.mrb[19].mxu0  ;;  %v1386_v25 = vadd.f32 %v1253_v16, %v1028_v9  ;;  %v1273_v63 = vpop.permute.xlu0 %1272 }
 0x1f9   : > { %v1387_v20 = vadd.f32 %v1253_v16, %v1030_v13  ;;  %v1034_v21 = vadd.f32 %v1033_v19, %v760_v15  ;;  %v1278_v5 = vpop.permute.xlu1 %1277 }
 0x1fa   : > { %1639 = vst [vmem:[%s3024_s15 + $0x38] sm:$0xff] %v1571_v17  ;;  %v1388_v32 = vadd.f32 %v1258_v22, %v1032_v18 }
 0x1fb   : > { %v1482_v23 = vrot.slane %v1387_v20, 7  ;;  %v1389_v24 = vadd.f32 %v1258_v22, %v1034_v21 }
 0x1fc   : > { %v764_v26 = vpop.f32.mrb[20].mxu1 }
 0x1fd   : > { %v1483_v27 = vsel %vm1466_vm0, %v1480_v3, %v1482_v23  ;;  %v1484_v28 = vrot.slane %v1389_v24, 7  ;;  %v1037_v29 = vpop.f32.mrb[20].mxu0  ;;  %v766_v30 = vpop.f32.mrb[21].mxu1 }
 0x1fe   : > { %v1572_v31 = vadd.f32 %v1483_v27, %v1386_v25  ;;  %v1038_v33 = vadd.f32 %v1037_v29, %v764_v26  ;;  %v1039_v34 = vpop.f32.mrb[21].mxu0  ;;  %v768_v35 = vpop.f32.mrb[22].mxu1 }
 0x1ff   : > { %v1485_v36 = vsel %vm1466_vm0, %v1482_v23, %v1484_v28  ;;  %v1040_v37 = vadd.f32 %v1039_v34, %v766_v30  ;;  %v1041_v38 = vpop.f32.mrb[22].mxu0  ;;  %v770_v39 = vpop.f32.mrb[23].mxu1 }
 0x200   : > { %1640 = vst [vmem:[%s3024_s15 + $0x40] sm:$0xff] %v1572_v31  ;;  %v1573_v41 = vadd.f32 %v1485_v36, %v1388_v32  ;;  %v1042_v42 = vadd.f32 %v1041_v38, %v768_v35  ;;  %v1043_v43 = vpop.f32.mrb[23].mxu0  ;;  %v1390_v49 = vadd.f32 %v1263_v40, %v1038_v33  ;;  %v1283_v24 = vpop.permute.xlu0 %1282 }
 0x201   : > { %v1391_v44 = vadd.f32 %v1263_v40, %v1040_v37  ;;  %v1044_v45 = vadd.f32 %v1043_v43, %v770_v39  ;;  %v1288_v30 = vpop.permute.xlu1 %1287 }
 0x202   : > { %1641 = vst [vmem:[%s3024_s15 + $0x48] sm:$0xff] %v1573_v41  ;;  %v1392_v55 = vadd.f32 %v1268_v46, %v1042_v42 }
 0x203   : > { %v1486_v47 = vrot.slane %v1391_v44, 7  ;;  %v1393_v48 = vadd.f32 %v1268_v46, %v1044_v45 }
 0x204   : > { %v774_v50 = vpop.f32.mrb[24].mxu1 }
 0x205   : > { %v1487_v51 = vsel %vm1466_vm0, %v1484_v28, %v1486_v47  ;;  %v1488_v8 = vrot.slane %v1393_v48, 7  ;;  %v1047_v52 = vpop.f32.mrb[24].mxu0  ;;  %v776_v53 = vpop.f32.mrb[25].mxu1 }
 0x206   : > { %v1574_v54 = vadd.f32 %v1487_v51, %v1390_v49  ;;  %v1048_v56 = vadd.f32 %v1047_v52, %v774_v50  ;;  %v1049_v57 = vpop.f32.mrb[25].mxu0  ;;  %v778_v58 = vpop.f32.mrb[26].mxu1 }
 0x207   : > { %v1489_v59 = vsel %vm1466_vm0, %v1486_v47, %v1488_v8  ;;  %v1050_v60 = vadd.f32 %v1049_v57, %v776_v53  ;;  %v1051_v61 = vpop.f32.mrb[26].mxu0  ;;  %v780_v62 = vpop.f32.mrb[27].mxu1 }
 0x208   : > { %1642 = vst [vmem:[%s3024_s15 + $0x50] sm:$0xff] %v1574_v54  ;;  %v1575_v0 = vadd.f32 %v1489_v59, %v1392_v55  ;;  %v1052_v1 = vadd.f32 %v1051_v61, %v778_v58  ;;  %v1053_v2 = vpop.f32.mrb[27].mxu0  ;;  %v1394_v9 = vadd.f32 %v1273_v63, %v1048_v56  ;;  %v1293_v48 = vpop.permute.xlu0 %1292 }
 0x209   : > { %v1395_v3 = vadd.f32 %v1273_v63, %v1050_v60  ;;  %v1054_v4 = vadd.f32 %v1053_v2, %v780_v62  ;;  %v1298_v53 = vpop.permute.xlu1 %1297 }
 0x20a   : > { %1643 = vst [vmem:[%s3024_s15 + $0x58] sm:$0xff] %v1575_v0  ;;  %v1396_v16 = vadd.f32 %v1278_v5, %v1052_v1 }
 0x20b   : > { %v1490_v6 = vrot.slane %v1395_v3, 7  ;;  %v1397_v7 = vadd.f32 %v1278_v5, %v1054_v4 }
 0x20c   : > { %v784_v10 = vpop.f32.mrb[28].mxu1 }
 0x20d   : > { %v1491_v11 = vsel %vm1466_vm0, %v1488_v8, %v1490_v6  ;;  %v1492_v12 = vrot.slane %v1397_v7, 7  ;;  %v1057_v13 = vpop.f32.mrb[28].mxu0  ;;  %v786_v14 = vpop.f32.mrb[29].mxu1 }
 0x20e   : > { %v1576_v15 = vadd.f32 %v1491_v11, %v1394_v9  ;;  %v1058_v17 = vadd.f32 %v1057_v13, %v784_v10  ;;  %v1059_v18 = vpop.f32.mrb[29].mxu0  ;;  %v788_v19 = vpop.f32.mrb[30].mxu1 }
 0x20f   : > { %v1493_v20 = vsel %vm1466_vm0, %v1490_v6, %v1492_v12  ;;  %v1060_v21 = vadd.f32 %v1059_v18, %v786_v14  ;;  %v1061_v22 = vpop.f32.mrb[30].mxu0  ;;  %v790_v23 = vpop.f32.mrb[31].mxu1 }
 0x210   : > { %1644 = vst [vmem:[%s3024_s15 + $0x60] sm:$0xff] %v1576_v15  ;;  %v1577_v25 = vadd.f32 %v1493_v20, %v1396_v16  ;;  %v1062_v26 = vadd.f32 %v1061_v22, %v788_v19  ;;  %v1063_v27 = vpop.f32.mrb[31].mxu0  ;;  %v1398_v33 = vadd.f32 %v1283_v24, %v1058_v17  ;;  %v1303_v7 = vpop.permute.xlu0 %1302 }
 0x211   : > { %v1399_v28 = vadd.f32 %v1283_v24, %v1060_v21  ;;  %v1064_v29 = vadd.f32 %v1063_v27, %v790_v23  ;;  %v1308_v14 = vpop.permute.xlu1 %1307 }
 0x212   : > { %1645 = vst [vmem:[%s3024_s15 + $0x68] sm:$0xff] %v1577_v25  ;;  %v1400_v40 = vadd.f32 %v1288_v30, %v1062_v26 }
 0x213   : > { %v1494_v31 = vrot.slane %v1399_v28, 7  ;;  %v1401_v32 = vadd.f32 %v1288_v30, %v1064_v29 }
 0x214   : > { %v794_v34 = vpop.f32.mrb[32].mxu1 }
 0x215   : > { %v1495_v35 = vsel %vm1466_vm0, %v1492_v12, %v1494_v31  ;;  %v1496_v36 = vrot.slane %v1401_v32, 7  ;;  %v1067_v37 = vpop.f32.mrb[32].mxu0  ;;  %v796_v38 = vpop.f32.mrb[33].mxu1 }
 0x216   : > { %v1578_v39 = vadd.f32 %v1495_v35, %v1398_v33  ;;  %v1068_v41 = vadd.f32 %v1067_v37, %v794_v34  ;;  %v1069_v42 = vpop.f32.mrb[33].mxu0  ;;  %v798_v43 = vpop.f32.mrb[34].mxu1 }
 0x217   : > { %v1497_v44 = vsel %vm1466_vm0, %v1494_v31, %v1496_v36  ;;  %v1070_v45 = vadd.f32 %v1069_v42, %v796_v38  ;;  %v1071_v46 = vpop.f32.mrb[34].mxu0  ;;  %v800_v47 = vpop.f32.mrb[35].mxu1 }
 0x218   : > { %1646 = vst [vmem:[%s3024_s15 + $0x70] sm:$0xff] %v1578_v39  ;;  %v1579_v49 = vadd.f32 %v1497_v44, %v1400_v40  ;;  %v1072_v50 = vadd.f32 %v1071_v46, %v798_v43  ;;  %v1073_v51 = vpop.f32.mrb[35].mxu0  ;;  %v1402_v56 = vadd.f32 %v1293_v48, %v1068_v41  ;;  %v1313_v32 = vpop.permute.xlu0 %1312 }
 0x219   : > { %v1403_v8 = vadd.f32 %v1293_v48, %v1070_v45  ;;  %v1074_v52 = vadd.f32 %v1073_v51, %v800_v47  ;;  %v1318_v38 = vpop.permute.xlu1 %1317 }
 0x21a   : > { %1647 = vst [vmem:[%s3024_s15 + $0x78] sm:$0xff] %v1579_v49  ;;  %v1404_v63 = vadd.f32 %v1298_v53, %v1072_v50 }
 0x21b   : > { %v1498_v54 = vrot.slane %v1403_v8, 7  ;;  %v1405_v55 = vadd.f32 %v1298_v53, %v1074_v52 }
 0x21c   : > { %v804_v57 = vpop.f32.mrb[36].mxu1 }
 0x21d   : > { %v1499_v58 = vsel %vm1466_vm0, %v1496_v36, %v1498_v54  ;;  %v1500_v59 = vrot.slane %v1405_v55, 7  ;;  %v1077_v60 = vpop.f32.mrb[36].mxu0  ;;  %v806_v61 = vpop.f32.mrb[37].mxu1 }
 0x21e   : > { %v1580_v62 = vadd.f32 %v1499_v58, %v1402_v56  ;;  %v1078_v0 = vadd.f32 %v1077_v60, %v804_v57  ;;  %v1079_v1 = vpop.f32.mrb[37].mxu0  ;;  %v808_v2 = vpop.f32.mrb[38].mxu1 }
 0x21f   : > { %v1501_v3 = vsel %vm1466_vm0, %v1498_v54, %v1500_v59  ;;  %v1080_v4 = vadd.f32 %v1079_v1, %v806_v61  ;;  %v1081_v5 = vpop.f32.mrb[38].mxu0  ;;  %v810_v6 = vpop.f32.mrb[39].mxu1 }
 0x220   : > { %1648 = vst [vmem:[%s3024_s15 + $0x80] sm:$0xff] %v1580_v62  ;;  %v1581_v9 = vadd.f32 %v1501_v3, %v1404_v63  ;;  %v1082_v10 = vadd.f32 %v1081_v5, %v808_v2  ;;  %v1083_v11 = vpop.f32.mrb[39].mxu0  ;;  %v1406_v17 = vadd.f32 %v1303_v7, %v1078_v0  ;;  %v1323_v55 = vpop.permute.xlu0 %1322 }
 0x221   : > { %v1407_v12 = vadd.f32 %v1303_v7, %v1080_v4  ;;  %v1084_v13 = vadd.f32 %v1083_v11, %v810_v6  ;;  %v1328_v61 = vpop.permute.xlu1 %1327 }
 0x222   : > { %1649 = vst [vmem:[%s3024_s15 + $0x88] sm:$0xff] %v1581_v9  ;;  %v1408_v24 = vadd.f32 %v1308_v14, %v1082_v10 }
 0x223   : > { %v1502_v15 = vrot.slane %v1407_v12, 7  ;;  %v1409_v16 = vadd.f32 %v1308_v14, %v1084_v13 }
 0x224   : > { %v814_v18 = vpop.f32.mrb[40].mxu1 }
 0x225   : > { %v1503_v19 = vsel %vm1466_vm0, %v1500_v59, %v1502_v15  ;;  %v1504_v20 = vrot.slane %v1409_v16, 7  ;;  %v1087_v21 = vpop.f32.mrb[40].mxu0  ;;  %v816_v22 = vpop.f32.mrb[41].mxu1 }
 0x226   : > { %v1582_v23 = vadd.f32 %v1503_v19, %v1406_v17  ;;  %v1088_v25 = vadd.f32 %v1087_v21, %v814_v18  ;;  %v1089_v26 = vpop.f32.mrb[41].mxu0  ;;  %v818_v27 = vpop.f32.mrb[42].mxu1 }
 0x227   : > { %v1505_v28 = vsel %vm1466_vm0, %v1502_v15, %v1504_v20  ;;  %v1090_v29 = vadd.f32 %v1089_v26, %v816_v22  ;;  %v1091_v30 = vpop.f32.mrb[42].mxu0  ;;  %v820_v31 = vpop.f32.mrb[43].mxu1 }
 0x228   : > { %1650 = vst [vmem:[%s3024_s15 + $0x90] sm:$0xff] %v1582_v23  ;;  %v1583_v33 = vadd.f32 %v1505_v28, %v1408_v24  ;;  %v1092_v34 = vadd.f32 %v1091_v30, %v818_v27  ;;  %v1093_v35 = vpop.f32.mrb[43].mxu0  ;;  %v1410_v41 = vadd.f32 %v1313_v32, %v1088_v25  ;;  %v1333_v16 = vpop.permute.xlu0 %1332 }
 0x229   : > { %v1411_v36 = vadd.f32 %v1313_v32, %v1090_v29  ;;  %v1094_v37 = vadd.f32 %v1093_v35, %v820_v31  ;;  %v1338_v22 = vpop.permute.xlu1 %1337 }
 0x22a   : > { %1651 = vst [vmem:[%s3024_s15 + $0x98] sm:$0xff] %v1583_v33  ;;  %v1412_v48 = vadd.f32 %v1318_v38, %v1092_v34 }
 0x22b   : > { %v1506_v39 = vrot.slane %v1411_v36, 7  ;;  %v1413_v40 = vadd.f32 %v1318_v38, %v1094_v37 }
 0x22c   : > { %v824_v42 = vpop.f32.mrb[44].mxu1 }
 0x22d   : > { %v1507_v43 = vsel %vm1466_vm0, %v1504_v20, %v1506_v39  ;;  %v1508_v44 = vrot.slane %v1413_v40, 7  ;;  %v1097_v45 = vpop.f32.mrb[44].mxu0  ;;  %v826_v46 = vpop.f32.mrb[45].mxu1 }
 0x22e   : > { %v1584_v47 = vadd.f32 %v1507_v43, %v1410_v41  ;;  %v1098_v49 = vadd.f32 %v1097_v45, %v824_v42  ;;  %v1099_v50 = vpop.f32.mrb[45].mxu0  ;;  %v828_v51 = vpop.f32.mrb[46].mxu1 }
 0x22f   : > { %v1509_v8 = vsel %vm1466_vm0, %v1506_v39, %v1508_v44  ;;  %v1100_v52 = vadd.f32 %v1099_v50, %v826_v46  ;;  %v1101_v53 = vpop.f32.mrb[46].mxu0  ;;  %v830_v54 = vpop.f32.mrb[47].mxu1 }
 0x230   : > { %1652 = vst [vmem:[%s3024_s15 + $0xa0] sm:$0xff] %v1584_v47  ;;  %v1585_v56 = vadd.f32 %v1509_v8, %v1412_v48  ;;  %v1102_v57 = vadd.f32 %v1101_v53, %v828_v51  ;;  %v1103_v58 = vpop.f32.mrb[47].mxu0  ;;  %v1414_v0 = vadd.f32 %v1323_v55, %v1098_v49  ;;  %v1343_v40 = vpop.permute.xlu0 %1342 }
 0x231   : > { %v1415_v59 = vadd.f32 %v1323_v55, %v1100_v52  ;;  %v1104_v60 = vadd.f32 %v1103_v58, %v830_v54  ;;  %v1348_v46 = vpop.permute.xlu1 %1347 }
 0x232   : > { %1653 = vst [vmem:[%s3024_s15 + $0xa8] sm:$0xff] %v1585_v56  ;;  %v1416_v7 = vadd.f32 %v1328_v61, %v1102_v57 }
 0x233   : > { %v1510_v62 = vrot.slane %v1415_v59, 7  ;;  %v1417_v63 = vadd.f32 %v1328_v61, %v1104_v60 }
 0x234   : > { %v834_v1 = vpop.f32.mrb[48].mxu1 }
 0x235   : > { %v1511_v2 = vsel %vm1466_vm0, %v1508_v44, %v1510_v62  ;;  %v1512_v3 = vrot.slane %v1417_v63, 7  ;;  %v1107_v4 = vpop.f32.mrb[48].mxu0  ;;  %v836_v5 = vpop.f32.mrb[49].mxu1 }
 0x236   : > { %v1586_v6 = vadd.f32 %v1511_v2, %v1414_v0  ;;  %v1108_v9 = vadd.f32 %v1107_v4, %v834_v1  ;;  %v1109_v10 = vpop.f32.mrb[49].mxu0  ;;  %v838_v11 = vpop.f32.mrb[50].mxu1 }
 0x237   : > { %v1513_v12 = vsel %vm1466_vm0, %v1510_v62, %v1512_v3  ;;  %v1110_v13 = vadd.f32 %v1109_v10, %v836_v5  ;;  %v1111_v14 = vpop.f32.mrb[50].mxu0  ;;  %v840_v15 = vpop.f32.mrb[51].mxu1 }
 0x238   : > { %1654 = vst [vmem:[%s3024_s15 + $0xb0] sm:$0xff] %v1586_v6  ;;  %v1587_v17 = vadd.f32 %v1513_v12, %v1416_v7  ;;  %v1112_v18 = vadd.f32 %v1111_v14, %v838_v11  ;;  %v1113_v19 = vpop.f32.mrb[51].mxu0  ;;  %v1418_v25 = vadd.f32 %v1333_v16, %v1108_v9  ;;  %v1353_v63 = vpop.permute.xlu0 %1352 }
 0x239   : > { %v1419_v20 = vadd.f32 %v1333_v16, %v1110_v13  ;;  %v1114_v21 = vadd.f32 %v1113_v19, %v840_v15  ;;  %v1358_v5 = vpop.permute.xlu1 %1357 }
 0x23a   : > { %1655 = vst [vmem:[%s3024_s15 + $0xb8] sm:$0xff] %v1587_v17  ;;  %v1420_v32 = vadd.f32 %v1338_v22, %v1112_v18 }
 0x23b   : > { %v1514_v23 = vrot.slane %v1419_v20, 7  ;;  %v1421_v24 = vadd.f32 %v1338_v22, %v1114_v21 }
 0x23c   : > { %v844_v26 = vpop.f32.mrb[52].mxu1 }
 0x23d   : > { %v1515_v27 = vsel %vm1466_vm0, %v1512_v3, %v1514_v23  ;;  %v1516_v28 = vrot.slane %v1421_v24, 7  ;;  %v1117_v29 = vpop.f32.mrb[52].mxu0  ;;  %v846_v30 = vpop.f32.mrb[53].mxu1 }
 0x23e   : > { %v1588_v31 = vadd.f32 %v1515_v27, %v1418_v25  ;;  %v1118_v33 = vadd.f32 %v1117_v29, %v844_v26  ;;  %v1119_v34 = vpop.f32.mrb[53].mxu0  ;;  %v848_v35 = vpop.f32.mrb[54].mxu1 }
 0x23f   : > { %v1517_v36 = vsel %vm1466_vm0, %v1514_v23, %v1516_v28  ;;  %v1120_v37 = vadd.f32 %v1119_v34, %v846_v30  ;;  %v1121_v38 = vpop.f32.mrb[54].mxu0  ;;  %v850_v39 = vpop.f32.mrb[55].mxu1 }
 0x240   : > { %1656 = vst [vmem:[%s3024_s15 + $0xc0] sm:$0xff] %v1588_v31  ;;  %v1589_v41 = vadd.f32 %v1517_v36, %v1420_v32  ;;  %v1122_v42 = vadd.f32 %v1121_v38, %v848_v35  ;;  %v1123_v43 = vpop.f32.mrb[55].mxu0  ;;  %v1422_v49 = vadd.f32 %v1343_v40, %v1118_v33  ;;  %v1363_v24 = vpop.permute.xlu0 %1362 }
 0x241   : > { %v1423_v44 = vadd.f32 %v1343_v40, %v1120_v37  ;;  %v1124_v45 = vadd.f32 %v1123_v43, %v850_v39  ;;  %v1368_v30 = vpop.permute.xlu1 %1367 }
 0x242   : > { %1657 = vst [vmem:[%s3024_s15 + $0xc8] sm:$0xff] %v1589_v41  ;;  %v1424_v55 = vadd.f32 %v1348_v46, %v1122_v42 }
 0x243   : > { %v1518_v47 = vrot.slane %v1423_v44, 7  ;;  %v1425_v48 = vadd.f32 %v1348_v46, %v1124_v45 }
 0x244   : > { %v854_v50 = vpop.f32.mrb[56].mxu1 }
 0x245   : > { %v1519_v51 = vsel %vm1466_vm0, %v1516_v28, %v1518_v47  ;;  %v1520_v8 = vrot.slane %v1425_v48, 7  ;;  %v1127_v52 = vpop.f32.mrb[56].mxu0  ;;  %v856_v53 = vpop.f32.mrb[57].mxu1 }
 0x246   : > { %v1590_v54 = vadd.f32 %v1519_v51, %v1422_v49  ;;  %v1128_v56 = vadd.f32 %v1127_v52, %v854_v50  ;;  %v1129_v57 = vpop.f32.mrb[57].mxu0  ;;  %v858_v58 = vpop.f32.mrb[58].mxu1 }
 0x247   : > { %v1521_v59 = vsel %vm1466_vm0, %v1518_v47, %v1520_v8  ;;  %v1130_v60 = vadd.f32 %v1129_v57, %v856_v53  ;;  %v1131_v61 = vpop.f32.mrb[58].mxu0  ;;  %v860_v62 = vpop.f32.mrb[59].mxu1 }
 0x248   : > { %1658 = vst [vmem:[%s3024_s15 + $0xd0] sm:$0xff] %v1590_v54  ;;  %v1591_v0 = vadd.f32 %v1521_v59, %v1424_v55  ;;  %v1132_v1 = vadd.f32 %v1131_v61, %v858_v58  ;;  %v1133_v2 = vpop.f32.mrb[59].mxu0  ;;  %v1426_v9 = vadd.f32 %v1353_v63, %v1128_v56 }
 0x249   : > { %v1427_v3 = vadd.f32 %v1353_v63, %v1130_v60  ;;  %v1134_v4 = vadd.f32 %v1133_v2, %v860_v62 }
 0x24a   : > { %1659 = vst [vmem:[%s3024_s15 + $0xd8] sm:$0xff] %v1591_v0  ;;  %v1428_v16 = vadd.f32 %v1358_v5, %v1132_v1 }
 0x24b   : > { %v1522_v6 = vrot.slane %v1427_v3, 7  ;;  %v1429_v7 = vadd.f32 %v1358_v5, %v1134_v4 }
 0x24c   : > { %v864_v10 = vpop.f32.mrb[60].mxu1 }
 0x24d   : > { %v1523_v11 = vsel %vm1466_vm0, %v1520_v8, %v1522_v6  ;;  %v1524_v12 = vrot.slane %v1429_v7, 7  ;;  %v1137_v13 = vpop.f32.mrb[60].mxu0  ;;  %v866_v14 = vpop.f32.mrb[61].mxu1 }
 0x24e   : > { %v1592_v15 = vadd.f32 %v1523_v11, %v1426_v9  ;;  %v1138_v17 = vadd.f32 %v1137_v13, %v864_v10  ;;  %v1139_v18 = vpop.f32.mrb[61].mxu0  ;;  %v868_v19 = vpop.f32.mrb[62].mxu1 }
 0x24f   : > { %v1525_v20 = vsel %vm1466_vm0, %v1522_v6, %v1524_v12  ;;  %v1140_v21 = vadd.f32 %v1139_v18, %v866_v14  ;;  %v1141_v22 = vpop.f32.mrb[62].mxu0  ;;  %v870_v23 = vpop.f32.mrb[63].mxu1 }
 0x250   : > { %1660 = vst [vmem:[%s3024_s15 + $0xe0] sm:$0xff] %v1592_v15  ;;  %v1593_v25 = vadd.f32 %v1525_v20, %v1428_v16  ;;  %v1142_v26 = vadd.f32 %v1141_v22, %v868_v19  ;;  %v1143_v27 = vpop.f32.mrb[63].mxu0  ;;  %v1430_v33 = vadd.f32 %v1363_v24, %v1138_v17 }
 0x251   : > { %v1431_v28 = vadd.f32 %v1363_v24, %v1140_v21  ;;  %v1144_v29 = vadd.f32 %v1143_v27, %v870_v23 }
 0x252   : > { %1661 = vst [vmem:[%s3024_s15 + $0xe8] sm:$0xff] %v1593_v25  ;;  %v1432_v37 = vadd.f32 %v1368_v30, %v1142_v26 }
 0x253   : > { %v1526_v31 = vrot.slane %v1431_v28, 7  ;;  %v1433_v32 = vadd.f32 %v1368_v30, %v1144_v29 }
 0x255   : > { %v1527_v34 = vsel %vm1466_vm0, %v1524_v12, %v1526_v31  ;;  %v1528_v35 = vrot.slane %v1433_v32, 7 }
 0x256   : > { %v1594_v36 = vadd.f32 %v1527_v34, %v1430_v33 }
 0x257   : > { %v1529_v38 = vsel %vm1466_vm0, %v1526_v31, %v1528_v35  ;;  %1664 = vst [vmem:[#allocation2] sm:$0x1] %v1528_v35 }
 0x258   : > { %1662 = vst [vmem:[%s3024_s15 + $0xf0] sm:$0xff] %v1594_v36  ;;  %v1595_v39 = vadd.f32 %v1529_v38, %v1432_v37 }
 0x25a   : > { %1663 = vst [vmem:[%s3024_s15 + $0xf8] sm:$0xff] %v1595_v39 }
 0x25b PF: > { %p2183_p2 = scmp.ne.s32.totalorder %s2690_s23, 1 }
 0x25c   : > { %vm1670_vm1 = vcmask (!%p2183_p2), 1040384   ;;  %v2749_v42 = vmov (!%p2183_p2), 0.0  }
 0x25d   : > { %1668 = sbr.rel (%p2183_p2) target bundleno = 621 (0x26d), region = 64  ;;  %1673 = vst [vmem:[%s3024_s15 + $0x8] sm:$0xff] (!%p2183_p2), %v2749_v42  ;;  %1674 = vst [vmem:[%s3024_s15 + $0x10] sm:$0xff] (!%p2183_p2), %v2749_v42 }
 0x25e   : > { %v1669_v40 = vld [vmem:[#allocation2] sm:$0x1] (!%p2183_p2)  ;;  %1675 = vst [vmem:[%s3024_s15 + $0x18] sm:$0xff] (!%p2183_p2), %v2749_v42  ;;  %1676 = vst [vmem:[%s3024_s15 + $0x20] sm:$0xff] (!%p2183_p2), %v2749_v42 }
 0x25f   : > { %v1671_v41 = vsel (!%p2183_p2), %vm1670_vm1, %v1669_v40, 0.0  ;;  %1677 = vst [vmem:[%s3024_s15 + $0x28] sm:$0xff] (!%p2183_p2), %v2749_v42  ;;  %1678 = vst [vmem:[%s3024_s15 + $0x30] sm:$0xff] (!%p2183_p2), %v2749_v42 }
 0x260   : > { %1679 = vst [vmem:[%s3024_s15 + $0x38] sm:$0xff] (!%p2183_p2), %v2749_v42  ;;  %1680 = vst [vmem:[%s3024_s15 + $0x40] sm:$0xff] (!%p2183_p2), %v2749_v42 }
 0x261   : > { %1681 = vst [vmem:[%s3024_s15 + $0x48] sm:$0xff] (!%p2183_p2), %v2749_v42  ;;  %1682 = vst [vmem:[%s3024_s15 + $0x50] sm:$0xff] (!%p2183_p2), %v2749_v42 }
 0x262   : > { %1683 = vst [vmem:[%s3024_s15 + $0x58] sm:$0xff] (!%p2183_p2), %v2749_v42  ;;  %1684 = vst [vmem:[%s3024_s15 + $0x60] sm:$0xff] (!%p2183_p2), %v2749_v42 }
 0x263   : > { %1685 = vst [vmem:[%s3024_s15 + $0x68] sm:$0xff] (!%p2183_p2), %v2749_v42  ;;  %1686 = vst [vmem:[%s3024_s15 + $0x70] sm:$0xff] (!%p2183_p2), %v2749_v42 }
 0x264   : > { %1687 = vst [vmem:[%s3024_s15 + $0x78] sm:$0xff] %v2749_v42  ;;  %1688 = vst [vmem:[%s3024_s15 + $0x80] sm:$0xff] %v2749_v42 }
 0x265   : > { %1689 = vst [vmem:[%s3024_s15 + $0x88] sm:$0xff] %v2749_v42  ;;  %1690 = vst [vmem:[%s3024_s15 + $0x90] sm:$0xff] %v2749_v42 }
 0x266   : > { %1691 = vst [vmem:[%s3024_s15 + $0x98] sm:$0xff] %v2749_v42  ;;  %1692 = vst [vmem:[%s3024_s15 + $0xa0] sm:$0xff] %v2749_v42 }
 0x267   : > { %1693 = vst [vmem:[%s3024_s15 + $0xa8] sm:$0xff] %v2749_v42  ;;  %1694 = vst [vmem:[%s3024_s15 + $0xb0] sm:$0xff] %v2749_v42 }
 0x268   : > { %1695 = vst [vmem:[%s3024_s15 + $0xb8] sm:$0xff] %v2749_v42  ;;  %1696 = vst [vmem:[%s3024_s15 + $0xc0] sm:$0xff] %v2749_v42 }
 0x269   : > { %1697 = vst [vmem:[%s3024_s15 + $0xc8] sm:$0xff] %v2749_v42  ;;  %1698 = vst [vmem:[%s3024_s15 + $0xd0] sm:$0xff] %v2749_v42 }
 0x26a   : > { %1699 = vst [vmem:[%s3024_s15 + $0xd8] sm:$0xff] %v2749_v42  ;;  %1700 = vst [vmem:[%s3024_s15 + $0xe0] sm:$0xff] %v2749_v42 }
 0x26b   : > { %1701 = vst [vmem:[%s3024_s15 + $0xe8] sm:$0xff] %v2749_v42  ;;  %1702 = vst [vmem:[%s3024_s15 + $0xf0] sm:$0xff] %v2749_v42 }
 0x26c   : > { %1703 = vst [vmem:[%s3024_s15 + $0xf8] sm:$0xff] %v2749_v42  ;;  %1672 = vst [vmem:[%s3024_s15] sm:$0xff] %v1671_v41 }
 0x26d PF: > { %s3449_s17 = sld [smem:[#allocation12_spill]] }
 0x273   : > { %p3450_p4 = scmp.ne.s32.totalorder %s3449_s17, 0 }
 0x274   : > { %s2185_s29 = sshll.u32 (%p3450_p4), %s2690_s23, 5  ;;  %s2267_s28 = smul.u32 (%p3450_p4), 33, %s2694_s24 }
 0x275   : > { %1710 = sbr.rel (!%p3450_p4) target bundleno = 692 (0x2b4), region = 68  ;;  %s1712_s1 = ssub.s32 (%p3450_p4), 33, %s2185_s29 }
 0x276   : > { %p1713_p10 = scmp.lt.s32.totalorder (%p3450_p4), %s1712_s1, 32  ;;  %s1718_s0 = sadd.s32 (%p3450_p4), %s2267_s28, %s2185_s29 }
 0x277   : > { %s2188_s16 = sshll.u32 (%p3450_p4), %s1718_s0, 3  ;;  %s3451_s6 = sld [smem:[#allocation18_spill]] (%p3450_p4) }
 0x27c   : > { %s3479_s1 = smov (!%p1713_p10, %s1712_s1), 32 }
 0x27d   : > { %s3265_s10 = scalar_lea.vmem %s3451_s6, %s2188_s16   ;;  %s2186_s14 = sshll.u32 %s3479_s1, 7 }
 0x27e   : > { %p2189_p9 = scmp.eq.s32.totalorder %s2186_s14, 0 }
 0x27f   : > { %s3269_s4 = sshrl.u32 (!%p2189_p9), %s3479_s1, 5 }
 0x280   : > { %1723 = sbr.rel (%p2189_p9) target bundleno = 692 (0x2b4), region = 72  ;;  %p2190_p13 = scmp.le.s32.totalorder (!%p2189_p9), %s3269_s4, 0 }
 0x287   : > { %2040 = sbr.rel (%p2190_p13) target bundleno = 671 (0x29f), region = 159  ;;  %s3452_s23 = smov (!%p2190_p13), %s3265_s10 }
 0x288   : > { %s3453_s24 = smov (!%p2190_p13), %s3024_s15  ;;  %s3278_s20 = smov (!%p2190_p13), 0  }
 0x289   : > { %s3280_s18 = smov (!%p2190_p13), 0  }
 0x28e LB: >> { %v1847_v43 = vld [vmem:[%s2714_s24] sm:$0xff]  ;;  %v1849_v44 = vld [vmem:[%s2714_s24 + $0x8] sm:$0xff]  ;;  %v1851_v45 = vld [vmem:[%s2714_s24 + $0x10] sm:$0xff]  ;;  %s1911_s13 = sadd.s32 1, %s2718_s20  ;;  %s1841_s18 = sadd.s32 1, %s2722_s18   ;;  %s2722_s18 = sphi %s3280_s18, %s1841_s18   ;;  %s2718_s20 = sphi %s3278_s20, %s3456_s20   ;;  %s2714_s24 = sphi %s3453_s24, %s3455_s24   ;;  %s2710_s23 = sphi %s3452_s23, %s3454_s23  }
 0x28f   : >> { %1848 = vst [vmem:[%s2710_s23] sm:$0xff] %v1847_v43  ;;  %1850 = vst [vmem:[%s2710_s23 + $0x8] sm:$0xff] %v1849_v44  ;;  %v1853_v46 = vld [vmem:[%s2714_s24 + $0x18] sm:$0xff]  ;;  %v1855_v47 = vld [vmem:[%s2714_s24 + $0x20] sm:$0xff]  ;;  %p1912_p3 = scmp.ge.s32.totalorder %s1911_s13, %s3269_s4  ;;  %p1840_p6 = scmp.ge.s32.totalorder %s1841_s18, %s3269_s4 }
 0x290   : >> { %1852 = vst [vmem:[%s2710_s23 + $0x10] sm:$0xff] %v1851_v45  ;;  %v1857_v48 = vld [vmem:[%s2714_s24 + $0x28] sm:$0xff]  ;;  %1854 = vst [vmem:[%s2710_s23 + $0x18] sm:$0xff] %v1853_v46  ;;  %v1859_v49 = vld [vmem:[%s2714_s24 + $0x30] sm:$0xff] }
 0x291   : >> { %1856 = vst [vmem:[%s2710_s23 + $0x20] sm:$0xff] %v1855_v47  ;;  %1858 = vst [vmem:[%s2710_s23 + $0x28] sm:$0xff] %v1857_v48  ;;  %v1861_v50 = vld [vmem:[%s2714_s24 + $0x38] sm:$0xff]  ;;  %v1863_v51 = vld [vmem:[%s2714_s24 + $0x40] sm:$0xff]  ;;  %s3481_s13 = smov (%p1912_p3, %s1911_s13), 0 }
 0x292   : >> { %1860 = vst [vmem:[%s2710_s23 + $0x30] sm:$0xff] %v1859_v49  ;;  %1862 = vst [vmem:[%s2710_s23 + $0x38] sm:$0xff] %v1861_v50  ;;  %v1865_v8 = vld [vmem:[%s2714_s24 + $0x48] sm:$0xff]  ;;  %v1867_v52 = vld [vmem:[%s2714_s24 + $0x50] sm:$0xff]  ;;  %s2191_s8 = sshll.u32 %s3481_s13, 8  ;;  %s3456_s20 = smov %s3481_s13 }
 0x293   : >> { %1864 = vst [vmem:[%s2710_s23 + $0x40] sm:$0xff] %v1863_v51  ;;  %v1869_v53 = vld [vmem:[%s2714_s24 + $0x58] sm:$0xff]  ;;  %1866 = vst [vmem:[%s2710_s23 + $0x48] sm:$0xff] %v1865_v8  ;;  %v1871_v54 = vld [vmem:[%s2714_s24 + $0x60] sm:$0xff]  ;;  %s3336_s5 = scalar_lea.vmem %s3024_s15, %s2191_s8 [#allocation8]   ;;  %s1917_s9 = scalar_lea.vmem %s3265_s10, %s2191_s8  }
 0x294   : >> { %1868 = vst [vmem:[%s2710_s23 + $0x50] sm:$0xff] %v1867_v52  ;;  %1870 = vst [vmem:[%s2710_s23 + $0x58] sm:$0xff] %v1869_v53  ;;  %v1873_v55 = vld [vmem:[%s2714_s24 + $0x68] sm:$0xff]  ;;  %v1875_v56 = vld [vmem:[%s2714_s24 + $0x70] sm:$0xff] }
 0x295   : >> { %1872 = vst [vmem:[%s2710_s23 + $0x60] sm:$0xff] %v1871_v54  ;;  %1874 = vst [vmem:[%s2710_s23 + $0x68] sm:$0xff] %v1873_v55  ;;  %v1877_v57 = vld [vmem:[%s2714_s24 + $0x78] sm:$0xff]  ;;  %v1879_v58 = vld [vmem:[%s2714_s24 + $0x80] sm:$0xff] }
 0x296   : >> { %1876 = vst [vmem:[%s2710_s23 + $0x70] sm:$0xff] %v1875_v56  ;;  %v1881_v59 = vld [vmem:[%s2714_s24 + $0x88] sm:$0xff]  ;;  %1878 = vst [vmem:[%s2710_s23 + $0x78] sm:$0xff] %v1877_v57  ;;  %v1883_v60 = vld [vmem:[%s2714_s24 + $0x90] sm:$0xff] }
 0x297   : >> { %1880 = vst [vmem:[%s2710_s23 + $0x80] sm:$0xff] %v1879_v58  ;;  %1882 = vst [vmem:[%s2710_s23 + $0x88] sm:$0xff] %v1881_v59  ;;  %v1885_v61 = vld [vmem:[%s2714_s24 + $0x98] sm:$0xff]  ;;  %v1887_v62 = vld [vmem:[%s2714_s24 + $0xa0] sm:$0xff] }
 0x298   : >> { %1884 = vst [vmem:[%s2710_s23 + $0x90] sm:$0xff] %v1883_v60  ;;  %1886 = vst [vmem:[%s2710_s23 + $0x98] sm:$0xff] %v1885_v61  ;;  %v1889_v63 = vld [vmem:[%s2714_s24 + $0xa8] sm:$0xff]  ;;  %v1891_v0 = vld [vmem:[%s2714_s24 + $0xb0] sm:$0xff]  ;;  %1843 = sbr.rel (!%p1840_p6) target bundleno = 654 (0x28e), region = 165 }
 0x299   : >> { %1888 = vst [vmem:[%s2710_s23 + $0xa0] sm:$0xff] %v1887_v62  ;;  %v1893_v1 = vld [vmem:[%s2714_s24 + $0xb8] sm:$0xff]  ;;  %1890 = vst [vmem:[%s2710_s23 + $0xa8] sm:$0xff] %v1889_v63  ;;  %v1895_v2 = vld [vmem:[%s2714_s24 + $0xc0] sm:$0xff] }
 0x29a   : >> { %1892 = vst [vmem:[%s2710_s23 + $0xb0] sm:$0xff] %v1891_v0  ;;  %1894 = vst [vmem:[%s2710_s23 + $0xb8] sm:$0xff] %v1893_v1  ;;  %v1897_v3 = vld [vmem:[%s2714_s24 + $0xc8] sm:$0xff]  ;;  %v1899_v4 = vld [vmem:[%s2714_s24 + $0xd0] sm:$0xff] }
 0x29b   : >> { %1896 = vst [vmem:[%s2710_s23 + $0xc0] sm:$0xff] %v1895_v2  ;;  %1898 = vst [vmem:[%s2710_s23 + $0xc8] sm:$0xff] %v1897_v3  ;;  %v1901_v5 = vld [vmem:[%s2714_s24 + $0xd8] sm:$0xff]  ;;  %v1903_v6 = vld [vmem:[%s2714_s24 + $0xe0] sm:$0xff] }
 0x29c   : >> { %1900 = vst [vmem:[%s2710_s23 + $0xd0] sm:$0xff] %v1899_v4  ;;  %v1905_v7 = vld [vmem:[%s2714_s24 + $0xe8] sm:$0xff]  ;;  %1902 = vst [vmem:[%s2710_s23 + $0xd8] sm:$0xff] %v1901_v5  ;;  %v1907_v9 = vld [vmem:[%s2714_s24 + $0xf0] sm:$0xff] }
 0x29d   : >> { %1904 = vst [vmem:[%s2710_s23 + $0xe0] sm:$0xff] %v1903_v6  ;;  %1906 = vst [vmem:[%s2710_s23 + $0xe8] sm:$0xff] %v1905_v7  ;;  %v1909_v10 = vld [vmem:[%s2714_s24 + $0xf8] sm:$0xff]  ;;  %s3455_s24 = smov %s3336_s5 }
 0x29e   : >> { %1908 = vst [vmem:[%s2710_s23 + $0xf0] sm:$0xff] %v1907_v9  ;;  %1910 = vst [vmem:[%s2710_s23 + $0xf8] sm:$0xff] %v1909_v10  ;;  %s3454_s23 = smov %s1917_s9 }
 0x29f PF: > { %s3377_s17 = sand.u32 31, %s3479_s1   ;;  %s2201_s29 = sshll.u32 %s3269_s4, 8 }
 0x2a0   : > { %s1922_s28 = scalar_lea.vmem %s3024_s15, %s2201_s29 [#allocation8]   ;;  %s1924_s0 = scalar_lea.vmem %s3265_s10, %s2201_s29  }
 0x2a1   : > { %p2196_p11 = scmp.le.s32.totalorder %s3377_s17, 0 }
 0x2a2   : > { %s2724_s16 = smov (!%p2196_p11), %s1924_s0   ;;  %s2728_s12 = smov (!%p2196_p11), %s1922_s28  }
 0x2a3   : > { %2054 = sbr.rel (%p2196_p11) target bundleno = 692 (0x2b4), region = 170  ;;  %s2732_s7 = smov (!%p2196_p11), 0  }
 0x2a4   : > { %s2736_s6 = smov (!%p2196_p11), 0  }
 0x2aa LB: >> { %v1934_v11 = vld [vmem:[%s2730_s12] sm:$0xff]  ;;  %s1936_s1 = sadd.s32 1, %s2734_s7  ;;  %s1928_s6 = sadd.s32 1, %s2738_s6   ;;  %s2738_s6 = sphi %s2736_s6, %s1928_s6   ;;  %s2734_s7 = sphi %s2732_s7, %s2733_s7   ;;  %s2730_s12 = sphi %s2728_s12, %s1941_s12   ;;  %s2726_s16 = sphi %s2724_s16, %s1942_s16  }
 0x2ab   : >> { %1935 = vst [vmem:[%s2726_s16] sm:$0xff] %v1934_v11  ;;  %p1937_p1 = scmp.ge.s32.totalorder %s1936_s1, %s3377_s17  ;;  %p1927_p5 = scmp.ge.s32.totalorder %s1928_s6, %s3377_s17 }
 0x2ad   : >> { %s3483_s1 = smov (%p1937_p1, %s1936_s1), 0  ;;  %1930 = sbr.rel (!%p1927_p5) target bundleno = 682 (0x2aa), region = 176 }
 0x2ae   : >> { %s2197_s15 = sshll.u32 %s3483_s1, 3  ;;  %s2733_s7 = smov %s3483_s1  }
 0x2af   : >> { %s1941_s12 = scalar_lea.vmem %s1922_s28, %s2197_s15 [#allocation8]   ;;  %s1942_s16 = scalar_lea.vmem %s1924_s0, %s2197_s15  }
 0x2b4 PF: > { %s17_s27 = sadd.s32 1, %s2706_s27   ;;  %s3457_s10 = sld [smem:[#allocation13_spill]] }
 0x2b5   : > { %p14_p0 = scmp.ge.s32.totalorder %s17_s27, 6   ;;  %s3458_s14 = sld [smem:[#allocation14_spill]] }
 0x2b6   : > { %s3459_s18 = smov %s2674_s19  ;;  %s3460_s19 = smov %s2948_s30 }
 0x2b7   : > { %s3461_s20 = smov %s2682_s21  ;;  %s3462_s21 = smov %s2686_s22 }
 0x2b8   : > { %s3463_s22 = smov %s2953_s11  ;;  %s3464_s23 = smov %s2698_s25 }
 0x2b9   : > { %s3465_s24 = smov %s2702_s26  ;;  %16 = sbr.rel (!%p14_p0) target bundleno = 11 (0xb), region = 187 }
 0x2ba   : > { %s3466_s25 = smov %s3457_s10 }
 0x2bb   : > { %s3467_s26 = smov %s3458_s14 }
 0x2c0   :  { %1958 = vsyncpa [#allocation4], 1 }
 0x2c1   :  { %1960 = vsyncpa [#allocation4 + $0x1], 1 }
 0x2c2   :  { %1961 = vsyncpa [#allocation6], 1 }

// kernel: tpu_custom_call.1
= control target key start
LH: loop header
LB: loop body
LE: loop exit
PB: predicated region body
PF: predicated region fallthrough
CT: control target
= control target key end

     0   :  { %s3415_s0 = inlined_call_operand.hbm [shape: bf16[128,256], index: 0, kind: input, shape index: {}]   ;;  %s3416_s1 = inlined_call_operand.hbm [shape: bf16[128,256], index: 1, kind: input, shape index: {}]   ;;  %s3417_s2 = inlined_call_operand.vmem [shape: f32[2,128,256], index: 2, kind: input, shape index: {}]   ;;  %s3418_s3 = inlined_call_operand.hbm [shape: f32[2,128,256], index: 3, kind: input, shape index: {}]   ;;  %s3419_s4 = inlined_call_operand.vmem [shape: f32[2,256,1], index: 4, kind: input, shape index: {}]   ;;  %s3420_s5 = inlined_call_operand.vmem [shape: f32[2,257,128], index: 5, kind: output, shape index: {}]  }
   0x1   :  { %3426 = sst [smem:[#allocation15_spill]] %s3415_s0 }
   0x2   :  { %3427 = sst [smem:[#allocation16_spill]] %s3416_s1 }
   0x3   :  { %3428 = sst [smem:[#allocation17_spill]] %s3419_s4 }
   0x4   :  { %3429 = sst [smem:[#allocation18_spill]] %s3420_s5 }
   0x5   :  { %10 = vsyncpa [#allocation4], 0 }
   0x6   :  { %11 = vsyncpa [#allocation6], 0  ;;  %s2780_s18 = smov 0   ;;  %s2782_s19 = smov 0  }
   0x7   :  { %s2784_s20 = smov 0   ;;  %s2786_s21 = smov 0  }
   0x8   :  { %s2788_s22 = smov 0   ;;  %s2790_s23 = smov 0  }
   0x9   :  { %s2792_s24 = smov 0   ;;  %s2794_s25 = smov 0  }
   0xa   :  { %s2796_s26 = smov 0   ;;  %s2798_s27 = smov 0  }
   0xb LB: > { %s2829_s28 = sadd.s32 4294967295, %s2706_s27   ;;  %p123_p0 = scmp.ne.s32.totalorder %s2686_s22, %s2682_s21  ;;  %s2706_s27 = sphi %s2798_s27, %s17_s27   ;;  %s2702_s26 = sphi %s2796_s26, %s3467_s26   ;;  %s2698_s25 = sphi %s2794_s25, %s3466_s25   ;;  %s2694_s24 = sphi %s2792_s24, %s3465_s24   ;;  %s2690_s23 = sphi %s2790_s23, %s3464_s23   ;;  %s2686_s22 = sphi %s2788_s22, %s3463_s22   ;;  %s2682_s21 = sphi %s2786_s21, %s3462_s21   ;;  %s2678_s20 = sphi %s2784_s20, %s3461_s20   ;;  %s2674_s19 = sphi %s2782_s19, %s3460_s19   ;;  %s2670_s18 = sphi %s2780_s18, %s3459_s18  }
   0xc   : > { %p124_p1 = scmp.eq.s32.totalorder %s2706_s27, 0  ;;  %p129_p2 = scmp.ne.s32.totalorder %s2682_s21, %s2678_s20 }
   0xd   : > { %p3421_p3 = scmp.eq.s32.totalorder %s2829_s28, 0  ;;  %p186_p6 = scmp.ne.s32.totalorder %s2674_s19, %s2670_s18 }
   0xe   : > { %p2837_p4 = por %p124_p1, %p123_p0  ;;  %p187_p7 = scmp.eq.s32.totalorder %s2829_s28, 3 }
   0xf   : > { %p2844_p5 = por %p3421_p3, %p129_p2  ;;  %p2130_p8 = scmp.ge.s32.totalorder %s2706_s27, 1 }
  0x10   : > { %p200_p9 = scmp.lt.s32.totalorder %s2706_s27, 5  ;;  %p2853_p10 = por %p187_p7, %p186_p6 }
  0x11   : > { %s3431_s7 = scalar_select %p2844_p5, 1, 0 }
  0x12   : > { %s3432_s8 = scalar_select %p2853_p10, 1, 0 }
  0x13   : > { %p2857_p11 = pnand %p2130_p8, %p200_p9  ;;  %s2740_s10 = smov [#allocation3]  }
  0x14   : > { %3433 = sst [smem:[#allocation12_spill]] %s3432_s8  ;;  %s212_s11 = sshll.u32 %s2740_s10, 4  ;;  %s2861_s11 = int_to_ptr.vmem [resolvable:$true] %s212_s11 }
  0x15   : > { %p2278_p12 = pneg %p2857_p11  ;;  %p2291_p13 = scmp.lt.s32.totalorder %s2706_s27, 4 }
  0x16   : > { %s2741_s14 = smov [#allocation5]   ;;  %s3437_s0 = sld [smem:[#allocation15_spill]] }
  0x17   : > { %p2868_p0 = pnand %p2278_p12, %p3421_p3  ;;  %p2874_p1 = pnand %p2291_p13, %p2837_p4 }
  0x18   : > { %s225_s15 = sshll.u32 %s2741_s14, 4  ;;  %s2878_s15 = int_to_ptr.vmem [resolvable:$true] %s225_s15 }
  0x19   : > { %p2499_p6 = pneg %p2868_p0 }
  0x1c   : > { %s2497_s20 = scalar_lea.hbm %s3437_s0, 2048 }
  0x1d   : > { %p2498_p2 = scmp.ne.s32.totalorder %s3437_s0, %s2497_s20  ;;  %p2504_p8 = scmp.lt.u32.totalorder %s2497_s20, %s3437_s0 }
  0x1f   : > { %p2500_p4 = pnand %p2499_p6, %p2498_p2 }
  0x21   : > { %p2501_p7 = pneg %p2500_p4 }
  0x23   : > { %p2506_p9 = pnand %p2504_p8, %p2501_p7 }
  0x25   : > { %2509 = shalt.err (!%p2506_p9)
}
  0x26   : > { %s2510_s14 = scalar_lea.vmem %s2861_s11, 2048  ;;  %p2518_p10 = scmp.lt.s32.totalorder %s2861_s11, %s2861_s11 }
  0x27   : > { %p2511_p12 = scmp.ne.s32.totalorder %s2861_s11, %s2510_s14  ;;  %p2519_p2 = scmp.lt.s32.totalorder %s2510_s14, %s2510_s14 }
  0x29   : > { %p2513_p13 = pnand %p2511_p12, %p2499_p6  ;;  %p2520_p4 = por %p2519_p2, %p2518_p10 }
  0x2b   : > { %p2514_p3 = pneg %p2513_p13 }
  0x2d   : > { %p2521_p5 = pnand %p2520_p4, %p2514_p3 }
  0x2f   : > { %2524 = shalt.err (!%p2521_p5)
}
  0x30   : > { %s2742_s29 = smov 128   ;;  %s2743_s6 = smov 8  }
  0x31   : > { %2281 = dma.hbm_to_vmem [thread:$0]  (!%p2868_p0), %s3437_s0, 2048, %s2861_s11, [#allocation4], %s2742_s29, %s2742_s29, %s2743_s6  }
  0x32   : > { %s3438_s1 = sld [smem:[#allocation16_spill]] }
  0x38   : > { %s2525_s30 = scalar_lea.hbm %s3438_s1, 2048 }
  0x39   : > { %p2526_p10 = scmp.ne.s32.totalorder %s3438_s1, %s2525_s30  ;;  %p2532_p7 = scmp.lt.u32.totalorder %s2525_s30, %s3438_s1 }
  0x3b   : > { %p2528_p3 = pnand %p2526_p10, %p2499_p6 }
  0x3d   : > { %p2529_p5 = pneg %p2528_p3 }
  0x3f   : > { %p2534_p8 = pnand %p2532_p7, %p2529_p5 }
  0x41   : > { %2537 = shalt.err (!%p2534_p8)
}
  0x42   : > { %s2538_s11 = scalar_lea.vmem %s2878_s15, 2048  ;;  %p2546_p2 = scmp.lt.s32.totalorder %s2878_s15, %s2878_s15 }
  0x43   : > { %p2539_p9 = scmp.ne.s32.totalorder %s2878_s15, %s2538_s11  ;;  %p2547_p4 = scmp.lt.s32.totalorder %s2538_s11, %s2538_s11 }
  0x45   : > { %p2541_p12 = pnand %p2539_p9, %p2499_p6  ;;  %p2548_p10 = por %p2547_p4, %p2546_p2 }
  0x47   : > { %p2542_p13 = pneg %p2541_p12 }
  0x49   : > { %p2549_p3 = pnand %p2548_p10, %p2542_p13 }
  0x4b   : > { %2552 = shalt.err (!%p2549_p3)
}
  0x4c   : > { %2284 = dma.hbm_to_vmem [thread:$0]  (!%p2868_p0), %s3438_s1, 2048, %s2878_s15, [#allocation6], %s2742_s29, %s2742_s29, %s2743_s6  }
  0x4d   : > { %s26_s8 = sadd.s32 1, %s2698_s25  ;;  %s29_s16 = sadd.s32 1, %s2702_s26 }
  0x4e   : > { %p27_p6 = scmp.ge.s32.totalorder %s26_s8, 2  ;;  %s256_s12 = sand.u32 1, %s2706_s27  }
  0x4f   : > { %s258_s15 = sand.u32 1, %s2686_s22   ;;  %s3441_s10 = sadd.s32 1, %s2674_s19 }
  0x50   : > { %s3469_s8 = smov (%p27_p6, %s26_s8), 0  ;;  %s3471_s16 = smov (!%p27_p6, %s29_s16), %s2702_s26 }
  0x51   : > { %3439 = sst [smem:[#allocation13_spill]] %s3469_s8  ;;  %p31_p5 = scmp.ge.s32.totalorder %s3471_s16, 2 }
  0x52   : > { %s172_s17 = ssub.s32 %s2698_s25, %s3469_s8  ;;  %s2134_s6 = sshll.u32 %s258_s15, 8 }
  0x53   : > { %s3473_s16 = smov (%p31_p5, %s3471_s16), 0  ;;  %s3442_s14 = sadd.s32 1, %s2686_s22 }
  0x54   : > { %3440 = sst [smem:[#allocation14_spill]] %s3473_s16  ;;  %s111_s20 = ssub.s32 %s2702_s26, %s3473_s16 }
  0x55   : > { %s173_s29 = sor.u32 %s172_s17, %s111_s20  ;;  %p114_p7 = scmp.eq.s32.totalorder %s111_s20, 0 }
  0x56   : > { %p174_p0 = scmp.eq.s32.totalorder %s173_s29, 0  ;;  %s260_s4 = scalar_lea.vmem [#allocation7], %s2134_s6 }
  0x57   : > { %s2953_s11 = scalar_select %p114_p7, %s2686_s22, %s3442_s14  }
  0x58   : > { %s2948_s30 = scalar_select %p174_p0, %s2674_s19, %s3441_s10  }
  0x59   : > { %s271_s5 = sshll.u32 %s260_s4, 4  ;;  %s2667_s0 = sshll.u32 %s2702_s26, 12  ;;  %s2955_s5 = int_to_ptr.vmem [resolvable:$true] %s271_s5 }
  0x5a   : > { %s2961_s8 = scalar_lea.hbm %s3418_s3, %s2667_s0  ;;  %s2963_s17 = scalar_lea.sflag [#allocation4], %s256_s12 }
  0x5b   : > { %s2553_s20 = scalar_lea.hbm %s2961_s8, 4096  ;;  %p2555_p9 = pneg %p2874_p1 }
  0x5c   : > { %p2554_p8 = scmp.ne.s32.totalorder %s2961_s8, %s2553_s20  ;;  %s2558_s1 = scalar_lea.hbm %s3418_s3, 8192 }
  0x5d   : > { %p2559_p2 = scmp.lt.u32.totalorder %s2961_s8, %s3418_s3  ;;  %p2560_p4 = scmp.lt.u32.totalorder %s2558_s1, %s2553_s20 }
  0x5e   : > { %p2556_p12 = pnand %p2555_p9, %p2554_p8  ;;  %p2562_p3 = scmp.lt.u32.totalorder %s2553_s20, %s2961_s8 }
  0x5f   : > { %p2561_p10 = por %p2560_p4, %p2559_p2 }
  0x60   : > { %p2557_p13 = pneg %p2556_p12 }
  0x61   : > { %p2563_p6 = por %p2562_p3, %p2561_p10 }
  0x63   : > { %p2564_p5 = pnand %p2563_p6, %p2557_p13 }
  0x65   : > { %2567 = shalt.err (!%p2564_p5)
}
  0x66   : > { %s2568_s12 = scalar_lea.vmem %s2955_s5, 4096  ;;  %s2744_s6 = smov [#allocation7]  }
  0x67   : > { %p2569_p0 = scmp.ne.s32.totalorder %s2955_s5, %s2568_s12  ;;  %s2573_s10 = sshll.u32 %s2744_s6, 4  ;;  %s2574_s10 = int_to_ptr.vmem [resolvable:$false] %s2573_s10 }
  0x68   : > { %s2575_s14 = scalar_lea.vmem %s2574_s10, 8192  ;;  %p2576_p12 = scmp.lt.s32.totalorder %s2955_s5, %s2574_s10 }
  0x69   : > { %p2571_p7 = pnand %p2569_p0, %p2555_p9  ;;  %p2577_p2 = scmp.lt.s32.totalorder %s2575_s14, %s2568_s12 }
  0x6b   : > { %p2572_p8 = pneg %p2571_p7  ;;  %p2578_p4 = por %p2577_p2, %p2576_p12 }
  0x6d   : > { %p2579_p10 = pnand %p2578_p4, %p2572_p8 }
  0x6f   : > { %2582 = shalt.err (!%p2579_p10)
}
  0x70   : > { %s2745_s4 = smov 256   ;;  %s2746_s20 = smov 16  }
  0x71   : > { %2288 = dma.hbm_to_vmem [thread:$0]  (!%p2874_p1), %s2961_s8, 4096, %s2955_s5, %s2963_s17, %s2745_s4, %s2745_s4, %s2746_s20  }
  0x72   : > { %300 = sbr.rel (%p2857_p11) target bundleno = 692 (0x2b4), region = 40  ;;  %p3443_p9 = scmp.eq.s32.totalorder (!%p2857_p11), %s2829_s28, 0 }
  0x79   : > { %2656 = dma.done.wait (%p3443_p9), [#allocation4], 2048   ;;  %p3444_p13 = pmov %p3443_p9 }
  0x7a   : > { %p3445_p3 = pmov %p3443_p9 }
  0x7b   : > { %2658 = vsyncadd (%p3444_p13), [#allocation4], 4294965248 }
  0x7c   : > { %2660 = dma.done.wait (%p3445_p3), [#allocation6], 2048   ;;  %p3446_p6 = pmov %p3445_p3 }
  0x7d   : > { %s310_s13 = sand.u32 1, %s2829_s28   ;;  %s312_s8 = sand.u32 1, %s2682_s21  }
  0x7e   : > { %2662 = vsyncadd (%p3446_p6), [#allocation6], 4294965248  ;;  %s2141_s5 = sshll.u32 %s312_s8, 8  ;;  %s311_s9 = scalar_lea.sflag [#allocation4], %s310_s13 }
  0x7f   : > { %s3003_s17 = scalar_lea.vmem [#allocation7], %s2141_s5  ;;  %p3447_p11 = scmp.ne.s32.totalorder %s3431_s7, 0 }
  0x81   : > { %2664 = dma.done.wait (%p3447_p11), %s311_s9, 4096  }
  0x82   : > { %2666 = vsyncadd (%p3447_p11), %s311_s9, 4294963200  ;;  %s359_s15 = sand.u32 1, %s2670_s18   ;;  %p362_p1 = scmp.lt.s32.totalorder %s2690_s23, 0 }
  0x83   : > { %s2142_s29 = sshll.u32 %s359_s15, 8  ;;  %p365_p5 = scmp.lt.s32.totalorder %s2694_s24, 1 }
  0x84   : > { %s363_s28 = scalar_select %p362_p1, %s2690_s23, 0 }
  0x85   : > { %s366_s1 = scalar_select %p365_p5, %s2694_s24, 1 }
  0x86   : > { %s2143_s0 = sshll.u32 %s363_s28, 1  ;;  %s2146_s16 = sshll.u32 %s363_s28, 5 }
  0x87   : > { %p367_p0 = scmp.lt.s32.totalorder %s2143_s0, 1  ;;  %s2144_s12 = sshll.u32 %s366_s1, 5 }
  0x88   : > { %p384_p7 = scmp.lt.s32.totalorder %s2146_s16, 31  ;;  %s3448_s5 = sld [smem:[#allocation17_spill]] }
  0x89   : > { %s3475_s0 = smov (!%p367_p0, %s2143_s0), 1  ;;  %s3024_s15 = scalar_lea.vmem [#allocation8], %s2142_s29  }
  0x8a   : > { %s3477_s16 = smov (!%p384_p7, %s2146_s16), 31  ;;  %s370_s7 = sadd.s32 %s2144_s12, %s3475_s0 }
  0x8b   : > { %s2145_s6 = sshll.u32 %s370_s7, 3  ;;  %s387_s10 = sadd.s32 %s2144_s12, %s3477_s16 }
  0x8c   : > { %s3017_s20 = scalar_lea.vmem %s3417_s2, %s2145_s6  ;;  %s2148_s18 = sshll.u32 %s387_s10, 3 }
  0x8d   : > { %p2149_p8 = scmp.ne.s32.totalorder %s2690_s23, 0 }
  0x8e   : > { %s3022_s9 = scalar_lea.vmem %s3448_s5, %s2148_s18  ;;  %v2747_v0 = vmov (!%p2149_p8), 0.0  }
  0x8f   : > { %402 = sbr.rel (%p2149_p8) target bundleno = 150 (0x96), region = 56  ;;  %403 = vst [vmem:[#allocation2] sm:$0x1] (!%p2149_p8), %v2747_v0 }
  0x96 PF: > { %p2150_p12 = scmp.ge.s32.totalorder %s2690_s23, 1 }
  0x97   : > { %v488_v1 = vld [vmem:[%s3003_s17] sm:$0xff] (!%p2150_p12)  ;;  %v490_v2 = vld [vmem:[%s3003_s17 + $0x10] sm:$0xff] (!%p2150_p12)  ;;  %v2748_v8 = vmov (!%p2150_p12), 0   ;;  %vm1466_vm0 = vcmask (!%p2150_p12), 1040384  }
  0x98   : > { %407 = sbr.rel (%p2150_p12) target bundleno = 603 (0x25b), region = 60  ;;  %v408_v3 = vld [vmem:[%s3017_s20] sm:$0xff] (!%p2150_p12)  ;;  %v520_v4 = vpack.c.bf16 (!%p2150_p12), %v490_v2, %v488_v1  ;;  %v410_v5 = vld [vmem:[%s3017_s20 + $0x10] sm:$0xff] (!%p2150_p12)  ;;  %712 = vmatprep.mubr.bf16.mxu1 (!%p2150_p12), %v2748_v8  ;;  %985 = vmatprep.mubr.bf16.mxu0 (!%p2150_p12), %v2748_v8 }
  0x99   : > { %v492_v6 = vld [vmem:[%s3003_s17 + $0x20] sm:$0xff] (!%p2150_p12)  ;;  %v494_v7 = vld [vmem:[%s3003_s17 + $0x30] sm:$0xff] (!%p2150_p12)  ;;  %v440_v9 = vpack.c.bf16 (!%p2150_p12), %v410_v5, %v408_v3  ;;  %v489_v2 = vld [vmem:[%s3003_s17 + $0x8] sm:$0xff] (!%p2150_p12) }
  0x9a   : > { %v412_v10 = vld [vmem:[%s3017_s20 + $0x20] sm:$0xff] (!%p2150_p12)  ;;  %v414_v11 = vld [vmem:[%s3017_s20 + $0x30] sm:$0xff] (!%p2150_p12)  ;;  %536 = vxpose.xlu1.c.b16.start [1/8] (!%p2150_p12), %v520_v4, 128  ;;  %v522_v12 = vpack.c.bf16 (!%p2150_p12), %v494_v7, %v492_v6  ;;  %v409_v4 = vld [vmem:[%s3017_s20 + $0x8] sm:$0xff] (!%p2150_p12) }
  0x9b   : > { %456 = vxpose.xlu0.c.b16.start [1/8] (!%p2150_p12), %v440_v9, 128  ;;  %v442_v13 = vpack.c.bf16 (!%p2150_p12), %v414_v11, %v412_v10  ;;  %v496_v14 = vld [vmem:[%s3003_s17 + $0x40] sm:$0xff] (!%p2150_p12)  ;;  %v498_v15 = vld [vmem:[%s3003_s17 + $0x50] sm:$0xff] (!%p2150_p12)  ;;  %v491_v3 = vld [vmem:[%s3003_s17 + $0x18] sm:$0xff] (!%p2150_p12) }
  0x9c   : > { %v416_v16 = vld [vmem:[%s3017_s20 + $0x40] sm:$0xff] (!%p2150_p12)  ;;  %v418_v17 = vld [vmem:[%s3017_s20 + $0x50] sm:$0xff] (!%p2150_p12)  ;;  %v524_v18 = vpack.c.bf16 (!%p2150_p12), %v498_v15, %v496_v14  ;;  %v411_v5 = vld [vmem:[%s3017_s20 + $0x18] sm:$0xff] (!%p2150_p12)  ;;  %v521_v7 = vpack.c.bf16 (!%p2150_p12), %v491_v3, %v489_v2 }
  0x9d   : > { %v444_v19 = vpack.c.bf16 (!%p2150_p12), %v418_v17, %v416_v16  ;;  %v500_v20 = vld [vmem:[%s3003_s17 + $0x60] sm:$0xff] (!%p2150_p12)  ;;  %v502_v21 = vld [vmem:[%s3003_s17 + $0x70] sm:$0xff] (!%p2150_p12)  ;;  %v495_v14 = vld [vmem:[%s3003_s17 + $0x38] sm:$0xff] (!%p2150_p12) }
  0x9e   : > { %537 = vxpose.xlu1.c.b16.cont [2/8] (!%p2150_p12), %v522_v12, 128  ;;  %v420_v22 = vld [vmem:[%s3017_s20 + $0x60] sm:$0xff] (!%p2150_p12)  ;;  %v422_v23 = vld [vmem:[%s3017_s20 + $0x70] sm:$0xff] (!%p2150_p12)  ;;  %v526_v24 = vpack.c.bf16 (!%p2150_p12), %v502_v21, %v500_v20  ;;  %v441_v12 = vpack.c.bf16 (!%p2150_p12), %v411_v5, %v409_v4  ;;  %v413_v15 = vld [vmem:[%s3017_s20 + $0x28] sm:$0xff] (!%p2150_p12) }
  0x9f   : > { %457 = vxpose.xlu0.c.b16.cont [2/8] %v442_v13, 128  ;;  %v446_v25 = vpack.c.bf16 %v422_v23, %v420_v22  ;;  %v504_v26 = vld [vmem:[%s3003_s17 + $0x80] sm:$0xff]  ;;  %v506_v27 = vld [vmem:[%s3003_s17 + $0x90] sm:$0xff]  ;;  %v493_v13 = vld [vmem:[%s3003_s17 + $0x28] sm:$0xff] }
  0xa0   : > { %v424_v28 = vld [vmem:[%s3017_s20 + $0x80] sm:$0xff]  ;;  %v426_v29 = vld [vmem:[%s3017_s20 + $0x90] sm:$0xff]  ;;  %v528_v31 = vpack.c.bf16 %v506_v27, %v504_v26  ;;  %v415_v16 = vld [vmem:[%s3017_s20 + $0x38] sm:$0xff] }
  0xa1   : > { %v2449_v30 = vld [vmem:[#allocation5 + $0x4] ss:$8 sps:$4 sm:$0xff]   ;;  %v2453_v33 = vld [vmem:[#allocation5] ss:$8 sps:$4 sm:$0xff]   ;;  %v448_v35 = vpack.c.bf16 %v426_v29, %v424_v28  ;;  %v510_v37 = vld [vmem:[%s3003_s17 + $0xb0] sm:$0xff]  ;;  %v443_v22 = vpack.c.bf16 %v415_v16, %v413_v15 }
  0xa2   : > { %538 = vxpose.xlu1.c.b16.cont [3/8] %v524_v18, 128  ;;  %v2451_v32 = vld [vmem:[#allocation3 + $0x4] ss:$8 sps:$4 sm:$0xff]   ;;  %v2454_v34 = vld [vmem:[#allocation3] ss:$8 sps:$4 sm:$0xff]   ;;  %680 = vmatprep.subr.bf16.mxu1 %v2449_v30  ;;  %v2455_v40 = vld [vmem:[#allocation5 + $0x14] ss:$8 sps:$4 sm:$0xff]   ;;  %v523_v18 = vpack.c.bf16 %v495_v14, %v493_v13 }
  0xa3   : > { %458 = vxpose.xlu0.c.b16.cont [3/8] %v444_v19, 128  ;;  %v508_v36 = vld [vmem:[%s3003_s17 + $0xa0] sm:$0xff]  ;;  %v430_v39 = vld [vmem:[%s3017_s20 + $0xb0] sm:$0xff]  ;;  %953 = vmatprep.subr.bf16.mxu0 %v2451_v32  ;;  %v419_v26 = vld [vmem:[%s3017_s20 + $0x58] sm:$0xff] }
  0xa4   : > { %v428_v38 = vld [vmem:[%s3017_s20 + $0xa0] sm:$0xff]  ;;  %681 = vmatpush1.bf16.msra.mxu1 %v2453_v33  ;;  %954 = vmatpush1.bf16.msra.mxu0 %v2454_v34  ;;  %v530_v41 = vpack.c.bf16 %v510_v37, %v508_v36  ;;  %v2459_v43 = vld [vmem:[#allocation5 + $0x10] ss:$8 sps:$4 sm:$0xff]   ;;  %v497_v23 = vld [vmem:[%s3003_s17 + $0x48] sm:$0xff] }
  0xa5   : > { %v2457_v42 = vld [vmem:[#allocation3 + $0x14] ss:$8 sps:$4 sm:$0xff]   ;;  %v2460_v44 = vld [vmem:[#allocation3 + $0x10] ss:$8 sps:$4 sm:$0xff]   ;;  %v450_v45 = vpack.c.bf16 %v430_v39, %v428_v38  ;;  %v512_v46 = vld [vmem:[%s3003_s17 + $0xc0] sm:$0xff]  ;;  %682 = vmatprep.subr.bf16.mxu1 %v2455_v40 }
  0xa6   : > { %539 = vxpose.xlu1.c.b16.cont [4/8] %v526_v24, 128  ;;  %v514_v47 = vld [vmem:[%s3003_s17 + $0xd0] sm:$0xff]  ;;  %v432_v48 = vld [vmem:[%s3017_s20 + $0xc0] sm:$0xff]  ;;  %955 = vmatprep.subr.bf16.mxu0 %v2457_v42  ;;  %v501_v27 = vld [vmem:[%s3003_s17 + $0x68] sm:$0xff] }
  0xa7   : > { %459 = vxpose.xlu0.c.b16.cont [4/8] %v446_v25, 128  ;;  %v434_v49 = vld [vmem:[%s3017_s20 + $0xd0] sm:$0xff]  ;;  %v532_v51 = vpack.c.bf16 %v514_v47, %v512_v46  ;;  %v2465_v53 = vld [vmem:[#allocation5 + $0x20] ss:$8 sps:$4 sm:$0xff]   ;;  %v499_v24 = vld [vmem:[%s3003_s17 + $0x58] sm:$0xff] }
  0xa8   : > { %683 = vmatpush1.bf16.msra.mxu1 %v2459_v43  ;;  %956 = vmatpush1.bf16.msra.mxu0 %v2460_v44  ;;  %v2461_v50 = vld [vmem:[#allocation5 + $0x24] ss:$8 sps:$4 sm:$0xff]   ;;  %v2466_v54 = vld [vmem:[#allocation3 + $0x20] ss:$8 sps:$4 sm:$0xff]   ;;  %v452_v55 = vpack.c.bf16 %v434_v49, %v432_v48  ;;  %v518_v57 = vld [vmem:[%s3003_s17 + $0xf0] sm:$0xff]  ;;  %v525_v30 = vpack.c.bf16 %v499_v24, %v497_v23 }
  0xa9   : > { %v2463_v52 = vld [vmem:[#allocation3 + $0x24] ss:$8 sps:$4 sm:$0xff]   ;;  %684 = vmatprep.subr.bf16.mxu1 %v2461_v50  ;;  %v2467_v60 = vld [vmem:[#allocation5 + $0x34] ss:$8 sps:$4 sm:$0xff]   ;;  %v2471_v63 = vld [vmem:[#allocation5 + $0x30] ss:$8 sps:$4 sm:$0xff]  }
  0xaa   : > { %540 = vxpose.xlu1.c.b16.cont [5/8] %v528_v31, 128  ;;  %v516_v56 = vld [vmem:[%s3003_s17 + $0xe0] sm:$0xff]  ;;  %v438_v59 = vld [vmem:[%s3017_s20 + $0xf0] sm:$0xff]  ;;  %957 = vmatprep.subr.bf16.mxu0 %v2463_v52  ;;  %v503_v28 = vld [vmem:[%s3003_s17 + $0x78] sm:$0xff] }
  0xab   : > { %460 = vxpose.xlu0.c.b16.cont [5/8] %v448_v35, 128  ;;  %v436_v58 = vld [vmem:[%s3017_s20 + $0xe0] sm:$0xff]  ;;  %v534_v61 = vpack.c.bf16 %v518_v57, %v516_v56  ;;  %v2472_v0 = vld [vmem:[#allocation3 + $0x30] ss:$8 sps:$4 sm:$0xff]   ;;  %v417_v25 = vld [vmem:[%s3017_s20 + $0x48] sm:$0xff] }
  0xac   : > { %685 = vmatpush1.bf16.msra.mxu1 %v2465_v53  ;;  %958 = vmatpush1.bf16.msra.mxu0 %v2466_v54  ;;  %v2469_v62 = vld [vmem:[#allocation3 + $0x34] ss:$8 sps:$4 sm:$0xff]   ;;  %v454_v1 = vpack.c.bf16 %v438_v59, %v436_v58  ;;  %v2473_v6 = vld [vmem:[#allocation5 + $0x44] ss:$8 sps:$4 sm:$0xff]   ;;  %v2477_v10 = vld [vmem:[#allocation5 + $0x40] ss:$8 sps:$4 sm:$0xff]   ;;  %v445_v36 = vpack.c.bf16 %v419_v26, %v417_v25 }
  0xad   : > { %686 = vmatprep.subr.bf16.mxu1 %v2467_v60  ;;  %959 = vmatprep.subr.bf16.mxu0 %v2469_v62  ;;  %v2475_v9 = vld [vmem:[#allocation3 + $0x44] ss:$8 sps:$4 sm:$0xff]   ;;  %v2478_v11 = vld [vmem:[#allocation3 + $0x40] ss:$8 sps:$4 sm:$0xff]   ;;  %v2479_v17 = vld [vmem:[#allocation5 + $0x54] ss:$8 sps:$4 sm:$0xff]  }
  0xae   : > { %541 = vxpose.xlu1.c.b16.cont [6/8] %v530_v41, 128  ;;  %v2481_v19 = vld [vmem:[#allocation3 + $0x54] ss:$8 sps:$4 sm:$0xff]   ;;  %v2483_v20 = vld [vmem:[#allocation5 + $0x50] ss:$8 sps:$4 sm:$0xff]   ;;  %v2485_v29 = vld [vmem:[#allocation5 + $0x64] ss:$8 sps:$4 sm:$0xff]   ;;  %v527_v41 = vpack.c.bf16 %v503_v28, %v501_v27 }
  0xaf   : > { %461 = vxpose.xlu0.c.b16.cont [6/8] %v450_v45, 128  ;;  %v2484_v21 = vld [vmem:[#allocation3 + $0x50] ss:$8 sps:$4 sm:$0xff]   ;;  %v421_v31 = vld [vmem:[%s3017_s20 + $0x68] sm:$0xff]  ;;  %v2491_v37 = vld [vmem:[#allocation5 + $0x74] ss:$8 sps:$4 sm:$0xff]  }
  0xb0   : > { %687 = vmatpush1.bf16.msra.mxu1 %v2471_v63  ;;  %960 = vmatpush1.bf16.msra.mxu0 %v2472_v0  ;;  %v423_v32 = vld [vmem:[%s3017_s20 + $0x78] sm:$0xff]  ;;  %v2487_v33 = vld [vmem:[#allocation3 + $0x64] ss:$8 sps:$4 sm:$0xff]   ;;  %v2489_v34 = vld [vmem:[#allocation5 + $0x60] ss:$8 sps:$4 sm:$0xff]  }
  0xb1   : > { %688 = vmatprep.subr.bf16.mxu1 %v2473_v6  ;;  %961 = vmatprep.subr.bf16.mxu0 %v2475_v9  ;;  %v2490_v35 = vld [vmem:[#allocation3 + $0x60] ss:$8 sps:$4 sm:$0xff]   ;;  %v2493_v38 = vld [vmem:[#allocation3 + $0x74] ss:$8 sps:$4 sm:$0xff]   ;;  %v2495_v39 = vld [vmem:[#allocation5 + $0x70] ss:$8 sps:$4 sm:$0xff]   ;;  %v447_v42 = vpack.c.bf16 %v423_v32, %v421_v31 }
  0xb2   : > { %542 = vxpose.xlu1.c.b16.cont [7/8] %v532_v51, 128  ;;  %v2496_v40 = vld [vmem:[#allocation3 + $0x70] ss:$8 sps:$4 sm:$0xff]   ;;  %v505_v43 = vld [vmem:[%s3003_s17 + $0x88] sm:$0xff]  ;;  %v1146_v6 = vld [vmem:[%s3022_s9] sm:$0xff] }
  0xb3   : > { %462 = vxpose.xlu0.c.b16.cont [7/8] %v452_v55, 128  ;;  %v507_v44 = vld [vmem:[%s3003_s17 + $0x98] sm:$0xff]  ;;  %v425_v45 = vld [vmem:[%s3017_s20 + $0x88] sm:$0xff]  ;;  %v1148_v5 = vld [vmem:[%s3022_s9 + $0x10] sm:$0xff] }
  0xb4   : > { %689 = vmatpush1.bf16.msra.mxu1 %v2477_v10  ;;  %962 = vmatpush1.bf16.msra.mxu0 %v2478_v11  ;;  %v427_v46 = vld [vmem:[%s3017_s20 + $0x98] sm:$0xff]  ;;  %v529_v47 = vpack.c.bf16 %v507_v44, %v505_v43  ;;  %v509_v49 = vld [vmem:[%s3003_s17 + $0xa8] sm:$0xff]  ;;  %v1178_v10 = vmul.f32 0.00390625, %v1146_v6  ;;  %v1150_v13 = vld [vmem:[%s3022_s9 + $0x20] sm:$0xff] }
  0xb5   : > { %690 = vmatprep.subr.bf16.mxu1 %v2479_v17  ;;  %963 = vmatprep.subr.bf16.mxu0 %v2481_v19  ;;  %v449_v48 = vpack.c.bf16 %v427_v46, %v425_v45  ;;  %v511_v50 = vld [vmem:[%s3003_s17 + $0xb8] sm:$0xff]  ;;  %v429_v51 = vld [vmem:[%s3017_s20 + $0xa8] sm:$0xff]  ;;  %v1182_v15 = vmul.f32 0.00390625, %v1150_v13  ;;  %v1152_v19 = vld [vmem:[%s3022_s9 + $0x30] sm:$0xff] }
  0xb6   : > { %543 = vxpose.xlu1.c.b16.end [8/8] %v534_v61, 128  ;;  %v431_v52 = vld [vmem:[%s3017_s20 + $0xb8] sm:$0xff]  ;;  %v531_v53 = vpack.c.bf16 %v511_v50, %v509_v49  ;;  %v513_v55 = vld [vmem:[%s3003_s17 + $0xc8] sm:$0xff] }
  0xb7   : > { %463 = vxpose.xlu0.c.b16.end [8/8] %v454_v1, 128  ;;  %v451_v54 = vpack.c.bf16 %v431_v52, %v429_v51  ;;  %v515_v56 = vld [vmem:[%s3003_s17 + $0xd8] sm:$0xff]  ;;  %v433_v57 = vld [vmem:[%s3017_s20 + $0xc8] sm:$0xff]  ;;  %v1156_v27 = vld [vmem:[%s3022_s9 + $0x50] sm:$0xff] }
  0xb8   : > { %691 = vmatpush1.bf16.msra.mxu1 %v2483_v20  ;;  %964 = vmatpush1.bf16.msra.mxu0 %v2484_v21  ;;  %v435_v58 = vld [vmem:[%s3017_s20 + $0xd8] sm:$0xff]  ;;  %v533_v59 = vpack.c.bf16 %v515_v56, %v513_v55  ;;  %v517_v61 = vld [vmem:[%s3003_s17 + $0xe8] sm:$0xff]  ;;  %v1184_v20 = vmul.f32 0.00390625, %v1152_v19  ;;  %v1154_v21 = vld [vmem:[%s3022_s9 + $0x40] sm:$0xff]  ;;  %v1188_v28 = vmul.f32 0.00390625, %v1156_v27 }
  0xb9   : > { %692 = vmatprep.subr.bf16.mxu1 %v2485_v29  ;;  %965 = vmatprep.subr.bf16.mxu0 %v2487_v33  ;;  %v453_v60 = vpack.c.bf16 %v435_v58, %v433_v57  ;;  %v519_v62 = vld [vmem:[%s3003_s17 + $0xf8] sm:$0xff]  ;;  %v437_v63 = vld [vmem:[%s3017_s20 + $0xe8] sm:$0xff]  ;;  %v1186_v23 = vmul.f32 0.00390625, %v1154_v21  ;;  %v1168_v51 = vld [vmem:[%s3022_s9 + $0xb0] sm:$0xff] }
  0xba   : > { %552 = vxpose.xlu1.c.b16.start [1/8] %v521_v7, 128  ;;  %v439_v0 = vld [vmem:[%s3017_s20 + $0xf8] sm:$0xff]  ;;  %v535_v1 = vpack.c.bf16 %v519_v62, %v517_v61  ;;  %v1147_v3 = vld [vmem:[%s3022_s9 + $0x8] sm:$0xff]  ;;  %v1180_v7 = vmul.f32 0.00390625, %v1148_v5  ;;  %v1158_v29 = vld [vmem:[%s3022_s9 + $0x60] sm:$0xff]  ;;  %v1200_v56 = vmul.f32 0.00390625, %v1168_v51 }
  0xbb   : > { %472 = vxpose.xlu0.c.b16.start [1/8] %v441_v12, 128  ;;  %v455_v2 = vpack.c.bf16 %v439_v0, %v437_v63  ;;  %v1179_v4 = vmul.f32 0.00390625, %v1147_v3  ;;  %v1149_v9 = vld [vmem:[%s3022_s9 + $0x18] sm:$0xff]  ;;  %v1151_v12 = vld [vmem:[%s3022_s9 + $0x28] sm:$0xff]  ;;  %v1190_v31 = vmul.f32 0.00390625, %v1158_v29  ;;  %v1170_v57 = vld [vmem:[%s3022_s9 + $0xc0] sm:$0xff] }
  0xbc   : > { %693 = vmatpush1.bf16.msra.mxu1 %v2489_v34  ;;  %966 = vmatpush1.bf16.msra.mxu0 %v2490_v35  ;;  %v1181_v11 = vmul.f32 0.00390625, %v1149_v9  ;;  %v1183_v14 = vmul.f32 0.00390625, %v1151_v12  ;;  %v1153_v16 = vld [vmem:[%s3022_s9 + $0x38] sm:$0xff]  ;;  %v1159_v26 = vld [vmem:[%s3022_s9 + $0x68] sm:$0xff]  ;;  %v1160_v35 = vld [vmem:[%s3022_s9 + $0x70] sm:$0xff] }
  0xbd   : > { %694 = vmatprep.subr.bf16.mxu1 %v2491_v37  ;;  %967 = vmatprep.subr.bf16.mxu0 %v2493_v38  ;;  %v1185_v17 = vmul.f32 0.00390625, %v1153_v16  ;;  %v1157_v24 = vld [vmem:[%s3022_s9 + $0x58] sm:$0xff]  ;;  %v1163_v34 = vld [vmem:[%s3022_s9 + $0x88] sm:$0xff]  ;;  %v1162_v37 = vld [vmem:[%s3022_s9 + $0x80] sm:$0xff] }
  0xbe   : > { %553 = vxpose.xlu1.c.b16.cont [2/8] %v523_v18, 128  ;;  %v1155_v18 = vld [vmem:[%s3022_s9 + $0x48] sm:$0xff]  ;;  %v1189_v25 = vmul.f32 0.00390625, %v1157_v24  ;;  %v1161_v32 = vld [vmem:[%s3022_s9 + $0x78] sm:$0xff]  ;;  %v1195_v38 = vmul.f32 0.00390625, %v1163_v34  ;;  %v1172_v61 = vld [vmem:[%s3022_s9 + $0xd0] sm:$0xff] }
  0xbf   : > { %473 = vxpose.xlu0.c.b16.cont [2/8] %v443_v22, 128  ;;  %v1187_v22 = vmul.f32 0.00390625, %v1155_v18  ;;  %v1193_v33 = vmul.f32 0.00390625, %v1161_v32  ;;  %v1167_v44 = vld [vmem:[%s3022_s9 + $0xa8] sm:$0xff]  ;;  %v1169_v49 = vld [vmem:[%s3022_s9 + $0xb8] sm:$0xff]  ;;  %v1174_v3 = vld [vmem:[%s3022_s9 + $0xe0] sm:$0xff] }
  0xc0   : > { %695 = vmatpush1.bf16.msra.mxu1 %v2495_v39  ;;  %968 = vmatpush1.bf16.msra.mxu0 %v2496_v40  ;;  %v1194_v39 = vmul.f32 0.00390625, %v1162_v37  ;;  %v1165_v40 = vld [vmem:[%s3022_s9 + $0x98] sm:$0xff]  ;;  %v1171_v55 = vld [vmem:[%s3022_s9 + $0xc8] sm:$0xff]  ;;  %v1206_v6 = vmul.f32 0.00390625, %v1174_v3 }
  0xc1   : > { %v1203_v58 = vmul.f32 0.00390625, %v1171_v55  ;;  %v1177_v5 = vld [vmem:[%s3022_s9 + $0xf8] sm:$0xff] }
  0xc2   : > { %554 = vxpose.xlu1.c.b16.cont [3/8] %v525_v30, 128  ;;  %v1191_v30 = vmul.f32 0.00390625, %v1159_v26 }
  0xc3   : > { %474 = vxpose.xlu0.c.b16.cont [3/8] %v445_v36, 128  ;;  %v1192_v36 = vmul.f32 0.00390625, %v1160_v35 }
  0xc6   : > { %555 = vxpose.xlu1.c.b16.cont [4/8] %v527_v41, 128  ;;  %v1164_v41 = vld [vmem:[%s3022_s9 + $0x90] sm:$0xff] }
  0xc7   : > { %475 = vxpose.xlu0.c.b16.cont [4/8] %v447_v42, 128  ;;  %v1197_v42 = vmul.f32 0.00390625, %v1165_v40  ;;  %v1196_v45 = vmul.f32 0.00390625, %v1164_v41 }
  0xca   : > { %556 = vxpose.xlu1.c.b16.cont [5/8] %v529_v47, 128  ;;  %v1166_v47 = vld [vmem:[%s3022_s9 + $0xa0] sm:$0xff] }
  0xcb   : > { %476 = vxpose.xlu0.c.b16.cont [5/8] %v449_v48, 128  ;;  %v1199_v48 = vmul.f32 0.00390625, %v1167_v44  ;;  %v1198_v50 = vmul.f32 0.00390625, %v1166_v47 }
  0xce   : > { %557 = vxpose.xlu1.c.b16.cont [6/8] %v531_v53, 128 }
  0xcf   : > { %477 = vxpose.xlu0.c.b16.cont [6/8] %v451_v54, 128  ;;  %v1201_v54 = vmul.f32 0.00390625, %v1169_v49 }
  0xd2   : > { %558 = vxpose.xlu1.c.b16.cont [7/8] %v533_v59, 128  ;;  %v1173_v59 = vld [vmem:[%s3022_s9 + $0xd8] sm:$0xff] }
  0xd3   : > { %478 = vxpose.xlu0.c.b16.cont [7/8] %v453_v60, 128  ;;  %v1202_v60 = vmul.f32 0.00390625, %v1170_v57  ;;  %v1205_v0 = vmul.f32 0.00390625, %v1173_v59 }
  0xd6   : > { %559 = vxpose.xlu1.c.b16.end [8/8] %v535_v1, 128  ;;  %v1175_v1 = vld [vmem:[%s3022_s9 + $0xe8] sm:$0xff] }
  0xd7   : > { %479 = vxpose.xlu0.c.b16.end [8/8] %v455_v2, 128  ;;  %v1204_v2 = vmul.f32 0.00390625, %v1172_v61 }
  0xda   : > { %2448 = vset.pattern.permute.xlu1 %v2748_v8 }
  0xdb   : > { %1217 = vperm.xlu1 %2448, %v1179_v4   ;;  %v1207_v4 = vmul.f32 0.00390625, %v1175_v1 }
  0xdf   : > { %1222 = vperm.xlu1 %2448, %v1180_v7   ;;  %v1176_v7 = vld [vmem:[%s3022_s9 + $0xf0] sm:$0xff] }
  0xe0   : > { %2447 = vset.pattern.permute.xlu0 %v2748_v8  ;;  %v1208_v12 = vmul.f32 0.00390625, %v1176_v7 }
  0xe1   : > { %1212 = vperm.xlu0 %2447, %v1178_v10  }
  0xe3   : > { %1227 = vperm.xlu1 %2448, %v1181_v11   ;;  %v1209_v11 = vmul.f32 0.00390625, %v1177_v5 }
  0xe5   : > { %1232 = vperm.xlu0 %2447, %v1182_v15  }
  0xe7   : > { %1237 = vperm.xlu1 %2448, %v1183_v14  }
  0xe9   : > { %1242 = vperm.xlu0 %2447, %v1184_v20  }
  0xeb   : > { %1247 = vperm.xlu1 %2448, %v1185_v17  }
  0xed   : > { %1252 = vperm.xlu0 %2447, %v1186_v23  }
  0xef   : > { %1257 = vperm.xlu1 %2448, %v1187_v22  }
  0xf1   : > { %1262 = vperm.xlu0 %2447, %v1188_v28  }
  0xf3   : > { %1267 = vperm.xlu1 %2448, %v1189_v25  }
  0xf5   : > { %1272 = vperm.xlu0 %2447, %v1190_v31  }
  0xf7   : > { %1277 = vperm.xlu1 %2448, %v1191_v30  }
  0xf9   : > { %1282 = vperm.xlu0 %2447, %v1192_v36  }
  0xfb   : > { %1287 = vperm.xlu1 %2448, %v1193_v33  }
  0xfd   : > { %1292 = vperm.xlu0 %2447, %v1194_v39  }
  0xff   : > { %1297 = vperm.xlu1 %2448, %v1195_v38  }
 0x100   : > { %v544_v43 = vpop.trf.xlu1 }
 0x101   : > { %v464_v46 = vpop.trf.xlu0  ;;  %713 = vmatmul.mubr.bf16.vlgmr.msra.gmra.mrb[0].mxu1 %v544_v43  ;;  %1302 = vperm.xlu0 %2447, %v1196_v45  }
 0x102   : > { %986 = vmatmul.mubr.bf16.vlgmr.msra.gmra.mrb[0].mxu0 %v464_v46  ;;  %722 = vmatprep.mubr.bf16.mxu1 %v2748_v8 }
 0x103   : > { %995 = vmatprep.mubr.bf16.mxu0 %v2748_v8  ;;  %1307 = vperm.xlu1 %2448, %v1197_v42  }
 0x104   : > { %v545_v52 = vpop.trf.xlu1 }
 0x105   : > { %v465_v53 = vpop.trf.xlu0  ;;  %1312 = vperm.xlu0 %2447, %v1198_v50  }
 0x107   : > { %1317 = vperm.xlu1 %2448, %v1199_v48  }
 0x108   : > { %v546_v62 = vpop.trf.xlu1 }
 0x109   : > { %723 = vmatmul.mubr.bf16.gmra.mrb[4].mxu1 %v545_v52  ;;  %1322 = vperm.xlu0 %2447, %v1200_v56   ;;  %v466_v63 = vpop.trf.xlu0 }
 0x10a   : > { %996 = vmatmul.mubr.bf16.gmra.mrb[4].mxu0 %v465_v53  ;;  %732 = vmatprep.mubr.bf16.mxu1 %v2748_v8 }
 0x10b   : > { %1005 = vmatprep.mubr.bf16.mxu0 %v2748_v8  ;;  %1327 = vperm.xlu1 %2448, %v1201_v54  }
 0x10c   : > { %v547_v9 = vpop.trf.xlu1 }
 0x10d   : > { %1332 = vperm.xlu0 %2447, %v1202_v60   ;;  %v467_v10 = vpop.trf.xlu0 }
 0x10f   : > { %1337 = vperm.xlu1 %2448, %v1203_v58  }
 0x110   : > { %v548_v13 = vpop.trf.xlu1 }
 0x111   : > { %733 = vmatmul.mubr.bf16.gmra.mrb[8].mxu1 %v546_v62  ;;  %1342 = vperm.xlu0 %2447, %v1204_v2   ;;  %v468_v14 = vpop.trf.xlu0 }
 0x112   : > { %1006 = vmatmul.mubr.bf16.gmra.mrb[8].mxu0 %v466_v63  ;;  %742 = vmatprep.mubr.bf16.mxu1 %v2748_v8 }
 0x113   : > { %1015 = vmatprep.mubr.bf16.mxu0 %v2748_v8  ;;  %1347 = vperm.xlu1 %2448, %v1205_v0  }
 0x114   : > { %v549_v15 = vpop.trf.xlu1 }
 0x115   : > { %1352 = vperm.xlu0 %2447, %v1206_v6   ;;  %v469_v16 = vpop.trf.xlu0 }
 0x117   : > { %1357 = vperm.xlu1 %2448, %v1207_v4  }
 0x118   : > { %v550_v17 = vpop.trf.xlu1 }
 0x119   : > { %743 = vmatmul.mubr.bf16.gmra.mrb[12].mxu1 %v547_v9  ;;  %1362 = vperm.xlu0 %2447, %v1208_v12   ;;  %v470_v18 = vpop.trf.xlu0 }
 0x11a   : > { %1016 = vmatmul.mubr.bf16.gmra.mrb[12].mxu0 %v467_v10  ;;  %752 = vmatprep.mubr.bf16.mxu1 %v2748_v8 }
 0x11b   : > { %1025 = vmatprep.mubr.bf16.mxu0 %v2748_v8  ;;  %1367 = vperm.xlu1 %2448, %v1209_v11  }
 0x11c   : > { %v551_v19 = vpop.trf.xlu1 }
 0x11d   : > { %v471_v20 = vpop.trf.xlu0 }
 0x120   : > { %v560_v21 = vpop.trf.xlu1 }
 0x121   : > { %753 = vmatmul.mubr.bf16.gmra.mrb[16].mxu1 %v548_v13  ;;  %v480_v22 = vpop.trf.xlu0 }
 0x122   : > { %1026 = vmatmul.mubr.bf16.gmra.mrb[16].mxu0 %v468_v14  ;;  %762 = vmatprep.mubr.bf16.mxu1 %v2748_v8 }
 0x123   : > { %1035 = vmatprep.mubr.bf16.mxu0 %v2748_v8 }
 0x124   : > { %v561_v23 = vpop.trf.xlu1 }
 0x125   : > { %v481_v24 = vpop.trf.xlu0 }
 0x128   : > { %v562_v25 = vpop.trf.xlu1 }
 0x129   : > { %763 = vmatmul.mubr.bf16.gmra.mrb[20].mxu1 %v549_v15  ;;  %v482_v26 = vpop.trf.xlu0 }
 0x12a   : > { %1036 = vmatmul.mubr.bf16.gmra.mrb[20].mxu0 %v469_v16  ;;  %772 = vmatprep.mubr.bf16.mxu1 %v2748_v8 }
 0x12b   : > { %1045 = vmatprep.mubr.bf16.mxu0 %v2748_v8 }
 0x12c   : > { %v563_v27 = vpop.trf.xlu1 }
 0x12d   : > { %v483_v28 = vpop.trf.xlu0 }
 0x130   : > { %v564_v29 = vpop.trf.xlu1 }
 0x131   : > { %773 = vmatmul.mubr.bf16.gmra.mrb[24].mxu1 %v550_v17  ;;  %v484_v30 = vpop.trf.xlu0 }
 0x132   : > { %1046 = vmatmul.mubr.bf16.gmra.mrb[24].mxu0 %v470_v18  ;;  %782 = vmatprep.mubr.bf16.mxu1 %v2748_v8 }
 0x133   : > { %1055 = vmatprep.mubr.bf16.mxu0 %v2748_v8 }
 0x134   : > { %v565_v31 = vpop.trf.xlu1 }
 0x135   : > { %v485_v32 = vpop.trf.xlu0 }
 0x138   : > { %v566_v33 = vpop.trf.xlu1 }
 0x139   : > { %783 = vmatmul.mubr.bf16.gmra.mrb[28].mxu1 %v551_v19  ;;  %v486_v34 = vpop.trf.xlu0 }
 0x13a   : > { %1056 = vmatmul.mubr.bf16.gmra.mrb[28].mxu0 %v471_v20  ;;  %792 = vmatprep.mubr.bf16.mxu1 %v2748_v8 }
 0x13b   : > { %1065 = vmatprep.mubr.bf16.mxu0 %v2748_v8 }
 0x13c   : > { %v567_v35 = vpop.trf.xlu1 }
 0x13d   : > { %v487_v36 = vpop.trf.xlu0 }
 0x141   : > { %793 = vmatmul.mubr.bf16.gmra.mrb[32].mxu1 %v560_v21 }
 0x142   : > { %1066 = vmatmul.mubr.bf16.gmra.mrb[32].mxu0 %v480_v22  ;;  %802 = vmatprep.mubr.bf16.mxu1 %v2748_v8 }
 0x143   : > { %1075 = vmatprep.mubr.bf16.mxu0 %v2748_v8 }
 0x149   : > { %803 = vmatmul.mubr.bf16.gmra.mrb[36].mxu1 %v561_v23 }
 0x14a   : > { %1076 = vmatmul.mubr.bf16.gmra.mrb[36].mxu0 %v481_v24  ;;  %812 = vmatprep.mubr.bf16.mxu1 %v2748_v8 }
 0x14b   : > { %1085 = vmatprep.mubr.bf16.mxu0 %v2748_v8 }
 0x151   : > { %813 = vmatmul.mubr.bf16.gmra.mrb[40].mxu1 %v562_v25 }
 0x152   : > { %1086 = vmatmul.mubr.bf16.gmra.mrb[40].mxu0 %v482_v26  ;;  %822 = vmatprep.mubr.bf16.mxu1 %v2748_v8 }
 0x153   : > { %1095 = vmatprep.mubr.bf16.mxu0 %v2748_v8 }
 0x159   : > { %823 = vmatmul.mubr.bf16.gmra.mrb[44].mxu1 %v563_v27 }
 0x15a   : > { %1096 = vmatmul.mubr.bf16.gmra.mrb[44].mxu0 %v483_v28  ;;  %832 = vmatprep.mubr.bf16.mxu1 %v2748_v8  ;;  %v1218_v37 = vpop.permute.xlu1 %1217 }
 0x15b   : > { %1105 = vmatprep.mubr.bf16.mxu0 %v2748_v8 }
 0x15e   : > { %v1223_v54 = vpop.permute.xlu1 %1222 }
 0x160   : > { %v1213_v39 = vpop.permute.xlu0 %1212 }
 0x161   : > { %833 = vmatmul.mubr.bf16.gmra.mrb[48].mxu1 %v564_v29 }
 0x162   : > { %1106 = vmatmul.mubr.bf16.gmra.mrb[48].mxu0 %v484_v30  ;;  %842 = vmatprep.mubr.bf16.mxu1 %v2748_v8  ;;  %v1228_v14 = vpop.permute.xlu1 %1227 }
 0x163   : > { %1115 = vmatprep.mubr.bf16.mxu0 %v2748_v8 }
 0x169   : > { %843 = vmatmul.mubr.bf16.gmra.mrb[52].mxu1 %v565_v31 }
 0x16a   : > { %1116 = vmatmul.mubr.bf16.gmra.mrb[52].mxu0 %v485_v32  ;;  %852 = vmatprep.mubr.bf16.mxu1 %v2748_v8 }
 0x16b   : > { %1125 = vmatprep.mubr.bf16.mxu0 %v2748_v8 }
 0x171   : > { %853 = vmatmul.mubr.bf16.gmra.mrb[56].mxu1 %v566_v33  ;;  %v1233_v33 = vpop.permute.xlu0 %1232 }
 0x172   : > { %1126 = vmatmul.mubr.bf16.gmra.mrb[56].mxu0 %v486_v34  ;;  %862 = vmatprep.mubr.bf16.mxu1 %v2748_v8 }
 0x173   : > { %1135 = vmatprep.mubr.bf16.mxu0 %v2748_v8  ;;  %v1597_v8 = vld [vmem:[#allocation2] sm:$0x1] }
 0x174   : > { %v1598_v57 = vsel %vm1466_vm0, %v1597_v8, 0.0 }
 0x179   : > { %863 = vmatmul.mubr.bf16.gmra.mrb[60].mxu1 %v567_v35 }
 0x17a   : > { %1136 = vmatmul.mubr.bf16.gmra.mrb[60].mxu0 %v487_v36 }
 0x1d4   : > { %v714_v38 = vpop.f32.mrb[0].mxu1 }
 0x1d5   : > { %v987_v40 = vpop.f32.mrb[0].mxu0  ;;  %v716_v41 = vpop.f32.mrb[1].mxu1 }
 0x1d6   : > { %v988_v42 = vadd.f32 %v987_v40, %v714_v38  ;;  %v989_v43 = vpop.f32.mrb[1].mxu0  ;;  %v718_v44 = vpop.f32.mrb[2].mxu1 }
 0x1d7   : > { %v990_v45 = vadd.f32 %v989_v43, %v716_v41  ;;  %v991_v46 = vpop.f32.mrb[2].mxu0  ;;  %v720_v47 = vpop.f32.mrb[3].mxu1 }
 0x1d8   : > { %v992_v48 = vadd.f32 %v991_v46, %v718_v44  ;;  %v993_v49 = vpop.f32.mrb[3].mxu0  ;;  %v1370_v55 = vadd.f32 %v1213_v39, %v988_v42  ;;  %v1238_v38 = vpop.permute.xlu1 %1237 }
 0x1d9   : > { %v1371_v50 = vadd.f32 %v1213_v39, %v990_v45  ;;  %v994_v51 = vadd.f32 %v993_v49, %v720_v47 }
 0x1da   : > { %v1372_v62 = vadd.f32 %v1218_v37, %v992_v48 }
 0x1db   : > { %v1467_v52 = vrot.slane %v1371_v50, 7  ;;  %v1373_v53 = vadd.f32 %v1218_v37, %v994_v51 }
 0x1dc   : > { %v724_v56 = vpop.f32.mrb[4].mxu1 }
 0x1dd   : > { %v1563_v58 = vsel %vm1466_vm0, 0.0, %v1467_v52  ;;  %v1468_v59 = vrot.slane %v1373_v53, 7  ;;  %v997_v60 = vpop.f32.mrb[4].mxu0  ;;  %v726_v61 = vpop.f32.mrb[5].mxu1 }
 0x1de   : > { %v1564_v63 = vadd.f32 %v1563_v58, %v1370_v55  ;;  %v998_v0 = vadd.f32 %v997_v60, %v724_v56  ;;  %v999_v1 = vpop.f32.mrb[5].mxu0  ;;  %v728_v2 = vpop.f32.mrb[6].mxu1 }
 0x1df   : > { %v1469_v3 = vsel %vm1466_vm0, %v1467_v52, %v1468_v59  ;;  %v1000_v4 = vadd.f32 %v999_v1, %v726_v61  ;;  %v1001_v5 = vpop.f32.mrb[6].mxu0  ;;  %v730_v6 = vpop.f32.mrb[7].mxu1 }
 0x1e0   : > { %v1599_v7 = vadd.f32 %v1598_v57, %v1564_v63  ;;  %v1565_v9 = vadd.f32 %v1469_v3, %v1372_v62  ;;  %v1002_v10 = vadd.f32 %v1001_v5, %v728_v2  ;;  %v1003_v11 = vpop.f32.mrb[7].mxu0  ;;  %v1374_v17 = vadd.f32 %v1223_v54, %v998_v0  ;;  %v1243_v56 = vpop.permute.xlu0 %1242 }
 0x1e1   : > { %v1375_v12 = vadd.f32 %v1223_v54, %v1000_v4  ;;  %v1004_v13 = vadd.f32 %v1003_v11, %v730_v6  ;;  %v1248_v61 = vpop.permute.xlu1 %1247 }
 0x1e2   : > { %1632 = vst [vmem:[%s3024_s15] sm:$0xff] %v1599_v7  ;;  %1633 = vst [vmem:[%s3024_s15 + $0x8] sm:$0xff] %v1565_v9  ;;  %v1376_v24 = vadd.f32 %v1228_v14, %v1002_v10 }
 0x1e3   : > { %v1470_v15 = vrot.slane %v1375_v12, 7  ;;  %v1377_v16 = vadd.f32 %v1228_v14, %v1004_v13 }
 0x1e4   : > { %v734_v18 = vpop.f32.mrb[8].mxu1 }
 0x1e5   : > { %v1471_v19 = vsel %vm1466_vm0, %v1468_v59, %v1470_v15  ;;  %v1472_v20 = vrot.slane %v1377_v16, 7  ;;  %v1007_v21 = vpop.f32.mrb[8].mxu0  ;;  %v736_v22 = vpop.f32.mrb[9].mxu1 }
 0x1e6   : > { %v1566_v23 = vadd.f32 %v1471_v19, %v1374_v17  ;;  %v1008_v25 = vadd.f32 %v1007_v21, %v734_v18  ;;  %v1009_v26 = vpop.f32.mrb[9].mxu0  ;;  %v738_v27 = vpop.f32.mrb[10].mxu1 }
 0x1e7   : > { %v1473_v28 = vsel %vm1466_vm0, %v1470_v15, %v1472_v20  ;;  %v1010_v29 = vadd.f32 %v1009_v26, %v736_v22  ;;  %v1011_v30 = vpop.f32.mrb[10].mxu0  ;;  %v740_v31 = vpop.f32.mrb[11].mxu1 }
 0x1e8   : > { %1634 = vst [vmem:[%s3024_s15 + $0x10] sm:$0xff] %v1566_v23  ;;  %v1567_v32 = vadd.f32 %v1473_v28, %v1376_v24  ;;  %v1012_v34 = vadd.f32 %v1011_v30, %v738_v27  ;;  %v1013_v35 = vpop.f32.mrb[11].mxu0  ;;  %v1378_v41 = vadd.f32 %v1233_v33, %v1008_v25  ;;  %v1253_v16 = vpop.permute.xlu0 %1252 }
 0x1e9   : > { %v1379_v36 = vadd.f32 %v1233_v33, %v1010_v29  ;;  %v1014_v37 = vadd.f32 %v1013_v35, %v740_v31  ;;  %v1258_v22 = vpop.permute.xlu1 %1257 }
 0x1ea   : > { %1635 = vst [vmem:[%s3024_s15 + $0x18] sm:$0xff] %v1567_v32  ;;  %v1380_v48 = vadd.f32 %v1238_v38, %v1012_v34 }
 0x1eb   : > { %v1474_v39 = vrot.slane %v1379_v36, 7  ;;  %v1381_v40 = vadd.f32 %v1238_v38, %v1014_v37 }
 0x1ec   : > { %v744_v42 = vpop.f32.mrb[12].mxu1 }
 0x1ed   : > { %v1475_v43 = vsel %vm1466_vm0, %v1472_v20, %v1474_v39  ;;  %v1476_v44 = vrot.slane %v1381_v40, 7  ;;  %v1017_v45 = vpop.f32.mrb[12].mxu0  ;;  %v746_v46 = vpop.f32.mrb[13].mxu1 }
 0x1ee   : > { %v1568_v47 = vadd.f32 %v1475_v43, %v1378_v41  ;;  %v1018_v49 = vadd.f32 %v1017_v45, %v744_v42  ;;  %v1019_v50 = vpop.f32.mrb[13].mxu0  ;;  %v748_v51 = vpop.f32.mrb[14].mxu1 }
 0x1ef   : > { %v1477_v8 = vsel %vm1466_vm0, %v1474_v39, %v1476_v44  ;;  %v1020_v52 = vadd.f32 %v1019_v50, %v746_v46  ;;  %v1021_v53 = vpop.f32.mrb[14].mxu0  ;;  %v750_v54 = vpop.f32.mrb[15].mxu1 }
 0x1f0   : > { %1636 = vst [vmem:[%s3024_s15 + $0x20] sm:$0xff] %v1568_v47  ;;  %v1569_v55 = vadd.f32 %v1477_v8, %v1380_v48  ;;  %v1022_v57 = vadd.f32 %v1021_v53, %v748_v51  ;;  %v1023_v58 = vpop.f32.mrb[15].mxu0  ;;  %v1382_v0 = vadd.f32 %v1243_v56, %v1018_v49  ;;  %v1263_v40 = vpop.permute.xlu0 %1262 }
 0x1f1   : > { %v1383_v59 = vadd.f32 %v1243_v56, %v1020_v52  ;;  %v1024_v60 = vadd.f32 %v1023_v58, %v750_v54  ;;  %v1268_v46 = vpop.permute.xlu1 %1267 }
 0x1f2   : > { %1637 = vst [vmem:[%s3024_s15 + $0x28] sm:$0xff] %v1569_v55  ;;  %v1384_v7 = vadd.f32 %v1248_v61, %v1022_v57 }
 0x1f3   : > { %v1478_v62 = vrot.slane %v1383_v59, 7  ;;  %v1385_v63 = vadd.f32 %v1248_v61, %v1024_v60 }
 0x1f4   : > { %v754_v1 = vpop.f32.mrb[16].mxu1 }
 0x1f5   : > { %v1479_v2 = vsel %vm1466_vm0, %v1476_v44, %v1478_v62  ;;  %v1480_v3 = vrot.slane %v1385_v63, 7  ;;  %v1027_v4 = vpop.f32.mrb[16].mxu0  ;;  %v756_v5 = vpop.f32.mrb[17].mxu1 }
 0x1f6   : > { %v1570_v6 = vadd.f32 %v1479_v2, %v1382_v0  ;;  %v1028_v9 = vadd.f32 %v1027_v4, %v754_v1  ;;  %v1029_v10 = vpop.f32.mrb[17].mxu0  ;;  %v758_v11 = vpop.f32.mrb[18].mxu1 }
 0x1f7   : > { %v1481_v12 = vsel %vm1466_vm0, %v1478_v62, %v1480_v3  ;;  %v1030_v13 = vadd.f32 %v1029_v10, %v756_v5  ;;  %v1031_v14 = vpop.f32.mrb[18].mxu0  ;;  %v760_v15 = vpop.f32.mrb[19].mxu1 }
 0x1f8   : > { %1638 = vst [vmem:[%s3024_s15 + $0x30] sm:$0xff] %v1570_v6  ;;  %v1571_v17 = vadd.f32 %v1481_v12, %v1384_v7  ;;  %v1032_v18 = vadd.f32 %v1031_v14, %v758_v11  ;;  %v1033_v19 = vpop.f32.mrb[19].mxu0  ;;  %v1386_v25 = vadd.f32 %v1253_v16, %v1028_v9  ;;  %v1273_v63 = vpop.permute.xlu0 %1272 }
 0x1f9   : > { %v1387_v20 = vadd.f32 %v1253_v16, %v1030_v13  ;;  %v1034_v21 = vadd.f32 %v1033_v19, %v760_v15  ;;  %v1278_v5 = vpop.permute.xlu1 %1277 }
 0x1fa   : > { %1639 = vst [vmem:[%s3024_s15 + $0x38] sm:$0xff] %v1571_v17  ;;  %v1388_v32 = vadd.f32 %v1258_v22, %v1032_v18 }
 0x1fb   : > { %v1482_v23 = vrot.slane %v1387_v20, 7  ;;  %v1389_v24 = vadd.f32 %v1258_v22, %v1034_v21 }
 0x1fc   : > { %v764_v26 = vpop.f32.mrb[20].mxu1 }
 0x1fd   : > { %v1483_v27 = vsel %vm1466_vm0, %v1480_v3, %v1482_v23  ;;  %v1484_v28 = vrot.slane %v1389_v24, 7  ;;  %v1037_v29 = vpop.f32.mrb[20].mxu0  ;;  %v766_v30 = vpop.f32.mrb[21].mxu1 }
 0x1fe   : > { %v1572_v31 = vadd.f32 %v1483_v27, %v1386_v25  ;;  %v1038_v33 = vadd.f32 %v1037_v29, %v764_v26  ;;  %v1039_v34 = vpop.f32.mrb[21].mxu0  ;;  %v768_v35 = vpop.f32.mrb[22].mxu1 }
 0x1ff   : > { %v1485_v36 = vsel %vm1466_vm0, %v1482_v23, %v1484_v28  ;;  %v1040_v37 = vadd.f32 %v1039_v34, %v766_v30  ;;  %v1041_v38 = vpop.f32.mrb[22].mxu0  ;;  %v770_v39 = vpop.f32.mrb[23].mxu1 }
 0x200   : > { %1640 = vst [vmem:[%s3024_s15 + $0x40] sm:$0xff] %v1572_v31  ;;  %v1573_v41 = vadd.f32 %v1485_v36, %v1388_v32  ;;  %v1042_v42 = vadd.f32 %v1041_v38, %v768_v35  ;;  %v1043_v43 = vpop.f32.mrb[23].mxu0  ;;  %v1390_v49 = vadd.f32 %v1263_v40, %v1038_v33  ;;  %v1283_v24 = vpop.permute.xlu0 %1282 }
 0x201   : > { %v1391_v44 = vadd.f32 %v1263_v40, %v1040_v37  ;;  %v1044_v45 = vadd.f32 %v1043_v43, %v770_v39  ;;  %v1288_v30 = vpop.permute.xlu1 %1287 }
 0x202   : > { %1641 = vst [vmem:[%s3024_s15 + $0x48] sm:$0xff] %v1573_v41  ;;  %v1392_v55 = vadd.f32 %v1268_v46, %v1042_v42 }
 0x203   : > { %v1486_v47 = vrot.slane %v1391_v44, 7  ;;  %v1393_v48 = vadd.f32 %v1268_v46, %v1044_v45 }
 0x204   : > { %v774_v50 = vpop.f32.mrb[24].mxu1 }
 0x205   : > { %v1487_v51 = vsel %vm1466_vm0, %v1484_v28, %v1486_v47  ;;  %v1488_v8 = vrot.slane %v1393_v48, 7  ;;  %v1047_v52 = vpop.f32.mrb[24].mxu0  ;;  %v776_v53 = vpop.f32.mrb[25].mxu1 }
 0x206   : > { %v1574_v54 = vadd.f32 %v1487_v51, %v1390_v49  ;;  %v1048_v56 = vadd.f32 %v1047_v52, %v774_v50  ;;  %v1049_v57 = vpop.f32.mrb[25].mxu0  ;;  %v778_v58 = vpop.f32.mrb[26].mxu1 }
 0x207   : > { %v1489_v59 = vsel %vm1466_vm0, %v1486_v47, %v1488_v8  ;;  %v1050_v60 = vadd.f32 %v1049_v57, %v776_v53  ;;  %v1051_v61 = vpop.f32.mrb[26].mxu0  ;;  %v780_v62 = vpop.f32.mrb[27].mxu1 }
 0x208   : > { %1642 = vst [vmem:[%s3024_s15 + $0x50] sm:$0xff] %v1574_v54  ;;  %v1575_v0 = vadd.f32 %v1489_v59, %v1392_v55  ;;  %v1052_v1 = vadd.f32 %v1051_v61, %v778_v58  ;;  %v1053_v2 = vpop.f32.mrb[27].mxu0  ;;  %v1394_v9 = vadd.f32 %v1273_v63, %v1048_v56  ;;  %v1293_v48 = vpop.permute.xlu0 %1292 }
 0x209   : > { %v1395_v3 = vadd.f32 %v1273_v63, %v1050_v60  ;;  %v1054_v4 = vadd.f32 %v1053_v2, %v780_v62  ;;  %v1298_v53 = vpop.permute.xlu1 %1297 }
 0x20a   : > { %1643 = vst [vmem:[%s3024_s15 + $0x58] sm:$0xff] %v1575_v0  ;;  %v1396_v16 = vadd.f32 %v1278_v5, %v1052_v1 }
 0x20b   : > { %v1490_v6 = vrot.slane %v1395_v3, 7  ;;  %v1397_v7 = vadd.f32 %v1278_v5, %v1054_v4 }
 0x20c   : > { %v784_v10 = vpop.f32.mrb[28].mxu1 }
 0x20d   : > { %v1491_v11 = vsel %vm1466_vm0, %v1488_v8, %v1490_v6  ;;  %v1492_v12 = vrot.slane %v1397_v7, 7  ;;  %v1057_v13 = vpop.f32.mrb[28].mxu0  ;;  %v786_v14 = vpop.f32.mrb[29].mxu1 }
 0x20e   : > { %v1576_v15 = vadd.f32 %v1491_v11, %v1394_v9  ;;  %v1058_v17 = vadd.f32 %v1057_v13, %v784_v10  ;;  %v1059_v18 = vpop.f32.mrb[29].mxu0  ;;  %v788_v19 = vpop.f32.mrb[30].mxu1 }
 0x20f   : > { %v1493_v20 = vsel %vm1466_vm0, %v1490_v6, %v1492_v12  ;;  %v1060_v21 = vadd.f32 %v1059_v18, %v786_v14  ;;  %v1061_v22 = vpop.f32.mrb[30].mxu0  ;;  %v790_v23 = vpop.f32.mrb[31].mxu1 }
 0x210   : > { %1644 = vst [vmem:[%s3024_s15 + $0x60] sm:$0xff] %v1576_v15  ;;  %v1577_v25 = vadd.f32 %v1493_v20, %v1396_v16  ;;  %v1062_v26 = vadd.f32 %v1061_v22, %v788_v19  ;;  %v1063_v27 = vpop.f32.mrb[31].mxu0  ;;  %v1398_v33 = vadd.f32 %v1283_v24, %v1058_v17  ;;  %v1303_v7 = vpop.permute.xlu0 %1302 }
 0x211   : > { %v1399_v28 = vadd.f32 %v1283_v24, %v1060_v21  ;;  %v1064_v29 = vadd.f32 %v1063_v27, %v790_v23  ;;  %v1308_v14 = vpop.permute.xlu1 %1307 }
 0x212   : > { %1645 = vst [vmem:[%s3024_s15 + $0x68] sm:$0xff] %v1577_v25  ;;  %v1400_v40 = vadd.f32 %v1288_v30, %v1062_v26 }
 0x213   : > { %v1494_v31 = vrot.slane %v1399_v28, 7  ;;  %v1401_v32 = vadd.f32 %v1288_v30, %v1064_v29 }
 0x214   : > { %v794_v34 = vpop.f32.mrb[32].mxu1 }
 0x215   : > { %v1495_v35 = vsel %vm1466_vm0, %v1492_v12, %v1494_v31  ;;  %v1496_v36 = vrot.slane %v1401_v32, 7  ;;  %v1067_v37 = vpop.f32.mrb[32].mxu0  ;;  %v796_v38 = vpop.f32.mrb[33].mxu1 }
 0x216   : > { %v1578_v39 = vadd.f32 %v1495_v35, %v1398_v33  ;;  %v1068_v41 = vadd.f32 %v1067_v37, %v794_v34  ;;  %v1069_v42 = vpop.f32.mrb[33].mxu0  ;;  %v798_v43 = vpop.f32.mrb[34].mxu1 }
 0x217   : > { %v1497_v44 = vsel %vm1466_vm0, %v1494_v31, %v1496_v36  ;;  %v1070_v45 = vadd.f32 %v1069_v42, %v796_v38  ;;  %v1071_v46 = vpop.f32.mrb[34].mxu0  ;;  %v800_v47 = vpop.f32.mrb[35].mxu1 }
 0x218   : > { %1646 = vst [vmem:[%s3024_s15 + $0x70] sm:$0xff] %v1578_v39  ;;  %v1579_v49 = vadd.f32 %v1497_v44, %v1400_v40  ;;  %v1072_v50 = vadd.f32 %v1071_v46, %v798_v43  ;;  %v1073_v51 = vpop.f32.mrb[35].mxu0  ;;  %v1402_v56 = vadd.f32 %v1293_v48, %v1068_v41  ;;  %v1313_v32 = vpop.permute.xlu0 %1312 }
 0x219   : > { %v1403_v8 = vadd.f32 %v1293_v48, %v1070_v45  ;;  %v1074_v52 = vadd.f32 %v1073_v51, %v800_v47  ;;  %v1318_v38 = vpop.permute.xlu1 %1317 }
 0x21a   : > { %1647 = vst [vmem:[%s3024_s15 + $0x78] sm:$0xff] %v1579_v49  ;;  %v1404_v63 = vadd.f32 %v1298_v53, %v1072_v50 }
 0x21b   : > { %v1498_v54 = vrot.slane %v1403_v8, 7  ;;  %v1405_v55 = vadd.f32 %v1298_v53, %v1074_v52 }
 0x21c   : > { %v804_v57 = vpop.f32.mrb[36].mxu1 }
 0x21d   : > { %v1499_v58 = vsel %vm1466_vm0, %v1496_v36, %v1498_v54  ;;  %v1500_v59 = vrot.slane %v1405_v55, 7  ;;  %v1077_v60 = vpop.f32.mrb[36].mxu0  ;;  %v806_v61 = vpop.f32.mrb[37].mxu1 }
 0x21e   : > { %v1580_v62 = vadd.f32 %v1499_v58, %v1402_v56  ;;  %v1078_v0 = vadd.f32 %v1077_v60, %v804_v57  ;;  %v1079_v1 = vpop.f32.mrb[37].mxu0  ;;  %v808_v2 = vpop.f32.mrb[38].mxu1 }
 0x21f   : > { %v1501_v3 = vsel %vm1466_vm0, %v1498_v54, %v1500_v59  ;;  %v1080_v4 = vadd.f32 %v1079_v1, %v806_v61  ;;  %v1081_v5 = vpop.f32.mrb[38].mxu0  ;;  %v810_v6 = vpop.f32.mrb[39].mxu1 }
 0x220   : > { %1648 = vst [vmem:[%s3024_s15 + $0x80] sm:$0xff] %v1580_v62  ;;  %v1581_v9 = vadd.f32 %v1501_v3, %v1404_v63  ;;  %v1082_v10 = vadd.f32 %v1081_v5, %v808_v2  ;;  %v1083_v11 = vpop.f32.mrb[39].mxu0  ;;  %v1406_v17 = vadd.f32 %v1303_v7, %v1078_v0  ;;  %v1323_v55 = vpop.permute.xlu0 %1322 }
 0x221   : > { %v1407_v12 = vadd.f32 %v1303_v7, %v1080_v4  ;;  %v1084_v13 = vadd.f32 %v1083_v11, %v810_v6  ;;  %v1328_v61 = vpop.permute.xlu1 %1327 }
 0x222   : > { %1649 = vst [vmem:[%s3024_s15 + $0x88] sm:$0xff] %v1581_v9  ;;  %v1408_v24 = vadd.f32 %v1308_v14, %v1082_v10 }
 0x223   : > { %v1502_v15 = vrot.slane %v1407_v12, 7  ;;  %v1409_v16 = vadd.f32 %v1308_v14, %v1084_v13 }
 0x224   : > { %v814_v18 = vpop.f32.mrb[40].mxu1 }
 0x225   : > { %v1503_v19 = vsel %vm1466_vm0, %v1500_v59, %v1502_v15  ;;  %v1504_v20 = vrot.slane %v1409_v16, 7  ;;  %v1087_v21 = vpop.f32.mrb[40].mxu0  ;;  %v816_v22 = vpop.f32.mrb[41].mxu1 }
 0x226   : > { %v1582_v23 = vadd.f32 %v1503_v19, %v1406_v17  ;;  %v1088_v25 = vadd.f32 %v1087_v21, %v814_v18  ;;  %v1089_v26 = vpop.f32.mrb[41].mxu0  ;;  %v818_v27 = vpop.f32.mrb[42].mxu1 }
 0x227   : > { %v1505_v28 = vsel %vm1466_vm0, %v1502_v15, %v1504_v20  ;;  %v1090_v29 = vadd.f32 %v1089_v26, %v816_v22  ;;  %v1091_v30 = vpop.f32.mrb[42].mxu0  ;;  %v820_v31 = vpop.f32.mrb[43].mxu1 }
 0x228   : > { %1650 = vst [vmem:[%s3024_s15 + $0x90] sm:$0xff] %v1582_v23  ;;  %v1583_v33 = vadd.f32 %v1505_v28, %v1408_v24  ;;  %v1092_v34 = vadd.f32 %v1091_v30, %v818_v27  ;;  %v1093_v35 = vpop.f32.mrb[43].mxu0  ;;  %v1410_v41 = vadd.f32 %v1313_v32, %v1088_v25  ;;  %v1333_v16 = vpop.permute.xlu0 %1332 }
 0x229   : > { %v1411_v36 = vadd.f32 %v1313_v32, %v1090_v29  ;;  %v1094_v37 = vadd.f32 %v1093_v35, %v820_v31  ;;  %v1338_v22 = vpop.permute.xlu1 %1337 }
 0x22a   : > { %1651 = vst [vmem:[%s3024_s15 + $0x98] sm:$0xff] %v1583_v33  ;;  %v1412_v48 = vadd.f32 %v1318_v38, %v1092_v34 }
 0x22b   : > { %v1506_v39 = vrot.slane %v1411_v36, 7  ;;  %v1413_v40 = vadd.f32 %v1318_v38, %v1094_v37 }
 0x22c   : > { %v824_v42 = vpop.f32.mrb[44].mxu1 }
 0x22d   : > { %v1507_v43 = vsel %vm1466_vm0, %v1504_v20, %v1506_v39  ;;  %v1508_v44 = vrot.slane %v1413_v40, 7  ;;  %v1097_v45 = vpop.f32.mrb[44].mxu0  ;;  %v826_v46 = vpop.f32.mrb[45].mxu1 }
 0x22e   : > { %v1584_v47 = vadd.f32 %v1507_v43, %v1410_v41  ;;  %v1098_v49 = vadd.f32 %v1097_v45, %v824_v42  ;;  %v1099_v50 = vpop.f32.mrb[45].mxu0  ;;  %v828_v51 = vpop.f32.mrb[46].mxu1 }
 0x22f   : > { %v1509_v8 = vsel %vm1466_vm0, %v1506_v39, %v1508_v44  ;;  %v1100_v52 = vadd.f32 %v1099_v50, %v826_v46  ;;  %v1101_v53 = vpop.f32.mrb[46].mxu0  ;;  %v830_v54 = vpop.f32.mrb[47].mxu1 }
 0x230   : > { %1652 = vst [vmem:[%s3024_s15 + $0xa0] sm:$0xff] %v1584_v47  ;;  %v1585_v56 = vadd.f32 %v1509_v8, %v1412_v48  ;;  %v1102_v57 = vadd.f32 %v1101_v53, %v828_v51  ;;  %v1103_v58 = vpop.f32.mrb[47].mxu0  ;;  %v1414_v0 = vadd.f32 %v1323_v55, %v1098_v49  ;;  %v1343_v40 = vpop.permute.xlu0 %1342 }
 0x231   : > { %v1415_v59 = vadd.f32 %v1323_v55, %v1100_v52  ;;  %v1104_v60 = vadd.f32 %v1103_v58, %v830_v54  ;;  %v1348_v46 = vpop.permute.xlu1 %1347 }
 0x232   : > { %1653 = vst [vmem:[%s3024_s15 + $0xa8] sm:$0xff] %v1585_v56  ;;  %v1416_v7 = vadd.f32 %v1328_v61, %v1102_v57 }
 0x233   : > { %v1510_v62 = vrot.slane %v1415_v59, 7  ;;  %v1417_v63 = vadd.f32 %v1328_v61, %v1104_v60 }
 0x234   : > { %v834_v1 = vpop.f32.mrb[48].mxu1 }
 0x235   : > { %v1511_v2 = vsel %vm1466_vm0, %v1508_v44, %v1510_v62  ;;  %v1512_v3 = vrot.slane %v1417_v63, 7  ;;  %v1107_v4 = vpop.f32.mrb[48].mxu0  ;;  %v836_v5 = vpop.f32.mrb[49].mxu1 }
 0x236   : > { %v1586_v6 = vadd.f32 %v1511_v2, %v1414_v0  ;;  %v1108_v9 = vadd.f32 %v1107_v4, %v834_v1  ;;  %v1109_v10 = vpop.f32.mrb[49].mxu0  ;;  %v838_v11 = vpop.f32.mrb[50].mxu1 }
 0x237   : > { %v1513_v12 = vsel %vm1466_vm0, %v1510_v62, %v1512_v3  ;;  %v1110_v13 = vadd.f32 %v1109_v10, %v836_v5  ;;  %v1111_v14 = vpop.f32.mrb[50].mxu0  ;;  %v840_v15 = vpop.f32.mrb[51].mxu1 }
 0x238   : > { %1654 = vst [vmem:[%s3024_s15 + $0xb0] sm:$0xff] %v1586_v6  ;;  %v1587_v17 = vadd.f32 %v1513_v12, %v1416_v7  ;;  %v1112_v18 = vadd.f32 %v1111_v14, %v838_v11  ;;  %v1113_v19 = vpop.f32.mrb[51].mxu0  ;;  %v1418_v25 = vadd.f32 %v1333_v16, %v1108_v9  ;;  %v1353_v63 = vpop.permute.xlu0 %1352 }
 0x239   : > { %v1419_v20 = vadd.f32 %v1333_v16, %v1110_v13  ;;  %v1114_v21 = vadd.f32 %v1113_v19, %v840_v15  ;;  %v1358_v5 = vpop.permute.xlu1 %1357 }
 0x23a   : > { %1655 = vst [vmem:[%s3024_s15 + $0xb8] sm:$0xff] %v1587_v17  ;;  %v1420_v32 = vadd.f32 %v1338_v22, %v1112_v18 }
 0x23b   : > { %v1514_v23 = vrot.slane %v1419_v20, 7  ;;  %v1421_v24 = vadd.f32 %v1338_v22, %v1114_v21 }
 0x23c   : > { %v844_v26 = vpop.f32.mrb[52].mxu1 }
 0x23d   : > { %v1515_v27 = vsel %vm1466_vm0, %v1512_v3, %v1514_v23  ;;  %v1516_v28 = vrot.slane %v1421_v24, 7  ;;  %v1117_v29 = vpop.f32.mrb[52].mxu0  ;;  %v846_v30 = vpop.f32.mrb[53].mxu1 }
 0x23e   : > { %v1588_v31 = vadd.f32 %v1515_v27, %v1418_v25  ;;  %v1118_v33 = vadd.f32 %v1117_v29, %v844_v26  ;;  %v1119_v34 = vpop.f32.mrb[53].mxu0  ;;  %v848_v35 = vpop.f32.mrb[54].mxu1 }
 0x23f   : > { %v1517_v36 = vsel %vm1466_vm0, %v1514_v23, %v1516_v28  ;;  %v1120_v37 = vadd.f32 %v1119_v34, %v846_v30  ;;  %v1121_v38 = vpop.f32.mrb[54].mxu0  ;;  %v850_v39 = vpop.f32.mrb[55].mxu1 }
 0x240   : > { %1656 = vst [vmem:[%s3024_s15 + $0xc0] sm:$0xff] %v1588_v31  ;;  %v1589_v41 = vadd.f32 %v1517_v36, %v1420_v32  ;;  %v1122_v42 = vadd.f32 %v1121_v38, %v848_v35  ;;  %v1123_v43 = vpop.f32.mrb[55].mxu0  ;;  %v1422_v49 = vadd.f32 %v1343_v40, %v1118_v33  ;;  %v1363_v24 = vpop.permute.xlu0 %1362 }
 0x241   : > { %v1423_v44 = vadd.f32 %v1343_v40, %v1120_v37  ;;  %v1124_v45 = vadd.f32 %v1123_v43, %v850_v39  ;;  %v1368_v30 = vpop.permute.xlu1 %1367 }
 0x242   : > { %1657 = vst [vmem:[%s3024_s15 + $0xc8] sm:$0xff] %v1589_v41  ;;  %v1424_v55 = vadd.f32 %v1348_v46, %v1122_v42 }
 0x243   : > { %v1518_v47 = vrot.slane %v1423_v44, 7  ;;  %v1425_v48 = vadd.f32 %v1348_v46, %v1124_v45 }
 0x244   : > { %v854_v50 = vpop.f32.mrb[56].mxu1 }
 0x245   : > { %v1519_v51 = vsel %vm1466_vm0, %v1516_v28, %v1518_v47  ;;  %v1520_v8 = vrot.slane %v1425_v48, 7  ;;  %v1127_v52 = vpop.f32.mrb[56].mxu0  ;;  %v856_v53 = vpop.f32.mrb[57].mxu1 }
 0x246   : > { %v1590_v54 = vadd.f32 %v1519_v51, %v1422_v49  ;;  %v1128_v56 = vadd.f32 %v1127_v52, %v854_v50  ;;  %v1129_v57 = vpop.f32.mrb[57].mxu0  ;;  %v858_v58 = vpop.f32.mrb[58].mxu1 }
 0x247   : > { %v1521_v59 = vsel %vm1466_vm0, %v1518_v47, %v1520_v8  ;;  %v1130_v60 = vadd.f32 %v1129_v57, %v856_v53  ;;  %v1131_v61 = vpop.f32.mrb[58].mxu0  ;;  %v860_v62 = vpop.f32.mrb[59].mxu1 }
 0x248   : > { %1658 = vst [vmem:[%s3024_s15 + $0xd0] sm:$0xff] %v1590_v54  ;;  %v1591_v0 = vadd.f32 %v1521_v59, %v1424_v55  ;;  %v1132_v1 = vadd.f32 %v1131_v61, %v858_v58  ;;  %v1133_v2 = vpop.f32.mrb[59].mxu0  ;;  %v1426_v9 = vadd.f32 %v1353_v63, %v1128_v56 }
 0x249   : > { %v1427_v3 = vadd.f32 %v1353_v63, %v1130_v60  ;;  %v1134_v4 = vadd.f32 %v1133_v2, %v860_v62 }
 0x24a   : > { %1659 = vst [vmem:[%s3024_s15 + $0xd8] sm:$0xff] %v1591_v0  ;;  %v1428_v16 = vadd.f32 %v1358_v5, %v1132_v1 }
 0x24b   : > { %v1522_v6 = vrot.slane %v1427_v3, 7  ;;  %v1429_v7 = vadd.f32 %v1358_v5, %v1134_v4 }
 0x24c   : > { %v864_v10 = vpop.f32.mrb[60].mxu1 }
 0x24d   : > { %v1523_v11 = vsel %vm1466_vm0, %v1520_v8, %v1522_v6  ;;  %v1524_v12 = vrot.slane %v1429_v7, 7  ;;  %v1137_v13 = vpop.f32.mrb[60].mxu0  ;;  %v866_v14 = vpop.f32.mrb[61].mxu1 }
 0x24e   : > { %v1592_v15 = vadd.f32 %v1523_v11, %v1426_v9  ;;  %v1138_v17 = vadd.f32 %v1137_v13, %v864_v10  ;;  %v1139_v18 = vpop.f32.mrb[61].mxu0  ;;  %v868_v19 = vpop.f32.mrb[62].mxu1 }
 0x24f   : > { %v1525_v20 = vsel %vm1466_vm0, %v1522_v6, %v1524_v12  ;;  %v1140_v21 = vadd.f32 %v1139_v18, %v866_v14  ;;  %v1141_v22 = vpop.f32.mrb[62].mxu0  ;;  %v870_v23 = vpop.f32.mrb[63].mxu1 }
 0x250   : > { %1660 = vst [vmem:[%s3024_s15 + $0xe0] sm:$0xff] %v1592_v15  ;;  %v1593_v25 = vadd.f32 %v1525_v20, %v1428_v16  ;;  %v1142_v26 = vadd.f32 %v1141_v22, %v868_v19  ;;  %v1143_v27 = vpop.f32.mrb[63].mxu0  ;;  %v1430_v33 = vadd.f32 %v1363_v24, %v1138_v17 }
 0x251   : > { %v1431_v28 = vadd.f32 %v1363_v24, %v1140_v21  ;;  %v1144_v29 = vadd.f32 %v1143_v27, %v870_v23 }
 0x252   : > { %1661 = vst [vmem:[%s3024_s15 + $0xe8] sm:$0xff] %v1593_v25  ;;  %v1432_v37 = vadd.f32 %v1368_v30, %v1142_v26 }
 0x253   : > { %v1526_v31 = vrot.slane %v1431_v28, 7  ;;  %v1433_v32 = vadd.f32 %v1368_v30, %v1144_v29 }
 0x255   : > { %v1527_v34 = vsel %vm1466_vm0, %v1524_v12, %v1526_v31  ;;  %v1528_v35 = vrot.slane %v1433_v32, 7 }
 0x256   : > { %v1594_v36 = vadd.f32 %v1527_v34, %v1430_v33 }
 0x257   : > { %v1529_v38 = vsel %vm1466_vm0, %v1526_v31, %v1528_v35  ;;  %1664 = vst [vmem:[#allocation2] sm:$0x1] %v1528_v35 }
 0x258   : > { %1662 = vst [vmem:[%s3024_s15 + $0xf0] sm:$0xff] %v1594_v36  ;;  %v1595_v39 = vadd.f32 %v1529_v38, %v1432_v37 }
 0x25a   : > { %1663 = vst [vmem:[%s3024_s15 + $0xf8] sm:$0xff] %v1595_v39 }
 0x25b PF: > { %p2183_p2 = scmp.ne.s32.totalorder %s2690_s23, 1 }
 0x25c   : > { %vm1670_vm1 = vcmask (!%p2183_p2), 1040384   ;;  %v2749_v42 = vmov (!%p2183_p2), 0.0  }
 0x25d   : > { %1668 = sbr.rel (%p2183_p2) target bundleno = 621 (0x26d), region = 64  ;;  %1673 = vst [vmem:[%s3024_s15 + $0x8] sm:$0xff] (!%p2183_p2), %v2749_v42  ;;  %1674 = vst [vmem:[%s3024_s15 + $0x10] sm:$0xff] (!%p2183_p2), %v2749_v42 }
 0x25e   : > { %v1669_v40 = vld [vmem:[#allocation2] sm:$0x1] (!%p2183_p2)  ;;  %1675 = vst [vmem:[%s3024_s15 + $0x18] sm:$0xff] (!%p2183_p2), %v2749_v42  ;;  %1676 = vst [vmem:[%s3024_s15 + $0x20] sm:$0xff] (!%p2183_p2), %v2749_v42 }
 0x25f   : > { %v1671_v41 = vsel (!%p2183_p2), %vm1670_vm1, %v1669_v40, 0.0  ;;  %1677 = vst [vmem:[%s3024_s15 + $0x28] sm:$0xff] (!%p2183_p2), %v2749_v42  ;;  %1678 = vst [vmem:[%s3024_s15 + $0x30] sm:$0xff] (!%p2183_p2), %v2749_v42 }
 0x260   : > { %1679 = vst [vmem:[%s3024_s15 + $0x38] sm:$0xff] (!%p2183_p2), %v2749_v42  ;;  %1680 = vst [vmem:[%s3024_s15 + $0x40] sm:$0xff] (!%p2183_p2), %v2749_v42 }
 0x261   : > { %1681 = vst [vmem:[%s3024_s15 + $0x48] sm:$0xff] (!%p2183_p2), %v2749_v42  ;;  %1682 = vst [vmem:[%s3024_s15 + $0x50] sm:$0xff] (!%p2183_p2), %v2749_v42 }
 0x262   : > { %1683 = vst [vmem:[%s3024_s15 + $0x58] sm:$0xff] (!%p2183_p2), %v2749_v42  ;;  %1684 = vst [vmem:[%s3024_s15 + $0x60] sm:$0xff] (!%p2183_p2), %v2749_v42 }
 0x263   : > { %1685 = vst [vmem:[%s3024_s15 + $0x68] sm:$0xff] (!%p2183_p2), %v2749_v42  ;;  %1686 = vst [vmem:[%s3024_s15 + $0x70] sm:$0xff] (!%p2183_p2), %v2749_v42 }
 0x264   : > { %1687 = vst [vmem:[%s3024_s15 + $0x78] sm:$0xff] %v2749_v42  ;;  %1688 = vst [vmem:[%s3024_s15 + $0x80] sm:$0xff] %v2749_v42 }
 0x265   : > { %1689 = vst [vmem:[%s3024_s15 + $0x88] sm:$0xff] %v2749_v42  ;;  %1690 = vst [vmem:[%s3024_s15 + $0x90] sm:$0xff] %v2749_v42 }
 0x266   : > { %1691 = vst [vmem:[%s3024_s15 + $0x98] sm:$0xff] %v2749_v42  ;;  %1692 = vst [vmem:[%s3024_s15 + $0xa0] sm:$0xff] %v2749_v42 }
 0x267   : > { %1693 = vst [vmem:[%s3024_s15 + $0xa8] sm:$0xff] %v2749_v42  ;;  %1694 = vst [vmem:[%s3024_s15 + $0xb0] sm:$0xff] %v2749_v42 }
 0x268   : > { %1695 = vst [vmem:[%s3024_s15 + $0xb8] sm:$0xff] %v2749_v42  ;;  %1696 = vst [vmem:[%s3024_s15 + $0xc0] sm:$0xff] %v2749_v42 }
 0x269   : > { %1697 = vst [vmem:[%s3024_s15 + $0xc8] sm:$0xff] %v2749_v42  ;;  %1698 = vst [vmem:[%s3024_s15 + $0xd0] sm:$0xff] %v2749_v42 }
 0x26a   : > { %1699 = vst [vmem:[%s3024_s15 + $0xd8] sm:$0xff] %v2749_v42  ;;  %1700 = vst [vmem:[%s3024_s15 + $0xe0] sm:$0xff] %v2749_v42 }
 0x26b   : > { %1701 = vst [vmem:[%s3024_s15 + $0xe8] sm:$0xff] %v2749_v42  ;;  %1702 = vst [vmem:[%s3024_s15 + $0xf0] sm:$0xff] %v2749_v42 }
 0x26c   : > { %1703 = vst [vmem:[%s3024_s15 + $0xf8] sm:$0xff] %v2749_v42  ;;  %1672 = vst [vmem:[%s3024_s15] sm:$0xff] %v1671_v41 }
 0x26d PF: > { %s3449_s17 = sld [smem:[#allocation12_spill]] }
 0x273   : > { %p3450_p4 = scmp.ne.s32.totalorder %s3449_s17, 0 }
 0x274   : > { %s2185_s29 = sshll.u32 (%p3450_p4), %s2690_s23, 5  ;;  %s2267_s28 = smul.u32 (%p3450_p4), 33, %s2694_s24 }
 0x275   : > { %1710 = sbr.rel (!%p3450_p4) target bundleno = 692 (0x2b4), region = 68  ;;  %s1712_s1 = ssub.s32 (%p3450_p4), 33, %s2185_s29 }
 0x276   : > { %p1713_p10 = scmp.lt.s32.totalorder (%p3450_p4), %s1712_s1, 32  ;;  %s1718_s0 = sadd.s32 (%p3450_p4), %s2267_s28, %s2185_s29 }
 0x277   : > { %s2188_s16 = sshll.u32 (%p3450_p4), %s1718_s0, 3  ;;  %s3451_s6 = sld [smem:[#allocation18_spill]] (%p3450_p4) }
 0x27c   : > { %s3479_s1 = smov (!%p1713_p10, %s1712_s1), 32 }
 0x27d   : > { %s3265_s10 = scalar_lea.vmem %s3451_s6, %s2188_s16   ;;  %s2186_s14 = sshll.u32 %s3479_s1, 7 }
 0x27e   : > { %p2189_p9 = scmp.eq.s32.totalorder %s2186_s14, 0 }
 0x27f   : > { %s3269_s4 = sshrl.u32 (!%p2189_p9), %s3479_s1, 5 }
 0x280   : > { %1723 = sbr.rel (%p2189_p9) target bundleno = 692 (0x2b4), region = 72  ;;  %p2190_p13 = scmp.le.s32.totalorder (!%p2189_p9), %s3269_s4, 0 }
 0x287   : > { %2040 = sbr.rel (%p2190_p13) target bundleno = 671 (0x29f), region = 159  ;;  %s3452_s23 = smov (!%p2190_p13), %s3265_s10 }
 0x288   : > { %s3453_s24 = smov (!%p2190_p13), %s3024_s15  ;;  %s3278_s20 = smov (!%p2190_p13), 0  }
 0x289   : > { %s3280_s18 = smov (!%p2190_p13), 0  }
 0x28e LB: >> { %v1847_v43 = vld [vmem:[%s2714_s24] sm:$0xff]  ;;  %v1849_v44 = vld [vmem:[%s2714_s24 + $0x8] sm:$0xff]  ;;  %v1851_v45 = vld [vmem:[%s2714_s24 + $0x10] sm:$0xff]  ;;  %s1911_s13 = sadd.s32 1, %s2718_s20  ;;  %s1841_s18 = sadd.s32 1, %s2722_s18   ;;  %s2722_s18 = sphi %s3280_s18, %s1841_s18   ;;  %s2718_s20 = sphi %s3278_s20, %s3456_s20   ;;  %s2714_s24 = sphi %s3453_s24, %s3455_s24   ;;  %s2710_s23 = sphi %s3452_s23, %s3454_s23  }
 0x28f   : >> { %1848 = vst [vmem:[%s2710_s23] sm:$0xff] %v1847_v43  ;;  %1850 = vst [vmem:[%s2710_s23 + $0x8] sm:$0xff] %v1849_v44  ;;  %v1853_v46 = vld [vmem:[%s2714_s24 + $0x18] sm:$0xff]  ;;  %v1855_v47 = vld [vmem:[%s2714_s24 + $0x20] sm:$0xff]  ;;  %p1912_p3 = scmp.ge.s32.totalorder %s1911_s13, %s3269_s4  ;;  %p1840_p6 = scmp.ge.s32.totalorder %s1841_s18, %s3269_s4 }
 0x290   : >> { %1852 = vst [vmem:[%s2710_s23 + $0x10] sm:$0xff] %v1851_v45  ;;  %v1857_v48 = vld [vmem:[%s2714_s24 + $0x28] sm:$0xff]  ;;  %1854 = vst [vmem:[%s2710_s23 + $0x18] sm:$0xff] %v1853_v46  ;;  %v1859_v49 = vld [vmem:[%s2714_s24 + $0x30] sm:$0xff] }
 0x291   : >> { %1856 = vst [vmem:[%s2710_s23 + $0x20] sm:$0xff] %v1855_v47  ;;  %1858 = vst [vmem:[%s2710_s23 + $0x28] sm:$0xff] %v1857_v48  ;;  %v1861_v50 = vld [vmem:[%s2714_s24 + $0x38] sm:$0xff]  ;;  %v1863_v51 = vld [vmem:[%s2714_s24 + $0x40] sm:$0xff]  ;;  %s3481_s13 = smov (%p1912_p3, %s1911_s13), 0 }
 0x292   : >> { %1860 = vst [vmem:[%s2710_s23 + $0x30] sm:$0xff] %v1859_v49  ;;  %1862 = vst [vmem:[%s2710_s23 + $0x38] sm:$0xff] %v1861_v50  ;;  %v1865_v8 = vld [vmem:[%s2714_s24 + $0x48] sm:$0xff]  ;;  %v1867_v52 = vld [vmem:[%s2714_s24 + $0x50] sm:$0xff]  ;;  %s2191_s8 = sshll.u32 %s3481_s13, 8  ;;  %s3456_s20 = smov %s3481_s13 }
 0x293   : >> { %1864 = vst [vmem:[%s2710_s23 + $0x40] sm:$0xff] %v1863_v51  ;;  %v1869_v53 = vld [vmem:[%s2714_s24 + $0x58] sm:$0xff]  ;;  %1866 = vst [vmem:[%s2710_s23 + $0x48] sm:$0xff] %v1865_v8  ;;  %v1871_v54 = vld [vmem:[%s2714_s24 + $0x60] sm:$0xff]  ;;  %s3336_s5 = scalar_lea.vmem %s3024_s15, %s2191_s8 [#allocation8]   ;;  %s1917_s9 = scalar_lea.vmem %s3265_s10, %s2191_s8  }
 0x294   : >> { %1868 = vst [vmem:[%s2710_s23 + $0x50] sm:$0xff] %v1867_v52  ;;  %1870 = vst [vmem:[%s2710_s23 + $0x58] sm:$0xff] %v1869_v53  ;;  %v1873_v55 = vld [vmem:[%s2714_s24 + $0x68] sm:$0xff]  ;;  %v1875_v56 = vld [vmem:[%s2714_s24 + $0x70] sm:$0xff] }
 0x295   : >> { %1872 = vst [vmem:[%s2710_s23 + $0x60] sm:$0xff] %v1871_v54  ;;  %1874 = vst [vmem:[%s2710_s23 + $0x68] sm:$0xff] %v1873_v55  ;;  %v1877_v57 = vld [vmem:[%s2714_s24 + $0x78] sm:$0xff]  ;;  %v1879_v58 = vld [vmem:[%s2714_s24 + $0x80] sm:$0xff] }
 0x296   : >> { %1876 = vst [vmem:[%s2710_s23 + $0x70] sm:$0xff] %v1875_v56  ;;  %v1881_v59 = vld [vmem:[%s2714_s24 + $0x88] sm:$0xff]  ;;  %1878 = vst [vmem:[%s2710_s23 + $0x78] sm:$0xff] %v1877_v57  ;;  %v1883_v60 = vld [vmem:[%s2714_s24 + $0x90] sm:$0xff] }
 0x297   : >> { %1880 = vst [vmem:[%s2710_s23 + $0x80] sm:$0xff] %v1879_v58  ;;  %1882 = vst [vmem:[%s2710_s23 + $0x88] sm:$0xff] %v1881_v59  ;;  %v1885_v61 = vld [vmem:[%s2714_s24 + $0x98] sm:$0xff]  ;;  %v1887_v62 = vld [vmem:[%s2714_s24 + $0xa0] sm:$0xff] }
 0x298   : >> { %1884 = vst [vmem:[%s2710_s23 + $0x90] sm:$0xff] %v1883_v60  ;;  %1886 = vst [vmem:[%s2710_s23 + $0x98] sm:$0xff] %v1885_v61  ;;  %v1889_v63 = vld [vmem:[%s2714_s24 + $0xa8] sm:$0xff]  ;;  %v1891_v0 = vld [vmem:[%s2714_s24 + $0xb0] sm:$0xff]  ;;  %1843 = sbr.rel (!%p1840_p6) target bundleno = 654 (0x28e), region = 165 }
 0x299   : >> { %1888 = vst [vmem:[%s2710_s23 + $0xa0] sm:$0xff] %v1887_v62  ;;  %v1893_v1 = vld [vmem:[%s2714_s24 + $0xb8] sm:$0xff]  ;;  %1890 = vst [vmem:[%s2710_s23 + $0xa8] sm:$0xff] %v1889_v63  ;;  %v1895_v2 = vld [vmem:[%s2714_s24 + $0xc0] sm:$0xff] }
 0x29a   : >> { %1892 = vst [vmem:[%s2710_s23 + $0xb0] sm:$0xff] %v1891_v0  ;;  %1894 = vst [vmem:[%s2710_s23 + $0xb8] sm:$0xff] %v1893_v1  ;;  %v1897_v3 = vld [vmem:[%s2714_s24 + $0xc8] sm:$0xff]  ;;  %v1899_v4 = vld [vmem:[%s2714_s24 + $0xd0] sm:$0xff] }
 0x29b   : >> { %1896 = vst [vmem:[%s2710_s23 + $0xc0] sm:$0xff] %v1895_v2  ;;  %1898 = vst [vmem:[%s2710_s23 + $0xc8] sm:$0xff] %v1897_v3  ;;  %v1901_v5 = vld [vmem:[%s2714_s24 + $0xd8] sm:$0xff]  ;;  %v1903_v6 = vld [vmem:[%s2714_s24 + $0xe0] sm:$0xff] }
 0x29c   : >> { %1900 = vst [vmem:[%s2710_s23 + $0xd0] sm:$0xff] %v1899_v4  ;;  %v1905_v7 = vld [vmem:[%s2714_s24 + $0xe8] sm:$0xff]  ;;  %1902 = vst [vmem:[%s2710_s23 + $0xd8] sm:$0xff] %v1901_v5  ;;  %v1907_v9 = vld [vmem:[%s2714_s24 + $0xf0] sm:$0xff] }
 0x29d   : >> { %1904 = vst [vmem:[%s2710_s23 + $0xe0] sm:$0xff] %v1903_v6  ;;  %1906 = vst [vmem:[%s2710_s23 + $0xe8] sm:$0xff] %v1905_v7  ;;  %v1909_v10 = vld [vmem:[%s2714_s24 + $0xf8] sm:$0xff]  ;;  %s3455_s24 = smov %s3336_s5 }
 0x29e   : >> { %1908 = vst [vmem:[%s2710_s23 + $0xf0] sm:$0xff] %v1907_v9  ;;  %1910 = vst [vmem:[%s2710_s23 + $0xf8] sm:$0xff] %v1909_v10  ;;  %s3454_s23 = smov %s1917_s9 }
 0x29f PF: > { %s3377_s17 = sand.u32 31, %s3479_s1   ;;  %s2201_s29 = sshll.u32 %s3269_s4, 8 }
 0x2a0   : > { %s1922_s28 = scalar_lea.vmem %s3024_s15, %s2201_s29 [#allocation8]   ;;  %s1924_s0 = scalar_lea.vmem %s3265_s10, %s2201_s29  }
 0x2a1   : > { %p2196_p11 = scmp.le.s32.totalorder %s3377_s17, 0 }
 0x2a2   : > { %s2724_s16 = smov (!%p2196_p11), %s1924_s0   ;;  %s2728_s12 = smov (!%p2196_p11), %s1922_s28  }
 0x2a3   : > { %2054 = sbr.rel (%p2196_p11) target bundleno = 692 (0x2b4), region = 170  ;;  %s2732_s7 = smov (!%p2196_p11), 0  }
 0x2a4   : > { %s2736_s6 = smov (!%p2196_p11), 0  }
 0x2aa LB: >> { %v1934_v11 = vld [vmem:[%s2730_s12] sm:$0xff]  ;;  %s1936_s1 = sadd.s32 1, %s2734_s7  ;;  %s1928_s6 = sadd.s32 1, %s2738_s6   ;;  %s2738_s6 = sphi %s2736_s6, %s1928_s6   ;;  %s2734_s7 = sphi %s2732_s7, %s2733_s7   ;;  %s2730_s12 = sphi %s2728_s12, %s1941_s12   ;;  %s2726_s16 = sphi %s2724_s16, %s1942_s16  }
 0x2ab   : >> { %1935 = vst [vmem:[%s2726_s16] sm:$0xff] %v1934_v11  ;;  %p1937_p1 = scmp.ge.s32.totalorder %s1936_s1, %s3377_s17  ;;  %p1927_p5 = scmp.ge.s32.totalorder %s1928_s6, %s3377_s17 }
 0x2ad   : >> { %s3483_s1 = smov (%p1937_p1, %s1936_s1), 0  ;;  %1930 = sbr.rel (!%p1927_p5) target bundleno = 682 (0x2aa), region = 176 }
 0x2ae   : >> { %s2197_s15 = sshll.u32 %s3483_s1, 3  ;;  %s2733_s7 = smov %s3483_s1  }
 0x2af   : >> { %s1941_s12 = scalar_lea.vmem %s1922_s28, %s2197_s15 [#allocation8]   ;;  %s1942_s16 = scalar_lea.vmem %s1924_s0, %s2197_s15  }
 0x2b4 PF: > { %s17_s27 = sadd.s32 1, %s2706_s27   ;;  %s3457_s10 = sld [smem:[#allocation13_spill]] }
 0x2b5   : > { %p14_p0 = scmp.ge.s32.totalorder %s17_s27, 6   ;;  %s3458_s14 = sld [smem:[#allocation14_spill]] }
 0x2b6   : > { %s3459_s18 = smov %s2674_s19  ;;  %s3460_s19 = smov %s2948_s30 }
 0x2b7   : > { %s3461_s20 = smov %s2682_s21  ;;  %s3462_s21 = smov %s2686_s22 }
 0x2b8   : > { %s3463_s22 = smov %s2953_s11  ;;  %s3464_s23 = smov %s2698_s25 }
 0x2b9   : > { %s3465_s24 = smov %s2702_s26  ;;  %16 = sbr.rel (!%p14_p0) target bundleno = 11 (0xb), region = 187 }
 0x2ba   : > { %s3466_s25 = smov %s3457_s10 }
 0x2bb   : > { %s3467_s26 = smov %s3458_s14 }
 0x2c0   :  { %1958 = vsyncpa [#allocation4], 1 }
 0x2c1   :  { %1960 = vsyncpa [#allocation4 + $0x1], 1 }
 0x2c2   :  { %1961 = vsyncpa [#allocation6], 1 }

</bundles_post_ra>
